<compile_context>
chip_gen: v6e
topology: v6e:2x2x1
jax: 0.10.0
libtpu: 0.0.40
codegen_flags: <defaults>
</compile_context>

<pallas_src>
import functools

import jax
import jax.numpy as jnp
from jax.experimental import pallas as pl
from jax.experimental.pallas import tpu as pltpu

LN_EPS = 1e-5
FREQ = 2      # self.freq in the PyTorch module
IND = 0       # self.ind  in the PyTorch module
NEG_INF = -1e30


# ----------------------------- in-kernel helpers -----------------------------

def _layernorm(x, w, b):
    # x: (BT, E) f32, w/b: (1, E) f32 (broadcast over rows)
    mu = jnp.mean(x, axis=-1, keepdims=True)
    var = jnp.mean(jnp.square(x - mu), axis=-1, keepdims=True)
    return (x - mu) * jax.lax.rsqrt(var + LN_EPS) * w + b


# ------------------------------- read_in kernel -------------------------------

def _read_in_kernel(z_ref, w_ref, b_ref, o_ref):
    # z: (B*T, d_in), w: (d_in, E), b: (1, E) -> o: (B*T, E)
    o_ref[...] = (jnp.dot(z_ref[...], w_ref[...],
                          preferred_element_type=jnp.float32)
                  + b_ref[...]).astype(o_ref.dtype)


def read_in(zs2d, w, b):
    BT = zs2d.shape[0]
    E = w.shape[1]
    return pl.pallas_call(
        _read_in_kernel,
        out_shape=jax.ShapeDtypeStruct((BT, E), jnp.float32),
    )(zs2d, w, b)


# --------------------------- fused looped backbone ----------------------------

def _fused_loop_kernel(n_head, B, T,
                       emb_ref,
                       ln1w_ref, ln1b_ref, wqkv_ref, bqkv_ref,
                       wproj_ref, bproj_ref, ln2w_ref, ln2b_ref,
                       wfc_ref, bfc_ref, wfc2_ref, bfc2_ref,
                       lnfw_ref, lnfb_ref, wro_ref, bro_ref,
                       out_ref, pred_ref,
                       x_ref, mask_ref):
    """Grid step (i, l) == layer l of loop iteration i of TransformerModelLooped."""
    loop_i = pl.program_id(0)
    layer_i = pl.program_id(1)
    n_layer = pl.num_programs(1)

    BT, E = x_ref.shape
    hd = E // n_head
    scale = 1.0 / float(hd) ** 0.5
    bf16 = jnp.bfloat16

    first_step = jnp.logical_and(loop_i == 0, layer_i == 0)

    @pl.when(first_step)
    def _():
        # Causal additive bias, built once; lives in scratch for all later steps.
        row = jax.lax.broadcasted_iota(jnp.int32, (T, T), 0)
        col = jax.lax.broadcasted_iota(jnp.int32, (T, T), 1)
        mask_ref[...] = jnp.where(col <= row, 0.0, NEG_INF).astype(jnp.float32)
        # output = zeros_like(embeds); inputs_embeds = output + embeds (+wpe).
        x_ref[...] = emb_ref[...]

    @pl.when(jnp.logical_and(layer_i == 0, loop_i > 0))
    def _():
        # carry (= previous loop's ln_f output) + embeds(+wpe)
        x_ref[...] = x_ref[...] + emb_ref[...]

    x = x_ref[...]                                              # (BT, E) f32

    # ---- causal multi-head self-attention (pre-LN) ----
    xn = _layernorm(x, ln1w_ref[0], ln1b_ref[0])
    qkv = (jnp.dot(xn.astype(bf16), wqkv_ref[0],
                   preferred_element_type=jnp.float32) + bqkv_ref[0])   # (BT, 3E)
    q = qkv[:, 0:E].reshape(B, T, E)
    k = qkv[:, E:2 * E].reshape(B, T, E)
    v = qkv[:, 2 * E:3 * E].reshape(B, T, E)
    bias = mask_ref[...][None, :, :]                                    # (1, T, T)

    # TODO(synk): a single 'bqhd,bkhd->bhqk' contraction needs a multi-batch-dim
    # dot_general (unsupported by Mosaic lowering); per-head 3-D einsums kept.
    head_outs = []
    for h in range(n_head):
        qh = q[:, :, h * hd:(h + 1) * hd].astype(bf16)
        kh = k[:, :, h * hd:(h + 1) * hd].astype(bf16)
        vh = v[:, :, h * hd:(h + 1) * hd].astype(bf16)
        s = jnp.einsum('bqd,bkd->bqk', qh, kh,
                       preferred_element_type=jnp.float32) * scale + bias
        s = s - jnp.max(s, axis=-1, keepdims=True)
        p = jnp.exp(s)
        p = p * pl.reciprocal(jnp.sum(p, axis=-1, keepdims=True), approx=True)
        head_outs.append(jnp.einsum('bqk,bkd->bqd', p.astype(bf16), vh,
                                    preferred_element_type=jnp.float32))
    attn = jnp.concatenate(head_outs, axis=-1).reshape(BT, E)

    x = x + (jnp.dot(attn.astype(bf16), wproj_ref[0],
                     preferred_element_type=jnp.float32) + bproj_ref[0])

    # ---- MLP ----
    xn2 = _layernorm(x, ln2w_ref[0], ln2b_ref[0])
    h1 = (jnp.dot(xn2.astype(bf16), wfc_ref[0],
                  preferred_element_type=jnp.float32) + bfc_ref[0])
    h1 = jax.nn.gelu(h1, approximate=True)               # GPT-2 "gelu_new"
    h2 = (jnp.dot(h1.astype(bf16), wfc2_ref[0],
                  preferred_element_type=jnp.float32) + bfc2_ref[0])
    x = x + h2

    is_last = layer_i == n_layer - 1

    @pl.when(jnp.logical_not(is_last))
    def _():
        x_ref[...] = x                                    # carry to next layer step

    # ---- ln_f, loop-carry update, fused read_out head (last layer only) ----
    @pl.when(is_last)
    def _():
        out = _layernorm(x, lnfw_ref[...], lnfb_ref[...])
        x_ref[...] = out                                  # loop carry == f_output
        out_ref[0] = out.astype(out_ref.dtype)
        # read_out: E -> 1 as VPU multiply + lane reduction (lane-dense output).
        pred = jnp.sum(out * wro_ref[...], axis=-1)       # (BT,)
        pred = pred[None, :] + bro_ref[...]               # (1, BT)
        pred_ref[...] = pred.reshape(1, 1, BT).astype(pred_ref.dtype)


# ------------------------------- model (glue) --------------------------------

def combine(xs, ys, freq=FREQ):
    """xs: [B, n, d], ys: [B, n] -> zs: [B, freq*n, d]  (matches _combine)."""
    B, n, d = xs.shape
    ys_wide = jnp.concatenate(
        [ys[:, :, None], jnp.zeros((B, n, d - 1), xs.dtype)], axis=2)
    zs = jnp.stack([xs, ys_wide], axis=2)                 # (B, n, 2, d)
    return zs.reshape(B, freq * n, d)


def init_params(key, n_dims, n_positions, n_embd, n_layer):
    block_size = FREQ * n_positions + 1
    ks = jax.random.split(key, 7)
    E = n_embd
    f32, bf16 = jnp.float32, jnp.bfloat16

    def nrm(k, shape, dtype, scale=0.02):
        return (scale * jax.random.normal(k, shape)).astype(dtype)

    return {
        'read_in_w': nrm(ks[0], (n_dims, E), f32),
        'read_in_b': jnp.zeros((1, E), f32),
        'wpe': nrm(ks[1], (block_size, E), f32),
        # Per-layer params stacked along a leading n_layer axis.  Big matrices
        # are bf16 (native MXU dtype); LayerNorm / bias params stay f32.  The
        # small per-layer params are shaped (L, 1, X) so their per-layer block
        # (1, 1, X) has full-extent trailing dims (clean (8,128) tiling).
        'ln1_w': jnp.ones((n_layer, 1, E), f32),
        'ln1_b': jnp.zeros((n_layer, 1, E), f32),
        'w_qkv': nrm(ks[2], (n_layer, E, 3 * E), bf16),
        'b_qkv': jnp.zeros((n_layer, 1, 3 * E), f32),
        'w_proj': nrm(ks[3], (n_layer, E, E), bf16),
        'b_proj': jnp.zeros((n_layer, 1, E), f32),
        'ln2_w': jnp.ones((n_layer, 1, E), f32),
        'ln2_b': jnp.zeros((n_layer, 1, E), f32),
        'w_fc': nrm(ks[4], (n_layer, E, 4 * E), bf16),
        'b_fc': jnp.zeros((n_layer, 1, 4 * E), f32),
        'w_fc2': nrm(ks[5], (n_layer, 4 * E, E), bf16),
        'b_fc2': jnp.zeros((n_layer, 1, E), f32),
        'lnf_w': jnp.ones((1, E), f32),
        'lnf_b': jnp.zeros((1, E), f32),
        'read_out_w': nrm(ks[6], (1, E), f32),   # row vector: used as VPU mul + reduce
        'read_out_b': jnp.zeros((1, 1), f32),
    }


def _vmem_limit_bytes(B, T, E):
    """Double-buffered inputs/outputs + scratch, plus generous headroom."""
    BT = B * T
    invariant = (BT * E + 2 * E + E + 1) * 4                          # emb, lnf w/b, wro, bro
    per_layer_big = (E * 3 * E + E * E + E * 4 * E + 4 * E * E) * 2   # bf16 weights
    per_layer_small = (2 * E + 3 * E + E + 2 * E + 4 * E + E) * 4     # LN params + biases
    out_blocks = (BT * E + BT) * 4
    scratch = (BT * E + T * T) * 4
    total = 2 * (invariant + per_layer_big + per_layer_small + out_blocks) + scratch
    return int(min(total + (16 << 20), 64 << 20))


def transformer_model_looped_forward(params, xs, ys, n_loop_start, n_loops,
                                     n_head=4):
    """Mirrors TransformerModelLooped.forward (n_loop_start is unused there too)."""
    del n_loop_start
    B, n, d = xs.shape
    T = FREQ * n
    BT = B * T
    E = params['read_in_w'].shape[1]
    L = params['w_qkv'].shape[0]

    zs = combine(xs, ys).reshape(BT, d)                               # [B*T, d]
    embeds = read_in(zs, params['read_in_w'], params['read_in_b'])    # [B*T, E]
    # Fold the learned positional embedding into the loop-invariant input once.
    emb_pos = (embeds.reshape(B, T, E) + params['wpe'][:T][None]).reshape(BT, E)

    def inv(a):        # loop/layer-invariant: whole array, constant block index
        return pl.BlockSpec(a.shape, lambda i, l, nd=a.ndim: (0,) * nd)

    def per_layer(a):  # one layer's slice per grid step along the layer axis
        return pl.BlockSpec((1,) + a.shape[1:],
                            lambda i, l, nd=a.ndim: (l,) + (0,) * (nd - 1))

    outs, preds = pl.pallas_call(
        functools.partial(_fused_loop_kernel, n_head, B, T),
        grid=(n_loops, L),
        in_specs=[
            inv(emb_pos),
            per_layer(params['ln1_w']), per_layer(params['ln1_b']),
            per_layer(params['w_qkv']), per_layer(params['b_qkv']),
            per_layer(params['w_proj']), per_layer(params['b_proj']),
            per_layer(params['ln2_w']), per_layer(params['ln2_b']),
            per_layer(params['w_fc']), per_layer(params['b_fc']),
            per_layer(params['w_fc2']), per_layer(params['b_fc2']),
            inv(params['lnf_w']), inv(params['lnf_b']),
            inv(params['read_out_w']), inv(params['read_out_b']),
        ],
        out_shape=(
            jax.ShapeDtypeStruct((n_loops, BT, E), jnp.float32),  # ln_f output / loop
            jax.ShapeDtypeStruct((n_loops, 1, BT), jnp.float32),  # read_out / loop
        ),
        out_specs=(
            pl.BlockSpec((1, BT, E), lambda i, l: (i, 0, 0)),
            pl.BlockSpec((1, 1, BT), lambda i, l: (i, 0, 0)),
        ),
        scratch_shapes=[
            pltpu.VMEM((BT, E), jnp.float32),   # activation carried across layers/loops
            pltpu.VMEM((T, T), jnp.float32),    # additive causal bias (built once)
        ],
        compiler_params=pltpu.CompilerParams(
            dimension_semantics=("arbitrary", "arbitrary"),  # both axes carry state
            vmem_limit_bytes=_vmem_limit_bytes(B, T, E),
        ),
    )(emb_pos,
      params['ln1_w'], params['ln1_b'], params['w_qkv'], params['b_qkv'],
      params['w_proj'], params['b_proj'], params['ln2_w'], params['ln2_b'],
      params['w_fc'], params['b_fc'], params['w_fc2'], params['b_fc2'],
      params['lnf_w'], params['lnf_b'],
      params['read_out_w'], params['read_out_b'])

    embeds_list_total = [embeds.reshape(B, T, E)]
    embeds_list_total += [outs[i].reshape(B, T, E) for i in range(n_loops)]
    preds_bt = preds.reshape(n_loops, B, T)
    pred_list = [preds_bt[i, :, IND::FREQ] for i in range(n_loops)]   # each [B, n]
    return pred_list, embeds_list_total


# ----------------------------------- main -------------------------------------

if __name__ == "__main__":
    B, n, d_in = 2, 8, 8            # xs: [B, n, d_in], ys: [B, n]
    n_embd, n_layer, n_head = 128, 2, 4
    n_positions = n
    n_loops = 3

    key = jax.random.PRNGKey(0)
    kx, ky, kp = jax.random.split(key, 3)
    xs = jax.random.normal(kx, (B, n, d_in), jnp.float32)
    ys = jax.random.normal(ky, (B, n), jnp.float32)
    params = init_params(kp, d_in, n_positions, n_embd, n_layer)

    fwd = jax.jit(functools.partial(transformer_model_looped_forward,
                                    n_loop_start=0, n_loops=n_loops,
                                    n_head=n_head))
    pred_list, embeds_list_total = fwd(params, xs, ys)

    jax.block_until_ready(pred_list)
    jax.block_until_ready(embeds_list_total)

    assert len(pred_list) == n_loops
    assert pred_list[0].shape == (B, n)
    assert len(embeds_list_total) == n_loops + 1
    assert embeds_list_total[0].shape == (B, FREQ * n, n_embd)
    assert all(bool(jnp.all(jnp.isfinite(p))) for p in pred_list)
    print("KERNEL_OK")
</pallas_src>

<mosaic_0001>
module attributes {stable_mosaic.version = 11 : i64} {
  func.func @_read_in_kernel(%arg0: memref<32x8xf32, #tpu.memory_space<vmem>>, %arg1: memref<8x128xf32, #tpu.memory_space<vmem>>, %arg2: memref<1x128xf32, #tpu.memory_space<vmem>>, %arg3: memref<32x128xf32, #tpu.memory_space<vmem>>) attributes {dimension_semantics = [], scalar_prefetch = 0 : i64, scratch_operands = 0 : i64, tpu.core_type = #tpu.core_type<tc>} {
    %c0 = arith.constant 0 : index
    %c0_0 = arith.constant 0 : index
    %0 = vector.load %arg0[%c0, %c0_0] : memref<32x8xf32, #tpu.memory_space<vmem>>, vector<32x8xf32>
    %c0_1 = arith.constant 0 : index
    %c0_2 = arith.constant 0 : index
    %1 = vector.load %arg1[%c0_1, %c0_2] : memref<8x128xf32, #tpu.memory_space<vmem>>, vector<8x128xf32>
    %cst = arith.constant dense<0.000000e+00> : vector<32x128xf32>
    %2 = tpu.matmul %0, %1, %cst {dimension_numbers = #tpu.dot_dimension_numbers<[1], [0], [0], [1], [0, 0, 1, 1], [], []>} : vector<32x8xf32>, vector<8x128xf32>, vector<32x128xf32> -> vector<32x128xf32>
    %c0_3 = arith.constant 0 : index
    %c0_4 = arith.constant 0 : index
    %3 = vector.load %arg2[%c0_3, %c0_4] : memref<1x128xf32, #tpu.memory_space<vmem>>, vector<1x128xf32>
    %4 = vector.broadcast %3 : vector<1x128xf32> to vector<32x128xf32>
    %5 = arith.addf %2, %4 : vector<32x128xf32>
    %c0_5 = arith.constant 0 : index
    %c0_6 = arith.constant 0 : index
    %6 = vector.load %arg3[%c0_5, %c0_6] : memref<32x128xf32, #tpu.memory_space<vmem>>, vector<32x128xf32>
    tpu.vector_store %arg3[%c0_5, %c0_6], %5 {strides = array<i32>} : memref<32x128xf32, #tpu.memory_space<vmem>>, vector<32x128xf32>,
    return
  }
}

module attributes {stable_mosaic.version = 11 : i64} {
  func.func @_fused_loop_kernel(%arg0: i32, %arg1: i32, %arg2: memref<32x128xf32, #tpu.memory_space<vmem>>, %arg3: memref<1x1x128xf32, #tpu.memory_space<vmem>>, %arg4: memref<1x1x128xf32, #tpu.memory_space<vmem>>, %arg5: memref<1x128x384xbf16, #tpu.memory_space<vmem>>, %arg6: memref<1x1x384xf32, #tpu.memory_space<vmem>>, %arg7: memref<1x128x128xbf16, #tpu.memory_space<vmem>>, %arg8: memref<1x1x128xf32, #tpu.memory_space<vmem>>, %arg9: memref<1x1x128xf32, #tpu.memory_space<vmem>>, %arg10: memref<1x1x128xf32, #tpu.memory_space<vmem>>, %arg11: memref<1x128x512xbf16, #tpu.memory_space<vmem>>, %arg12: memref<1x1x512xf32, #tpu.memory_space<vmem>>, %arg13: memref<1x512x128xbf16, #tpu.memory_space<vmem>>, %arg14: memref<1x1x128xf32, #tpu.memory_space<vmem>>, %arg15: memref<1x128xf32, #tpu.memory_space<vmem>>, %arg16: memref<1x128xf32, #tpu.memory_space<vmem>>, %arg17: memref<1x128xf32, #tpu.memory_space<vmem>>, %arg18: memref<1x1xf32, #tpu.memory_space<vmem>>, %arg19: memref<1x32x128xf32, #tpu.memory_space<vmem>>, %arg20: memref<1x1x32xf32, #tpu.memory_space<vmem>>, %arg21: memref<32x128xf32, #tpu.memory_space<vmem>>, %arg22: memref<16x16xf32, #tpu.memory_space<vmem>>) attributes {dimension_semantics = [#tpu.dimension_semantics<arbitrary>, #tpu.dimension_semantics<arbitrary>], iteration_bounds = array<i64: 3, 2>, scalar_prefetch = 0 : i64, scratch_operands = 2 : i64, tpu.core_type = #tpu.core_type<tc>, window_params = [{pipeline_mode = #tpu.pipeline_mode<synchronous>, transform_indices = @transform_0, window_bounds = array<i64: 32, 128>}, {transform_indices = @transform_1, window_bounds = array<i64: 1, 1, 128>}, {transform_indices = @transform_2, window_bounds = array<i64: 1, 1, 128>}, {transform_indices = @transform_3, window_bounds = array<i64: 1, 128, 384>}, {transform_indices = @transform_4, window_bounds = array<i64: 1, 1, 384>}, {transform_indices = @transform_5, window_bounds = array<i64: 1, 128, 128>}, {transform_indices = @transform_6, window_bounds = array<i64: 1, 1, 128>}, {transform_indices = @transform_7, window_bounds = array<i64: 1, 1, 128>}, {transform_indices = @transform_8, window_bounds = array<i64: 1, 1, 128>}, {transform_indices = @transform_9, window_bounds = array<i64: 1, 128, 512>}, {transform_indices = @transform_10, window_bounds = array<i64: 1, 1, 512>}, {transform_indices = @transform_11, window_bounds = array<i64: 1, 512, 128>}, {transform_indices = @transform_12, window_bounds = array<i64: 1, 1, 128>}, {pipeline_mode = #tpu.pipeline_mode<synchronous>, transform_indices = @transform_13, window_bounds = array<i64: 1, 128>}, {pipeline_mode = #tpu.pipeline_mode<synchronous>, transform_indices = @transform_14, window_bounds = array<i64: 1, 128>}, {pipeline_mode = #tpu.pipeline_mode<synchronous>, transform_indices = @transform_15, window_bounds = array<i64: 1, 128>}, {pipeline_mode = #tpu.pipeline_mode<synchronous>, transform_indices = @transform_16, window_bounds = array<i64: 1, 1>}, {transform_indices = @transform_17, window_bounds = array<i64: 1, 32, 128>}, {transform_indices = @transform_18, window_bounds = array<i64: 1, 1, 32>}]} {
    %c0_i32 = arith.constant 0 : i32
    %0 = arith.cmpi eq, %arg0, %c0_i32 : i32
    %c0_i32_0 = arith.constant 0 : i32
    %1 = arith.cmpi eq, %arg1, %c0_i32_0 : i32
    %2 = arith.andi %0, %1 : i1
    %3 = arith.extui %2 : i1 to i32
    %c0_i32_1 = arith.constant 0 : i32
    %4 = arith.cmpi ne, %3, %c0_i32_1 : i32
    scf.if %4 {
      %218 = tpu.iota {dimensions = array<i32: 0>} : vector<16x16xi32>
      %219 = tpu.iota {dimensions = array<i32: 1>} : vector<16x16xi32>
      %220 = arith.cmpi sle, %219, %218 : vector<16x16xi32>
      %cst_83 = arith.constant 0.000000e+00 : f32
      %cst_84 = arith.constant -1.000000e+30 : f32
      %221 = vector.broadcast %cst_83 : f32 to vector<16x16xf32>
      %222 = vector.broadcast %cst_84 : f32 to vector<16x16xf32>
      %223 = arith.select %220, %221, %222 : vector<16x16xi1>, vector<16x16xf32>
      %c0_85 = arith.constant 0 : index
      %c0_86 = arith.constant 0 : index
      %224 = vector.load %arg22[%c0_85, %c0_86] : memref<16x16xf32, #tpu.memory_space<vmem>>, vector<16x16xf32>
      tpu.vector_store %arg22[%c0_85, %c0_86], %223 {strides = array<i32>} : memref<16x16xf32, #tpu.memory_space<vmem>>, vector<16x16xf32>,
      %c0_87 = arith.constant 0 : index
      %c0_88 = arith.constant 0 : index
      %225 = vector.load %arg2[%c0_87, %c0_88] : memref<32x128xf32, #tpu.memory_space<vmem>>, vector<32x128xf32>
      %c0_89 = arith.constant 0 : index
      %c0_90 = arith.constant 0 : index
      %226 = vector.load %arg21[%c0_89, %c0_90] : memref<32x128xf32, #tpu.memory_space<vmem>>, vector<32x128xf32>
      tpu.vector_store %arg21[%c0_89, %c0_90], %225 {strides = array<i32>} : memref<32x128xf32, #tpu.memory_space<vmem>>, vector<32x128xf32>,
    } else {
    }
    %c0_i32_2 = arith.constant 0 : i32
    %5 = arith.cmpi eq, %arg1, %c0_i32_2 : i32
    %c0_i32_3 = arith.constant 0 : i32
    %6 = arith.cmpi sgt, %arg0, %c0_i32_3 : i32
    %7 = arith.andi %5, %6 : i1
    %8 = arith.extui %7 : i1 to i32
    %c0_i32_4 = arith.constant 0 : i32
    %9 = arith.cmpi ne, %8, %c0_i32_4 : i32
    scf.if %9 {
      %c0_83 = arith.constant 0 : index
      %c0_84 = arith.constant 0 : index
      %218 = vector.load %arg21[%c0_83, %c0_84] : memref<32x128xf32, #tpu.memory_space<vmem>>, vector<32x128xf32>
      %c0_85 = arith.constant 0 : index
      %c0_86 = arith.constant 0 : index
      %219 = vector.load %arg2[%c0_85, %c0_86] : memref<32x128xf32, #tpu.memory_space<vmem>>, vector<32x128xf32>
      %220 = arith.addf %218, %219 : vector<32x128xf32>
      %c0_87 = arith.constant 0 : index
      %c0_88 = arith.constant 0 : index
      %221 = vector.load %arg21[%c0_87, %c0_88] : memref<32x128xf32, #tpu.memory_space<vmem>>, vector<32x128xf32>
      tpu.vector_store %arg21[%c0_87, %c0_88], %220 {strides = array<i32>} : memref<32x128xf32, #tpu.memory_space<vmem>>, vector<32x128xf32>,
    } else {
    }
    %c0 = arith.constant 0 : index
    %c0_5 = arith.constant 0 : index
    %10 = vector.load %arg21[%c0, %c0_5] : memref<32x128xf32, #tpu.memory_space<vmem>>, vector<32x128xf32>
    %c0_6 = arith.constant 0 : index
    %c0_7 = arith.constant 0 : index
    %c0_8 = arith.constant 0 : index
    %11 = vector.load %arg3[%c0_6, %c0_7, %c0_8] : memref<1x1x128xf32, #tpu.memory_space<vmem>>, vector<1x1x128xf32>
    %12 = vector.shape_cast %11 : vector<1x1x128xf32> to vector<1x128xf32>
    %c0_9 = arith.constant 0 : index
    %c0_10 = arith.constant 0 : index
    %c0_11 = arith.constant 0 : index
    %13 = vector.load %arg4[%c0_9, %c0_10, %c0_11] : memref<1x1x128xf32, #tpu.memory_space<vmem>>, vector<1x1x128xf32>
    %14 = vector.shape_cast %13 : vector<1x1x128xf32> to vector<1x128xf32>
    %cst = arith.constant dense<0.000000e+00> : vector<32xf32>
    %15 = vector.multi_reduction <add>, %10, %cst [1] : vector<32x128xf32> to vector<32xf32>
    %16 = vector.shape_cast %15 : vector<32xf32> to vector<32x1xf32>
    %cst_12 = arith.constant 1.280000e+02 : f32
    %17 = vector.broadcast %cst_12 : f32 to vector<32x1xf32>
    %18 = arith.divf %16, %17 : vector<32x1xf32>
    %19 = vector.broadcast %18 : vector<32x1xf32> to vector<32x128xf32>
    %20 = arith.subf %10, %19 : vector<32x128xf32>
    %21 = arith.mulf %20, %20 : vector<32x128xf32>
    %cst_13 = arith.constant dense<0.000000e+00> : vector<32xf32>
    %22 = vector.multi_reduction <add>, %21, %cst_13 [1] : vector<32x128xf32> to vector<32xf32>
    %23 = vector.shape_cast %22 : vector<32xf32> to vector<32x1xf32>
    %cst_14 = arith.constant 1.280000e+02 : f32
    %24 = vector.broadcast %cst_14 : f32 to vector<32x1xf32>
    %25 = arith.divf %23, %24 : vector<32x1xf32>
    %26 = vector.broadcast %18 : vector<32x1xf32> to vector<32x128xf32>
    %27 = arith.subf %10, %26 : vector<32x128xf32>
    %cst_15 = arith.constant 9.99999974E-6 : f32
    %28 = vector.broadcast %cst_15 : f32 to vector<32x1xf32>
    %29 = arith.addf %25, %28 : vector<32x1xf32>
    %30 = math.rsqrt %29 : vector<32x1xf32>
    %31 = vector.broadcast %30 : vector<32x1xf32> to vector<32x128xf32>
    %32 = arith.mulf %27, %31 : vector<32x128xf32>
    %33 = vector.broadcast %12 : vector<1x128xf32> to vector<32x128xf32>
    %34 = arith.mulf %32, %33 : vector<32x128xf32>
    %35 = vector.broadcast %14 : vector<1x128xf32> to vector<32x128xf32>
    %36 = arith.addf %34, %35 : vector<32x128xf32>
    %37 = arith.truncf %36 : vector<32x128xf32> to vector<32x128xbf16>
    %c0_16 = arith.constant 0 : index
    %c0_17 = arith.constant 0 : index
    %c0_18 = arith.constant 0 : index
    %38 = vector.load %arg5[%c0_16, %c0_17, %c0_18] : memref<1x128x384xbf16, #tpu.memory_space<vmem>>, vector<1x128x384xbf16>
    %39 = vector.shape_cast %38 : vector<1x128x384xbf16> to vector<128x384xbf16>
    %cst_19 = arith.constant dense<0.000000e+00> : vector<32x384xf32>
    %40 = tpu.matmul %37, %39, %cst_19 {dimension_numbers = #tpu.dot_dimension_numbers<[1], [0], [0], [1], [0, 0, 1, 1], [], []>} : vector<32x128xbf16>, vector<128x384xbf16>, vector<32x384xf32> -> vector<32x384xf32>
    %c0_20 = arith.constant 0 : index
    %c0_21 = arith.constant 0 : index
    %c0_22 = arith.constant 0 : index
    %41 = vector.load %arg6[%c0_20, %c0_21, %c0_22] : memref<1x1x384xf32, #tpu.memory_space<vmem>>, vector<1x1x384xf32>
    %42 = vector.shape_cast %41 : vector<1x1x384xf32> to vector<1x384xf32>
    %43 = vector.broadcast %42 : vector<1x384xf32> to vector<32x384xf32>
    %44 = arith.addf %40, %43 : vector<32x384xf32>
    %45 = vector.extract_strided_slice %44 {offsets = [0, 0], sizes = [32, 128], strides = [1, 1]} : vector<32x384xf32> to vector<32x128xf32>
    %46 = vector.shape_cast %45 : vector<32x128xf32> to vector<2x16x128xf32>
    %47 = vector.extract_strided_slice %44 {offsets = [0, 128], sizes = [32, 128], strides = [1, 1]} : vector<32x384xf32> to vector<32x128xf32>
    %48 = vector.shape_cast %47 : vector<32x128xf32> to vector<2x16x128xf32>
    %49 = vector.extract_strided_slice %44 {offsets = [0, 256], sizes = [32, 128], strides = [1, 1]} : vector<32x384xf32> to vector<32x128xf32>
    %50 = vector.shape_cast %49 : vector<32x128xf32> to vector<2x16x128xf32>
    %c0_23 = arith.constant 0 : index
    %c0_24 = arith.constant 0 : index
    %51 = vector.load %arg22[%c0_23, %c0_24] : memref<16x16xf32, #tpu.memory_space<vmem>>, vector<16x16xf32>
    %52 = vector.shape_cast %51 : vector<16x16xf32> to vector<1x16x16xf32>
    %53 = vector.extract_strided_slice %46 {offsets = [0, 0, 0], sizes = [2, 16, 32], strides = [1, 1, 1]} : vector<2x16x128xf32> to vector<2x16x32xf32>
    %54 = arith.truncf %53 : vector<2x16x32xf32> to vector<2x16x32xbf16>
    %55 = vector.extract_strided_slice %48 {offsets = [0, 0, 0], sizes = [2, 16, 32], strides = [1, 1, 1]} : vector<2x16x128xf32> to vector<2x16x32xf32>
    %56 = arith.truncf %55 : vector<2x16x32xf32> to vector<2x16x32xbf16>
    %57 = vector.extract_strided_slice %50 {offsets = [0, 0, 0], sizes = [2, 16, 32], strides = [1, 1, 1]} : vector<2x16x128xf32> to vector<2x16x32xf32>
    %58 = arith.truncf %57 : vector<2x16x32xf32> to vector<2x16x32xbf16>
    "tpu.trace_start"() <{level = 10 : i32, message = "bqd,bkd->bqk"}> : () -> ()
    %cst_25 = arith.constant dense<0.000000e+00> : vector<2x16x16xf32>
    %59 = tpu.matmul %54, %56, %cst_25 {dimension_numbers = #tpu.dot_dimension_numbers<[2], [2], [1], [1], [0, 0, 0, 1, 1, 1], [0], [0]>} : vector<2x16x32xbf16>, vector<2x16x32xbf16>, vector<2x16x16xf32> -> vector<2x16x16xf32>
    "tpu.trace_stop"() : () -> ()
    %cst_26 = arith.constant 0.176776692 : f32
    %60 = vector.broadcast %cst_26 : f32 to vector<2x16x16xf32>
    %61 = arith.mulf %59, %60 : vector<2x16x16xf32>
    %62 = vector.broadcast %52 : vector<1x16x16xf32> to vector<2x16x16xf32>
    %63 = arith.addf %61, %62 : vector<2x16x16xf32>
    %cst_27 = arith.constant dense<0xFF800000> : vector<2x16xf32>
    %64 = vector.multi_reduction <maximumf>, %63, %cst_27 [2] : vector<2x16x16xf32> to vector<2x16xf32>
    %65 = vector.shape_cast %64 : vector<2x16xf32> to vector<2x16x1xf32>
    %66 = vector.broadcast %65 : vector<2x16x1xf32> to vector<2x16x16xf32>
    %67 = arith.subf %63, %66 : vector<2x16x16xf32>
    %68 = math.exp %67 : vector<2x16x16xf32>
    %cst_28 = arith.constant dense<0.000000e+00> : vector<2x16xf32>
    %69 = vector.multi_reduction <add>, %68, %cst_28 [2] : vector<2x16x16xf32> to vector<2x16xf32>
    %70 = vector.shape_cast %69 : vector<2x16xf32> to vector<2x16x1xf32>
    %71 = tpu.reciprocal %70 {approx = true} : vector<2x16x1xf32> -> vector<2x16x1xf32>
    %72 = vector.broadcast %71 : vector<2x16x1xf32> to vector<2x16x16xf32>
    %73 = arith.mulf %68, %72 : vector<2x16x16xf32>
    %74 = arith.truncf %73 : vector<2x16x16xf32> to vector<2x16x16xbf16>
    "tpu.trace_start"() <{level = 10 : i32, message = "bqk,bkd->bqd"}> : () -> ()
    %cst_29 = arith.constant dense<0.000000e+00> : vector<2x16x32xf32>
    %75 = tpu.matmul %74, %58, %cst_29 {dimension_numbers = #tpu.dot_dimension_numbers<[2], [1], [1], [2], [0, 0, 0, 1, 1, 2], [0], [0]>} : vector<2x16x16xbf16>, vector<2x16x32xbf16>, vector<2x16x32xf32> -> vector<2x16x32xf32>
    "tpu.trace_stop"() : () -> ()
    %76 = vector.extract_strided_slice %46 {offsets = [0, 0, 32], sizes = [2, 16, 32], strides = [1, 1, 1]} : vector<2x16x128xf32> to vector<2x16x32xf32>
    %77 = arith.truncf %76 : vector<2x16x32xf32> to vector<2x16x32xbf16>
    %78 = vector.extract_strided_slice %48 {offsets = [0, 0, 32], sizes = [2, 16, 32], strides = [1, 1, 1]} : vector<2x16x128xf32> to vector<2x16x32xf32>
    %79 = arith.truncf %78 : vector<2x16x32xf32> to vector<2x16x32xbf16>
    %80 = vector.extract_strided_slice %50 {offsets = [0, 0, 32], sizes = [2, 16, 32], strides = [1, 1, 1]} : vector<2x16x128xf32> to vector<2x16x32xf32>
    %81 = arith.truncf %80 : vector<2x16x32xf32> to vector<2x16x32xbf16>
    "tpu.trace_start"() <{level = 10 : i32, message = "bqd,bkd->bqk"}> : () -> ()
    %cst_30 = arith.constant dense<0.000000e+00> : vector<2x16x16xf32>
    %82 = tpu.matmul %77, %79, %cst_30 {dimension_numbers = #tpu.dot_dimension_numbers<[2], [2], [1], [1], [0, 0, 0, 1, 1, 1], [0], [0]>} : vector<2x16x32xbf16>, vector<2x16x32xbf16>, vector<2x16x16xf32> -> vector<2x16x16xf32>
    "tpu.trace_stop"() : () -> ()
    %cst_31 = arith.constant 0.176776692 : f32
    %83 = vector.broadcast %cst_31 : f32 to vector<2x16x16xf32>
    %84 = arith.mulf %82, %83 : vector<2x16x16xf32>
    %85 = vector.broadcast %52 : vector<1x16x16xf32> to vector<2x16x16xf32>
    %86 = arith.addf %84, %85 : vector<2x16x16xf32>
    %cst_32 = arith.constant dense<0xFF800000> : vector<2x16xf32>
    %87 = vector.multi_reduction <maximumf>, %86, %cst_32 [2] : vector<2x16x16xf32> to vector<2x16xf32>
    %88 = vector.shape_cast %87 : vector<2x16xf32> to vector<2x16x1xf32>
    %89 = vector.broadcast %88 : vector<2x16x1xf32> to vector<2x16x16xf32>
    %90 = arith.subf %86, %89 : vector<2x16x16xf32>
    %91 = math.exp %90 : vector<2x16x16xf32>
    %cst_33 = arith.constant dense<0.000000e+00> : vector<2x16xf32>
    %92 = vector.multi_reduction <add>, %91, %cst_33 [2] : vector<2x16x16xf32> to vector<2x16xf32>
    %93 = vector.shape_cast %92 : vector<2x16xf32> to vector<2x16x1xf32>
    %94 = tpu.reciprocal %93 {approx = true} : vector<2x16x1xf32> -> vector<2x16x1xf32>
    %95 = vector.broadcast %94 : vector<2x16x1xf32> to vector<2x16x16xf32>
    %96 = arith.mulf %91, %95 : vector<2x16x16xf32>
    %97 = arith.truncf %96 : vector<2x16x16xf32> to vector<2x16x16xbf16>
    "tpu.trace_start"() <{level = 10 : i32, message = "bqk,bkd->bqd"}> : () -> ()
    %cst_34 = arith.constant dense<0.000000e+00> : vector<2x16x32xf32>
    %98 = tpu.matmul %97, %81, %cst_34 {dimension_numbers = #tpu.dot_dimension_numbers<[2], [1], [1], [2], [0, 0, 0, 1, 1, 2], [0], [0]>} : vector<2x16x16xbf16>, vector<2x16x32xbf16>, vector<2x16x32xf32> -> vector<2x16x32xf32>
    "tpu.trace_stop"() : () -> ()
    %99 = vector.extract_strided_slice %46 {offsets = [0, 0, 64], sizes = [2, 16, 32], strides = [1, 1, 1]} : vector<2x16x128xf32> to vector<2x16x32xf32>
    %100 = arith.truncf %99 : vector<2x16x32xf32> to vector<2x16x32xbf16>
    %101 = vector.extract_strided_slice %48 {offsets = [0, 0, 64], sizes = [2, 16, 32], strides = [1, 1, 1]} : vector<2x16x128xf32> to vector<2x16x32xf32>
    %102 = arith.truncf %101 : vector<2x16x32xf32> to vector<2x16x32xbf16>
    %103 = vector.extract_strided_slice %50 {offsets = [0, 0, 64], sizes = [2, 16, 32], strides = [1, 1, 1]} : vector<2x16x128xf32> to vector<2x16x32xf32>
    %104 = arith.truncf %103 : vector<2x16x32xf32> to vector<2x16x32xbf16>
    "tpu.trace_start"() <{level = 10 : i32, message = "bqd,bkd->bqk"}> : () -> ()
    %cst_35 = arith.constant dense<0.000000e+00> : vector<2x16x16xf32>
    %105 = tpu.matmul %100, %102, %cst_35 {dimension_numbers = #tpu.dot_dimension_numbers<[2], [2], [1], [1], [0, 0, 0, 1, 1, 1], [0], [0]>} : vector<2x16x32xbf16>, vector<2x16x32xbf16>, vector<2x16x16xf32> -> vector<2x16x16xf32>
    "tpu.trace_stop"() : () -> ()
    %cst_36 = arith.constant 0.176776692 : f32
    %106 = vector.broadcast %cst_36 : f32 to vector<2x16x16xf32>
    %107 = arith.mulf %105, %106 : vector<2x16x16xf32>
    %108 = vector.broadcast %52 : vector<1x16x16xf32> to vector<2x16x16xf32>
    %109 = arith.addf %107, %108 : vector<2x16x16xf32>
    %cst_37 = arith.constant dense<0xFF800000> : vector<2x16xf32>
    %110 = vector.multi_reduction <maximumf>, %109, %cst_37 [2] : vector<2x16x16xf32> to vector<2x16xf32>
    %111 = vector.shape_cast %110 : vector<2x16xf32> to vector<2x16x1xf32>
    %112 = vector.broadcast %111 : vector<2x16x1xf32> to vector<2x16x16xf32>
    %113 = arith.subf %109, %112 : vector<2x16x16xf32>
    %114 = math.exp %113 : vector<2x16x16xf32>
    %cst_38 = arith.constant dense<0.000000e+00> : vector<2x16xf32>
    %115 = vector.multi_reduction <add>, %114, %cst_38 [2] : vector<2x16x16xf32> to vector<2x16xf32>
    %116 = vector.shape_cast %115 : vector<2x16xf32> to vector<2x16x1xf32>
    %117 = tpu.reciprocal %116 {approx = true} : vector<2x16x1xf32> -> vector<2x16x1xf32>
    %118 = vector.broadcast %117 : vector<2x16x1xf32> to vector<2x16x16xf32>
    %119 = arith.mulf %114, %118 : vector<2x16x16xf32>
    %120 = arith.truncf %119 : vector<2x16x16xf32> to vector<2x16x16xbf16>
    "tpu.trace_start"() <{level = 10 : i32, message = "bqk,bkd->bqd"}> : () -> ()
    %cst_39 = arith.constant dense<0.000000e+00> : vector<2x16x32xf32>
    %121 = tpu.matmul %120, %104, %cst_39 {dimension_numbers = #tpu.dot_dimension_numbers<[2], [1], [1], [2], [0, 0, 0, 1, 1, 2], [0], [0]>} : vector<2x16x16xbf16>, vector<2x16x32xbf16>, vector<2x16x32xf32> -> vector<2x16x32xf32>
    "tpu.trace_stop"() : () -> ()
    %122 = vector.extract_strided_slice %46 {offsets = [0, 0, 96], sizes = [2, 16, 32], strides = [1, 1, 1]} : vector<2x16x128xf32> to vector<2x16x32xf32>
    %123 = arith.truncf %122 : vector<2x16x32xf32> to vector<2x16x32xbf16>
    %124 = vector.extract_strided_slice %48 {offsets = [0, 0, 96], sizes = [2, 16, 32], strides = [1, 1, 1]} : vector<2x16x128xf32> to vector<2x16x32xf32>
    %125 = arith.truncf %124 : vector<2x16x32xf32> to vector<2x16x32xbf16>
    %126 = vector.extract_strided_slice %50 {offsets = [0, 0, 96], sizes = [2, 16, 32], strides = [1, 1, 1]} : vector<2x16x128xf32> to vector<2x16x32xf32>
    %127 = arith.truncf %126 : vector<2x16x32xf32> to vector<2x16x32xbf16>
    "tpu.trace_start"() <{level = 10 : i32, message = "bqd,bkd->bqk"}> : () -> ()
    %cst_40 = arith.constant dense<0.000000e+00> : vector<2x16x16xf32>
    %128 = tpu.matmul %123, %125, %cst_40 {dimension_numbers = #tpu.dot_dimension_numbers<[2], [2], [1], [1], [0, 0, 0, 1, 1, 1], [0], [0]>} : vector<2x16x32xbf16>, vector<2x16x32xbf16>, vector<2x16x16xf32> -> vector<2x16x16xf32>
    "tpu.trace_stop"() : () -> ()
    %cst_41 = arith.constant 0.176776692 : f32
    %129 = vector.broadcast %cst_41 : f32 to vector<2x16x16xf32>
    %130 = arith.mulf %128, %129 : vector<2x16x16xf32>
    %131 = vector.broadcast %52 : vector<1x16x16xf32> to vector<2x16x16xf32>
    %132 = arith.addf %130, %131 : vector<2x16x16xf32>
    %cst_42 = arith.constant dense<0xFF800000> : vector<2x16xf32>
    %133 = vector.multi_reduction <maximumf>, %132, %cst_42 [2] : vector<2x16x16xf32> to vector<2x16xf32>
    %134 = vector.shape_cast %133 : vector<2x16xf32> to vector<2x16x1xf32>
    %135 = vector.broadcast %134 : vector<2x16x1xf32> to vector<2x16x16xf32>
    %136 = arith.subf %132, %135 : vector<2x16x16xf32>
    %137 = math.exp %136 : vector<2x16x16xf32>
    %cst_43 = arith.constant dense<0.000000e+00> : vector<2x16xf32>
    %138 = vector.multi_reduction <add>, %137, %cst_43 [2] : vector<2x16x16xf32> to vector<2x16xf32>
    %139 = vector.shape_cast %138 : vector<2x16xf32> to vector<2x16x1xf32>
    %140 = tpu.reciprocal %139 {approx = true} : vector<2x16x1xf32> -> vector<2x16x1xf32>
    %141 = vector.broadcast %140 : vector<2x16x1xf32> to vector<2x16x16xf32>
    %142 = arith.mulf %137, %141 : vector<2x16x16xf32>
    %143 = arith.truncf %142 : vector<2x16x16xf32> to vector<2x16x16xbf16>
    "tpu.trace_start"() <{level = 10 : i32, message = "bqk,bkd->bqd"}> : () -> ()
    %cst_44 = arith.constant dense<0.000000e+00> : vector<2x16x32xf32>
    %144 = tpu.matmul %143, %127, %cst_44 {dimension_numbers = #tpu.dot_dimension_numbers<[2], [1], [1], [2], [0, 0, 0, 1, 1, 2], [0], [0]>} : vector<2x16x16xbf16>, vector<2x16x32xbf16>, vector<2x16x32xf32> -> vector<2x16x32xf32>
    "tpu.trace_stop"() : () -> ()
    %145 = tpu.concatenate %75, %98, %121, %144 in 2 : vector<2x16x32xf32>, vector<2x16x32xf32>, vector<2x16x32xf32>, vector<2x16x32xf32> -> vector<2x16x128xf32>
    %146 = vector.shape_cast %145 : vector<2x16x128xf32> to vector<32x128xf32>
    %147 = arith.truncf %146 : vector<32x128xf32> to vector<32x128xbf16>
    %c0_45 = arith.constant 0 : index
    %c0_46 = arith.constant 0 : index
    %c0_47 = arith.constant 0 : index
    %148 = vector.load %arg7[%c0_45, %c0_46, %c0_47] : memref<1x128x128xbf16, #tpu.memory_space<vmem>>, vector<1x128x128xbf16>
    %149 = vector.shape_cast %148 : vector<1x128x128xbf16> to vector<128x128xbf16>
    %cst_48 = arith.constant dense<0.000000e+00> : vector<32x128xf32>
    %150 = tpu.matmul %147, %149, %cst_48 {dimension_numbers = #tpu.dot_dimension_numbers<[1], [0], [0], [1], [0, 0, 1, 1], [], []>} : vector<32x128xbf16>, vector<128x128xbf16>, vector<32x128xf32> -> vector<32x128xf32>
    %c0_49 = arith.constant 0 : index
    %c0_50 = arith.constant 0 : index
    %c0_51 = arith.constant 0 : index
    %151 = vector.load %arg8[%c0_49, %c0_50, %c0_51] : memref<1x1x128xf32, #tpu.memory_space<vmem>>, vector<1x1x128xf32>
    %152 = vector.shape_cast %151 : vector<1x1x128xf32> to vector<1x128xf32>
    %153 = vector.broadcast %152 : vector<1x128xf32> to vector<32x128xf32>
    %154 = arith.addf %150, %153 : vector<32x128xf32>
    %155 = arith.addf %10, %154 : vector<32x128xf32>
    %c0_52 = arith.constant 0 : index
    %c0_53 = arith.constant 0 : index
    %c0_54 = arith.constant 0 : index
    %156 = vector.load %arg9[%c0_52, %c0_53, %c0_54] : memref<1x1x128xf32, #tpu.memory_space<vmem>>, vector<1x1x128xf32>
    %157 = vector.shape_cast %156 : vector<1x1x128xf32> to vector<1x128xf32>
    %c0_55 = arith.constant 0 : index
    %c0_56 = arith.constant 0 : index
    %c0_57 = arith.constant 0 : index
    %158 = vector.load %arg10[%c0_55, %c0_56, %c0_57] : memref<1x1x128xf32, #tpu.memory_space<vmem>>, vector<1x1x128xf32>
    %159 = vector.shape_cast %158 : vector<1x1x128xf32> to vector<1x128xf32>
    %cst_58 = arith.constant dense<0.000000e+00> : vector<32xf32>
    %160 = vector.multi_reduction <add>, %155, %cst_58 [1] : vector<32x128xf32> to vector<32xf32>
    %161 = vector.shape_cast %160 : vector<32xf32> to vector<32x1xf32>
    %cst_59 = arith.constant 1.280000e+02 : f32
    %162 = vector.broadcast %cst_59 : f32 to vector<32x1xf32>
    %163 = arith.divf %161, %162 : vector<32x1xf32>
    %164 = vector.broadcast %163 : vector<32x1xf32> to vector<32x128xf32>
    %165 = arith.subf %155, %164 : vector<32x128xf32>
    %166 = arith.mulf %165, %165 : vector<32x128xf32>
    %cst_60 = arith.constant dense<0.000000e+00> : vector<32xf32>
    %167 = vector.multi_reduction <add>, %166, %cst_60 [1] : vector<32x128xf32> to vector<32xf32>
    %168 = vector.shape_cast %167 : vector<32xf32> to vector<32x1xf32>
    %cst_61 = arith.constant 1.280000e+02 : f32
    %169 = vector.broadcast %cst_61 : f32 to vector<32x1xf32>
    %170 = arith.divf %168, %169 : vector<32x1xf32>
    %171 = vector.broadcast %163 : vector<32x1xf32> to vector<32x128xf32>
    %172 = arith.subf %155, %171 : vector<32x128xf32>
    %cst_62 = arith.constant 9.99999974E-6 : f32
    %173 = vector.broadcast %cst_62 : f32 to vector<32x1xf32>
    %174 = arith.addf %170, %173 : vector<32x1xf32>
    %175 = math.rsqrt %174 : vector<32x1xf32>
    %176 = vector.broadcast %175 : vector<32x1xf32> to vector<32x128xf32>
    %177 = arith.mulf %172, %176 : vector<32x128xf32>
    %178 = vector.broadcast %157 : vector<1x128xf32> to vector<32x128xf32>
    %179 = arith.mulf %177, %178 : vector<32x128xf32>
    %180 = vector.broadcast %159 : vector<1x128xf32> to vector<32x128xf32>
    %181 = arith.addf %179, %180 : vector<32x128xf32>
    %182 = arith.truncf %181 : vector<32x128xf32> to vector<32x128xbf16>
    %c0_63 = arith.constant 0 : index
    %c0_64 = arith.constant 0 : index
    %c0_65 = arith.constant 0 : index
    %183 = vector.load %arg11[%c0_63, %c0_64, %c0_65] : memref<1x128x512xbf16, #tpu.memory_space<vmem>>, vector<1x128x512xbf16>
    %184 = vector.shape_cast %183 : vector<1x128x512xbf16> to vector<128x512xbf16>
    %cst_66 = arith.constant dense<0.000000e+00> : vector<32x512xf32>
    %185 = tpu.matmul %182, %184, %cst_66 {dimension_numbers = #tpu.dot_dimension_numbers<[1], [0], [0], [1], [0, 0, 1, 1], [], []>} : vector<32x128xbf16>, vector<128x512xbf16>, vector<32x512xf32> -> vector<32x512xf32>
    %c0_67 = arith.constant 0 : index
    %c0_68 = arith.constant 0 : index
    %c0_69 = arith.constant 0 : index
    %186 = vector.load %arg12[%c0_67, %c0_68, %c0_69] : memref<1x1x512xf32, #tpu.memory_space<vmem>>, vector<1x1x512xf32>
    %187 = vector.shape_cast %186 : vector<1x1x512xf32> to vector<1x512xf32>
    %188 = vector.broadcast %187 : vector<1x512xf32> to vector<32x512xf32>
    %189 = arith.addf %185, %188 : vector<32x512xf32>
    %190 = arith.mulf %189, %189 : vector<32x512xf32>
    %191 = arith.mulf %189, %190 : vector<32x512xf32>
    %cst_70 = arith.constant 4.471500e-02 : f32
    %192 = vector.broadcast %cst_70 : f32 to vector<32x512xf32>
    %193 = arith.mulf %192, %191 : vector<32x512xf32>
    %194 = arith.addf %189, %193 : vector<32x512xf32>
    %cst_71 = arith.constant 0.797884583 : f32
    %195 = vector.broadcast %cst_71 : f32 to vector<32x512xf32>
    %196 = arith.mulf %195, %194 : vector<32x512xf32>
    %197 = math.tanh %196 : vector<32x512xf32>
    %cst_72 = arith.constant 1.000000e+00 : f32
    %198 = vector.broadcast %cst_72 : f32 to vector<32x512xf32>
    %199 = arith.addf %198, %197 : vector<32x512xf32>
    %cst_73 = arith.constant 5.000000e-01 : f32
    %200 = vector.broadcast %cst_73 : f32 to vector<32x512xf32>
    %201 = arith.mulf %200, %199 : vector<32x512xf32>
    %202 = arith.mulf %189, %201 : vector<32x512xf32>
    %203 = arith.truncf %202 : vector<32x512xf32> to vector<32x512xbf16>
    %c0_74 = arith.constant 0 : index
    %c0_75 = arith.constant 0 : index
    %c0_76 = arith.constant 0 : index
    %204 = vector.load %arg13[%c0_74, %c0_75, %c0_76] : memref<1x512x128xbf16, #tpu.memory_space<vmem>>, vector<1x512x128xbf16>
    %205 = vector.shape_cast %204 : vector<1x512x128xbf16> to vector<512x128xbf16>
    %cst_77 = arith.constant dense<0.000000e+00> : vector<32x128xf32>
    %206 = tpu.matmul %203, %205, %cst_77 {dimension_numbers = #tpu.dot_dimension_numbers<[1], [0], [0], [1], [0, 0, 1, 1], [], []>} : vector<32x512xbf16>, vector<512x128xbf16>, vector<32x128xf32> -> vector<32x128xf32>
    %c0_78 = arith.constant 0 : index
    %c0_79 = arith.constant 0 : index
    %c0_80 = arith.constant 0 : index
    %207 = vector.load %arg14[%c0_78, %c0_79, %c0_80] : memref<1x1x128xf32, #tpu.memory_space<vmem>>, vector<1x1x128xf32>
    %208 = vector.shape_cast %207 : vector<1x1x128xf32> to vector<1x128xf32>
    %209 = vector.broadcast %208 : vector<1x128xf32> to vector<32x128xf32>
    %210 = arith.addf %206, %209 : vector<32x128xf32>
    %211 = arith.addf %155, %210 : vector<32x128xf32>
    %c1_i32 = arith.constant 1 : i32
    %212 = arith.cmpi eq, %arg1, %c1_i32 : i32
    %true = arith.constant true
    %213 = arith.xori %212, %true : i1
    %214 = arith.extui %213 : i1 to i32
    %c0_i32_81 = arith.constant 0 : i32
    %215 = arith.cmpi ne, %214, %c0_i32_81 : i32
    scf.if %215 {
      %c0_83 = arith.constant 0 : index
      %c0_84 = arith.constant 0 : index
      %218 = vector.load %arg21[%c0_83, %c0_84] : memref<32x128xf32, #tpu.memory_space<vmem>>, vector<32x128xf32>
      tpu.vector_store %arg21[%c0_83, %c0_84], %211 {strides = array<i32>} : memref<32x128xf32, #tpu.memory_space<vmem>>, vector<32x128xf32>,
    } else {
    }
    %216 = arith.extui %212 : i1 to i32
    %c0_i32_82 = arith.constant 0 : i32
    %217 = arith.cmpi ne, %216, %c0_i32_82 : i32
    scf.if %217 {
      %c0_83 = arith.constant 0 : index
      %c0_84 = arith.constant 0 : index
      %218 = vector.load %arg15[%c0_83, %c0_84] : memref<1x128xf32, #tpu.memory_space<vmem>>, vector<1x128xf32>
      %c0_85 = arith.constant 0 : index
      %c0_86 = arith.constant 0 : index
      %219 = vector.load %arg16[%c0_85, %c0_86] : memref<1x128xf32, #tpu.memory_space<vmem>>, vector<1x128xf32>
      %cst_87 = arith.constant dense<0.000000e+00> : vector<32xf32>
      %220 = vector.multi_reduction <add>, %211, %cst_87 [1] : vector<32x128xf32> to vector<32xf32>
      %221 = vector.shape_cast %220 : vector<32xf32> to vector<32x1xf32>
      %cst_88 = arith.constant 1.280000e+02 : f32
      %222 = vector.broadcast %cst_88 : f32 to vector<32x1xf32>
      %223 = arith.divf %221, %222 : vector<32x1xf32>
      %224 = vector.broadcast %223 : vector<32x1xf32> to vector<32x128xf32>
      %225 = arith.subf %211, %224 : vector<32x128xf32>
      %226 = arith.mulf %225, %225 : vector<32x128xf32>
      %cst_89 = arith.constant dense<0.000000e+00> : vector<32xf32>
      %227 = vector.multi_reduction <add>, %226, %cst_89 [1] : vector<32x128xf32> to vector<32xf32>
      %228 = vector.shape_cast %227 : vector<32xf32> to vector<32x1xf32>
      %cst_90 = arith.constant 1.280000e+02 : f32
      %229 = vector.broadcast %cst_90 : f32 to vector<32x1xf32>
      %230 = arith.divf %228, %229 : vector<32x1xf32>
      %231 = vector.broadcast %223 : vector<32x1xf32> to vector<32x128xf32>
      %232 = arith.subf %211, %231 : vector<32x128xf32>
      %cst_91 = arith.constant 9.99999974E-6 : f32
      %233 = vector.broadcast %cst_91 : f32 to vector<32x1xf32>
      %234 = arith.addf %230, %233 : vector<32x1xf32>
      %235 = math.rsqrt %234 : vector<32x1xf32>
      %236 = vector.broadcast %235 : vector<32x1xf32> to vector<32x128xf32>
      %237 = arith.mulf %232, %236 : vector<32x128xf32>
      %238 = vector.broadcast %218 : vector<1x128xf32> to vector<32x128xf32>
      %239 = arith.mulf %237, %238 : vector<32x128xf32>
      %240 = vector.broadcast %219 : vector<1x128xf32> to vector<32x128xf32>
      %241 = arith.addf %239, %240 : vector<32x128xf32>
      %c0_92 = arith.constant 0 : index
      %c0_93 = arith.constant 0 : index
      %242 = vector.load %arg21[%c0_92, %c0_93] : memref<32x128xf32, #tpu.memory_space<vmem>>, vector<32x128xf32>
      tpu.vector_store %arg21[%c0_92, %c0_93], %241 {strides = array<i32>} : memref<32x128xf32, #tpu.memory_space<vmem>>, vector<32x128xf32>,
      %c0_94 = arith.constant 0 : index
      %c0_95 = arith.constant 0 : index
      %c0_96 = arith.constant 0 : index
      %243 = vector.load %arg19[%c0_94, %c0_95, %c0_96] : memref<1x32x128xf32, #tpu.memory_space<vmem>>, vector<1x32x128xf32>
      %244 = vector.shape_cast %243 : vector<1x32x128xf32> to vector<32x128xf32>
      %245 = vector.shape_cast %241 : vector<32x128xf32> to vector<1x32x128xf32>
      tpu.vector_store %arg19[%c0_94, %c0_95, %c0_96], %245 {strides = array<i32>} : memref<1x32x128xf32, #tpu.memory_space<vmem>>, vector<1x32x128xf32>,
      %c0_97 = arith.constant 0 : index
      %c0_98 = arith.constant 0 : index
      %246 = vector.load %arg17[%c0_97, %c0_98] : memref<1x128xf32, #tpu.memory_space<vmem>>, vector<1x128xf32>
      %247 = vector.broadcast %246 : vector<1x128xf32> to vector<32x128xf32>
      %248 = arith.mulf %241, %247 : vector<32x128xf32>
      %cst_99 = arith.constant dense<0.000000e+00> : vector<32xf32>
      %249 = vector.multi_reduction <add>, %248, %cst_99 [1] : vector<32x128xf32> to vector<32xf32>
      %250 = vector.shape_cast %249 : vector<32xf32> to vector<1x32xf32>
      %c0_100 = arith.constant 0 : index
      %c0_101 = arith.constant 0 : index
      %251 = vector.load %arg18[%c0_100, %c0_101] : memref<1x1xf32, #tpu.memory_space<vmem>>, vector<1x1xf32>
      %252 = vector.broadcast %251 : vector<1x1xf32> to vector<1x32xf32>
      %253 = arith.addf %250, %252 : vector<1x32xf32>
      %254 = vector.shape_cast %253 : vector<1x32xf32> to vector<1x1x32xf32>
      %c0_102 = arith.constant 0 : index
      %c0_103 = arith.constant 0 : index
      %c0_104 = arith.constant 0 : index
      %255 = vector.load %arg20[%c0_102, %c0_103, %c0_104] : memref<1x1x32xf32, #tpu.memory_space<vmem>>, vector<1x1x32xf32>
      tpu.vector_store %arg20[%c0_102, %c0_103, %c0_104], %254 {strides = array<i32>} : memref<1x1x32xf32, #tpu.memory_space<vmem>>, vector<1x1x32xf32>,
    } else {
    }
    return
  }
  func.func @transform_0(%arg0: i32, %arg1: i32) -> (i32, i32) {
    %c0_i32 = arith.constant 0 : i32
    %c0_i32_0 = arith.constant 0 : i32
    %c0_i32_1 = arith.constant 0 : i32
    return %c0_i32, %c0_i32_0 : i32, i32
  }
  func.func @transform_1(%arg0: i32, %arg1: i32) -> (i32, i32, i32) {
    %c0_i32 = arith.constant 0 : i32
    %c0_i32_0 = arith.constant 0 : i32
    %c0_i32_1 = arith.constant 0 : i32
    return %arg1, %c0_i32, %c0_i32_0 : i32, i32, i32
  }
  func.func @transform_2(%arg0: i32, %arg1: i32) -> (i32, i32, i32) {
    %c0_i32 = arith.constant 0 : i32
    %c0_i32_0 = arith.constant 0 : i32
    %c0_i32_1 = arith.constant 0 : i32
    return %arg1, %c0_i32, %c0_i32_0 : i32, i32, i32
  }
  func.func @transform_3(%arg0: i32, %arg1: i32) -> (i32, i32, i32) {
    %c0_i32 = arith.constant 0 : i32
    %c0_i32_0 = arith.constant 0 : i32
    %c0_i32_1 = arith.constant 0 : i32
    return %arg1, %c0_i32, %c0_i32_0 : i32, i32, i32
  }
  func.func @transform_4(%arg0: i32, %arg1: i32) -> (i32, i32, i32) {
    %c0_i32 = arith.constant 0 : i32
    %c0_i32_0 = arith.constant 0 : i32
    %c0_i32_1 = arith.constant 0 : i32
    return %arg1, %c0_i32, %c0_i32_0 : i32, i32, i32
  }
  func.func @transform_5(%arg0: i32, %arg1: i32) -> (i32, i32, i32) {
    %c0_i32 = arith.constant 0 : i32
    %c0_i32_0 = arith.constant 0 : i32
    %c0_i32_1 = arith.constant 0 : i32
    return %arg1, %c0_i32, %c0_i32_0 : i32, i32, i32
  }
  func.func @transform_6(%arg0: i32, %arg1: i32) -> (i32, i32, i32) {
    %c0_i32 = arith.constant 0 : i32
    %c0_i32_0 = arith.constant 0 : i32
    %c0_i32_1 = arith.constant 0 : i32
    return %arg1, %c0_i32, %c0_i32_0 : i32, i32, i32
  }
  func.func @transform_7(%arg0: i32, %arg1: i32) -> (i32, i32, i32) {
    %c0_i32 = arith.constant 0 : i32
    %c0_i32_0 = arith.constant 0 : i32
    %c0_i32_1 = arith.constant 0 : i32
    return %arg1, %c0_i32, %c0_i32_0 : i32, i32, i32
  }
  func.func @transform_8(%arg0: i32, %arg1: i32) -> (i32, i32, i32) {
    %c0_i32 = arith.constant 0 : i32
    %c0_i32_0 = arith.constant 0 : i32
    %c0_i32_1 = arith.constant 0 : i32
    return %arg1, %c0_i32, %c0_i32_0 : i32, i32, i32
  }
  func.func @transform_9(%arg0: i32, %arg1: i32) -> (i32, i32, i32) {
    %c0_i32 = arith.constant 0 : i32
    %c0_i32_0 = arith.constant 0 : i32
    %c0_i32_1 = arith.constant 0 : i32
    return %arg1, %c0_i32, %c0_i32_0 : i32, i32, i32
  }
  func.func @transform_10(%arg0: i32, %arg1: i32) -> (i32, i32, i32) {
    %c0_i32 = arith.constant 0 : i32
    %c0_i32_0 = arith.constant 0 : i32
    %c0_i32_1 = arith.constant 0 : i32
    return %arg1, %c0_i32, %c0_i32_0 : i32, i32, i32
  }
  func.func @transform_11(%arg0: i32, %arg1: i32) -> (i32, i32, i32) {
    %c0_i32 = arith.constant 0 : i32
    %c0_i32_0 = arith.constant 0 : i32
    %c0_i32_1 = arith.constant 0 : i32
    return %arg1, %c0_i32, %c0_i32_0 : i32, i32, i32
  }
  func.func @transform_12(%arg0: i32, %arg1: i32) -> (i32, i32, i32) {
    %c0_i32 = arith.constant 0 : i32
    %c0_i32_0 = arith.constant 0 : i32
    %c0_i32_1 = arith.constant 0 : i32
    return %arg1, %c0_i32, %c0_i32_0 : i32, i32, i32
  }
  func.func @transform_13(%arg0: i32, %arg1: i32) -> (i32, i32) {
    %c0_i32 = arith.constant 0 : i32
    %c0_i32_0 = arith.constant 0 : i32
    %c0_i32_1 = arith.constant 0 : i32
    return %c0_i32, %c0_i32_0 : i32, i32
  }
  func.func @transform_14(%arg0: i32, %arg1: i32) -> (i32, i32) {
    %c0_i32 = arith.constant 0 : i32
    %c0_i32_0 = arith.constant 0 : i32
    %c0_i32_1 = arith.constant 0 : i32
    return %c0_i32, %c0_i32_0 : i32, i32
  }
  func.func @transform_15(%arg0: i32, %arg1: i32) -> (i32, i32) {
    %c0_i32 = arith.constant 0 : i32
    %c0_i32_0 = arith.constant 0 : i32
    %c0_i32_1 = arith.constant 0 : i32
    return %c0_i32, %c0_i32_0 : i32, i32
  }
  func.func @transform_16(%arg0: i32, %arg1: i32) -> (i32, i32) {
    %c0_i32 = arith.constant 0 : i32
    %c0_i32_0 = arith.constant 0 : i32
    %c0_i32_1 = arith.constant 0 : i32
    return %c0_i32, %c0_i32_0 : i32, i32
  }
  func.func @transform_17(%arg0: i32, %arg1: i32) -> (i32, i32, i32) {
    %c0_i32 = arith.constant 0 : i32
    %c0_i32_0 = arith.constant 0 : i32
    %c0_i32_1 = arith.constant 0 : i32
    return %arg0, %c0_i32, %c0_i32_0 : i32, i32, i32
  }
  func.func @transform_18(%arg0: i32, %arg1: i32) -> (i32, i32, i32) {
    %c0_i32 = arith.constant 0 : i32
    %c0_i32_0 = arith.constant 0 : i32
    %c0_i32_1 = arith.constant 0 : i32
    return %arg0, %c0_i32, %c0_i32_0 : i32, i32, i32
  }
}

</mosaic_0001>

<bundles_post_ra>
// kernel: transformer_model_looped_forward.2
= control target key start
LH: loop header
LB: loop body
LE: loop exit
PB: predicated region body
PF: predicated region fallthrough
CT: control target
= control target key end

     0   :  { %vm26_vm0 = vcmask 64512   ;;  %s202_s1 = inlined_call_operand.vmem [shape: f32[8,128], index: 1, kind: input, shape index: {}]   ;;  %s203_s0 = inlined_call_operand.vmem [shape: f32[32,8], index: 0, kind: input, shape index: {}]   ;;  %s204_s2 = inlined_call_operand.vmem [shape: f32[1,128], index: 2, kind: input, shape index: {}]   ;;  %s205_s3 = inlined_call_operand.vmem [shape: f32[32,128], index: 3, kind: output, shape index: {}]  }
   0x1   :  { %v18_v0 = vld [vmem:[%s202_s1] sm:$0xff]  ;;  %v16_v2 = vld [vmem:[%s203_s0 + $0x10] sm:$0xff]  ;;  %v15_v3 = vld [vmem:[%s203_s0 + $0x8] sm:$0xff] }
   0x2   :  { %v14_v1 = vld [vmem:[%s203_s0] sm:$0xff]  ;;  %142 = vmatprep.subr.mxu0 %v18_v0  ;;  %150 = vmatprep.subr.mxu1 %v18_v0  ;;  %v17_v4 = vld [vmem:[%s203_s0 + $0x18] sm:$0xff] }
   0x3   :  { %143 = vmatpush3.msra.mxu0 %v18_v0  ;;  %151 = vmatpush3.msra.mxu1 %v18_v0  ;;  %v132_v5 = vld [vmem:[%s204_s2] ss:$0 sm:$0xff] }
   0x4   :  { %144 = vmatprep.mubr.msk.f32.mxu0 %vm26_vm0, %v14_v1  ;;  %147 = vmatprep.mubr.msk.f32.mxu1 %vm26_vm0, %v16_v2 }
   0x5   :  { %145 = vmatmul.mubr.msk.f32.vlgmr.msra.gmra.mxu0 %vm26_vm0, %v15_v3  ;;  %148 = vmatmul.mubr.msk.f32.vlgmr.msra.gmra.mxu1 %vm26_vm0, %v17_v4 }
  0xc5   :  { %v146_v6 = vpop.f32.mrf.mxu0  ;;  %v149_v7 = vpop.f32.mrf.mxu1 }
  0xc6   :  { %v111_v8 = vadd.f32 %v146_v6, %v132_v5  ;;  %v121_v9 = vadd.f32 %v149_v7, %v132_v5 }
  0xc7   :  { %v105_v10 = vpop.f32.mrf.mxu0  ;;  %v115_v11 = vpop.f32.mrf.mxu1 }
  0xc8   :  { %125 = vst [vmem:[%s205_s3 + $0x8] sm:$0xff] %v111_v8  ;;  %127 = vst [vmem:[%s205_s3 + $0x18] sm:$0xff] %v121_v9  ;;  %v106_v12 = vadd.f32 %v132_v5, %v105_v10  ;;  %v116_v13 = vadd.f32 %v132_v5, %v115_v11 }
  0xca   :  { %124 = vst [vmem:[%s205_s3] sm:$0xff] %v106_v12  ;;  %126 = vst [vmem:[%s205_s3 + $0x10] sm:$0xff] %v116_v13 }

// kernel: transformer_model_looped_forward.3
= control target key start
LH: loop header
LB: loop body
LE: loop exit
PB: predicated region body
PF: predicated region fallthrough
CT: control target
= control target key end

     0   :  { %s5933_s0 = inlined_call_operand.vmem [shape: f32[32,128], index: 0, kind: input, shape index: {}]   ;;  %s5934_s1 = inlined_call_operand.vmem [shape: f32[2,1,128], index: 1, kind: input, shape index: {}]   ;;  %s5935_s2 = inlined_call_operand.vmem [shape: f32[2,1,128], index: 2, kind: input, shape index: {}]   ;;  %s5936_s3 = inlined_call_operand.vmem [shape: bf16[2,128,384], index: 3, kind: input, shape index: {}]   ;;  %s5937_s4 = inlined_call_operand.vmem [shape: f32[2,1,384], index: 4, kind: input, shape index: {}]   ;;  %s5938_s5 = inlined_call_operand.hbm [shape: bf16[2,128,128], index: 5, kind: input, shape index: {}]   ;;  %s5939_s6 = inlined_call_operand.vmem [shape: f32[2,1,128], index: 6, kind: input, shape index: {}]   ;;  %s5940_s7 = inlined_call_operand.hbm [shape: f32[2,1,128], index: 7, kind: input, shape index: {}]   ;;  %s5941_s8 = inlined_call_operand.vmem [shape: f32[2,1,128], index: 8, kind: input, shape index: {}]   ;;  %s5942_s9 = inlined_call_operand.hbm [shape: bf16[2,128,512], index: 9, kind: input, shape index: {}]   ;;  %s5943_s10 = inlined_call_operand.vmem [shape: f32[2,1,512], index: 10, kind: input, shape index: {}]   ;;  %s5944_s11 = inlined_call_operand.hbm [shape: bf16[2,512,128], index: 11, kind: input, shape index: {}]   ;;  %s5945_s12 = inlined_call_operand.vmem [shape: f32[2,1,128], index: 12, kind: input, shape index: {}]   ;;  %s5946_s13 = inlined_call_operand.hbm [shape: f32[1,128], index: 13, kind: input, shape index: {}]   ;;  %s5947_s14 = inlined_call_operand.hbm [shape: f32[1,128], index: 14, kind: input, shape index: {}]   ;;  %s5948_s15 = inlined_call_operand.hbm [shape: f32[1,128], index: 15, kind: input, shape index: {}]   ;;  %s5949_s16 = inlined_call_operand.<no memory space> [shape: f32[1,1], index: 16, kind: input, shape index: {}]   ;;  %s5950_s17 = inlined_call_operand.vmem [shape: f32[3,32,128], index: 17, kind: output, shape index: {0}]   ;;  %s5951_s18 = inlined_call_operand.vmem [shape: f32[3,1,32], index: 18, kind: output, shape index: {1}]  }
   0x1   :  { %5968 = sst [smem:[#allocation30_spill]] %s5933_s0  ;;  %v24_v0 = vstv %s5949_s16 }
   0x2   :  { %5969 = sst [smem:[#allocation31_spill]] %s5934_s1  ;;  %25 = vst [vmem:[#allocation4] sm:$0x1] %v24_v0 }
   0x3   :  { %5970 = sst [smem:[#allocation32_spill]] %s5935_s2 }
   0x4   :  { %5971 = sst [smem:[#allocation33_spill]] %s5936_s3 }
   0x5   :  { %5972 = sst [smem:[#allocation34_spill]] %s5937_s4 }
   0x6   :  { %5973 = sst [smem:[#allocation35_spill]] %s5938_s5 }
   0x7   :  { %5974 = sst [smem:[#allocation36_spill]] %s5940_s7 }
   0x8   :  { %5975 = sst [smem:[#allocation37_spill]] %s5942_s9 }
   0x9   :  { %5976 = sst [smem:[#allocation38_spill]] %s5943_s10 }
   0xa   :  { %5977 = sst [smem:[#allocation39_spill]] %s5944_s11 }
   0xb   :  { %5978 = sst [smem:[#allocation40_spill]] %s5945_s12 }
   0xc   :  { %5979 = sst [smem:[#allocation41_spill]] %s5946_s13 }
   0xd   :  { %5980 = sst [smem:[#allocation42_spill]] %s5947_s14 }
   0xe   :  { %5981 = sst [smem:[#allocation43_spill]] %s5948_s15 }
   0xf   :  { %5982 = sst [smem:[#allocation44_spill]] %s5950_s17 }
  0x10   :  { %5983 = sst [smem:[#allocation45_spill]] %s5951_s18 }
  0x11   :  { %26 = vsyncpa [#allocation6], 0 }
  0x12   :  { %28 = vsyncpa [#allocation6 + $0x1], 0 }
  0x13   :  { %29 = vsyncpa [#allocation8], 0 }
  0x14   :  { %31 = vsyncpa [#allocation8 + $0x1], 0 }
  0x15   :  { %32 = vsyncpa [#allocation11], 0 }
  0x16   :  { %34 = vsyncpa [#allocation11 + $0x1], 0 }
  0x17   :  { %35 = vsyncpa [#allocation14], 0  ;;  %s5012_s29 = smov 0   ;;  %s5014_s30 = smov 0  }
  0x18   :  { %s5016_s0 = smov 0   ;;  %s5018_s19 = smov 0  }
  0x19   :  { %s5020_s1 = smov 0   ;;  %s5022_s20 = smov 0  }
  0x1a   :  { %s5024_s16 = smov 0   ;;  %s5026_s21 = smov 0  }
  0x1b LB: > { %5984 = sst [smem:[#allocation21_spill]] %s4869_s30  ;;  %s5954_s22 = sadd.s32 4294967295, %s4893_s21   ;;  %s4893_s21 = sphi %s5026_s21, %s41_s21   ;;  %s4889_s16 = sphi %s5024_s16, %s6040_s16   ;;  %s4885_s20 = sphi %s5022_s20, %s6039_s20   ;;  %s4881_s1 = sphi %s5020_s1, %s6038_s1   ;;  %s4877_s19 = sphi %s5018_s19, %s6037_s19   ;;  %s4873_s0 = sphi %s5016_s0, %s6036_s0   ;;  %s4869_s30 = sphi %s5014_s30, %s6035_s30   ;;  %s4865_s29 = sphi %s5012_s29, %s6034_s29  }
  0x1c   : > { %5985 = sst [smem:[#allocation22_spill]] %s4873_s0  ;;  %p198_p0 = scmp.ne.s32.totalorder %s4869_s30, %s4865_s29 }
  0x1d   : > { %5986 = sst [smem:[#allocation23_spill]] %s4885_s20  ;;  %p5054_p1 = scmp.eq.s32.totalorder %s5954_s22, 0 }
  0x1e   : > { %5987 = sst [smem:[#allocation24_spill]] %s4889_s16  ;;  %p3816_p2 = scmp.ge.s32.totalorder %s4893_s21, 1 }
  0x1f   : > { %5988 = sst [smem:[#allocation25_spill]] %s4893_s21  ;;  %p527_p3 = scmp.lt.s32.totalorder %s4893_s21, 7 }
  0x20   : > { %s5989_s2 = scalar_select %p5054_p1, 1, 0 }
  0x21   : > { %p5062_p4 = por %p5054_p1, %p198_p0  ;;  %p5066_p5 = pnand %p3816_p2, %p527_p3 }
  0x22   : > { %s4895_s25 = smov [#allocation12]   ;;  %s4896_s27 = smov [#allocation13]  }
  0x23   : > { %s5990_s23 = scalar_select %p5062_p4, 1, 0 }
  0x24   : > { %s543_s26 = sshll.u32 %s4895_s25, 4  ;;  %p4237_p6 = pneg %p5066_p5  ;;  %s544_s26 = int_to_ptr.vmem [resolvable:$true] %s543_s26 }
  0x25   : > { %s554_s28 = sshll.u32 %s4896_s27, 4  ;;  %s4632_s22 = scalar_lea.vmem %s544_s26, 16  ;;  %s555_s28 = int_to_ptr.vmem [resolvable:$true] %s554_s28 }
  0x26   : > { %p5074_p7 = pnand %p4237_p6, %p5054_p1  ;;  %p4633_p9 = scmp.ne.s32.totalorder %s544_s26, %s4632_s22 }
  0x27   : > { %s4639_s25 = scalar_lea.vmem %s544_s26, 32  ;;  %p4640_p12 = scmp.lt.s32.totalorder %s544_s26, %s544_s26 }
  0x28   : > { %p4623_p8 = pneg %p5074_p7  ;;  %p4641_p13 = scmp.lt.s32.totalorder %s4639_s25, %s4632_s22 }
  0x2a   : > { %p4635_p10 = pnand %p4633_p9, %p4623_p8  ;;  %p4642_p0 = por %p4641_p13, %p4640_p12 }
  0x2c   : > { %p4636_p11 = pneg %p4635_p10 }
  0x2e   : > { %p4643_p2 = pnand %p4642_p0, %p4636_p11 }
  0x30   : > { %4646 = shalt.err (!%p4643_p2)
}
  0x31   : > { %s5993_s13 = sld [smem:[#allocation41_spill]]  ;;  %s4658_s17 = scalar_lea.vmem %s555_s28, 16 }
  0x32   : > { %p4659_p3 = scmp.ne.s32.totalorder %s555_s28, %s4658_s17  ;;  %s4665_s12 = scalar_lea.vmem %s555_s28, 32 }
  0x33   : > { %p4666_p10 = scmp.lt.s32.totalorder %s555_s28, %s555_s28  ;;  %p4667_p1 = scmp.lt.s32.totalorder %s4665_s12, %s4658_s17 }
  0x34   : > { %p4661_p6 = pnand %p4659_p3, %p4623_p8 }
  0x35   : > { %p4668_p4 = por %p4667_p1, %p4666_p10 }
  0x36   : > { %p4662_p9 = pneg %p4661_p6 }
  0x37   : > { %4240 = dma.hbm_to_vmem [thread:$0]  (!%p5074_p7), %s5993_s13, 16, %s544_s26, [#allocation11]  }
  0x38   : > { %p4669_p12 = pnand %p4668_p4, %p4662_p9 }
  0x3a   : > { %4672 = shalt.err (!%p4669_p12)
}
  0x3b   : > { %s5994_s14 = sld [smem:[#allocation42_spill]]  ;;  %s50_s12 = sadd.s32 1, %s4885_s20 }
  0x3c   : > { %s53_s17 = sadd.s32 1, %s4889_s16  ;;  %p51_p1 = scmp.ge.s32.totalorder %s50_s12, 2 }
  0x3d   : > { %s185_s18 = sadd.s32 1, %s4873_s0  ;;  %p192_p4 = scmp.ne.s32.totalorder %s4873_s0, %s4869_s30 }
  0x3e   : > { %p193_p11 = scmp.eq.s32.totalorder %s4893_s21, 0  ;;  %s6042_s12 = smov (%p51_p1, %s50_s12), 0 }
  0x3f   : > { %5995 = sst [smem:[#allocation26_spill]] %s6042_s12  ;;  %s6044_s17 = smov (!%p51_p1, %s53_s17), %s4889_s16 }
  0x40   : > { %s182_s26 = ssub.s32 %s4885_s20, %s6042_s12  ;;  %p194_p13 = por %p193_p11, %p192_p4 }
  0x41   : > { %4243 = dma.hbm_to_vmem [thread:$0]  (!%p5074_p7), %s5994_s14, 16, %s555_s28, [#allocation14]  }
  0x42   : > { %p55_p0 = scmp.ge.s32.totalorder %s6044_s17, 3  ;;  %p183_p2 = scmp.eq.s32.totalorder %s182_s26, 0 }
  0x43   : > { %p4263_p3 = scmp.lt.s32.totalorder %s4893_s21, 6  ;;  %s5109_s28 = sand.u32 1, %s4873_s0  }
  0x44   : > { %s6046_s17 = smov (%p55_p0, %s6044_s17), 0  ;;  %s5961_s25 = sand.u32 1, %s4893_s21  }
  0x45   : > { %5996 = sst [smem:[#allocation27_spill]] %s6046_s17  ;;  %p5116_p6 = pnand %p4263_p3, %p194_p13 }
  0x46   : > { %s5114_s27 = scalar_select %p183_p2, %s4873_s0, %s185_s18  }
  0x47   : > { %s3824_s13 = sshll.u32 %s4885_s20, 4  ;;  %s5999_s7 = sld [smem:[#allocation36_spill]] }
  0x48   : > { %5997 = sst [smem:[#allocation28_spill]] %s5114_s27  ;;  %s636_s16 = scalar_lea.vmem [#allocation7], %s5109_s28 }
  0x49   : > { %s643_s10 = sshll.u32 %s636_s16, 4  ;;  %s5129_s17 = scalar_lea.sflag [#allocation8], %s5961_s25  ;;  %s644_s10 = int_to_ptr.vmem [resolvable:$true] %s643_s10 }
  0x4a   : > { %p4675_p9 = pneg %p5116_p6  ;;  %s4686_s18 = scalar_lea.vmem %s644_s10, 16 }
  0x4b   : > { %p4687_p10 = scmp.ne.s32.totalorder %s644_s10, %s4686_s18  ;;  %s4897_s27 = smov [#allocation7]  }
  0x4c   : > { %s4691_s0 = sshll.u32 %s4897_s27, 4  ;;  %s4692_s0 = int_to_ptr.vmem [resolvable:$false] %s4691_s0 }
  0x4d   : > { %s641_s26 = scalar_lea.hbm %s5999_s7, %s3824_s13  ;;  %p4689_p12 = pnand %p4687_p10, %p4675_p9 }
  0x4e   : > { %s4693_s14 = scalar_lea.vmem %s4692_s0, 32  ;;  %p4694_p4 = scmp.lt.s32.totalorder %s644_s10, %s4692_s0 }
  0x4f   : > { %p4690_p1 = pneg %p4689_p12  ;;  %p4695_p11 = scmp.lt.s32.totalorder %s4693_s14, %s4686_s18 }
  0x51   : > { %p4696_p13 = por %p4695_p11, %p4694_p4 }
  0x53   : > { %p4697_p0 = pnand %p4696_p13, %p4690_p1 }
  0x55   : > { %4700 = shalt.err (!%p4697_p0)
}
  0x56   : > { %4253 = dma.hbm_to_vmem [thread:$0]  (!%p5116_p6), %s641_s26, 16, %s644_s10, %s5129_s17  }
  0x57   : > { %s4898_s13 = smov [#allocation15]   ;;  %s3821_s12 = sshll.u32 %s5109_s28, 6 }
  0x58   : > { %s565_s16 = sshll.u32 %s4898_s13, 4  ;;  %s566_s16 = int_to_ptr.vmem [resolvable:$true] %s565_s16 }
  0x59   : > { %s4712_s25 = scalar_lea.vmem %s566_s16, 16  ;;  %s4719_s0 = scalar_lea.vmem %s566_s16, 32 }
  0x5a   : > { %p4713_p2 = scmp.ne.s32.totalorder %s566_s16, %s4712_s25  ;;  %p4720_p12 = scmp.lt.s32.totalorder %s566_s16, %s566_s16 }
  0x5b   : > { %p4721_p1 = scmp.lt.s32.totalorder %s4719_s0, %s4712_s25 }
  0x5c   : > { %p4715_p3 = pnand %p4713_p2, %p4623_p8 }
  0x5d   : > { %p4722_p4 = por %p4721_p1, %p4720_p12 }
  0x5e   : > { %p4716_p10 = pneg %p4715_p3 }
  0x60   : > { %p4723_p11 = pnand %p4722_p4, %p4716_p10 }
  0x62   : > { %4726 = shalt.err (!%p4723_p11)
}
  0x63   : > { %s6000_s15 = sld [smem:[#allocation43_spill]]  ;;  %s3967_s26 = sshll.u32 %s4885_s20, 10 }
  0x64   : > { %s6001_s5 = sld [smem:[#allocation35_spill]]  ;;  %s610_s4 = scalar_lea.vmem [#allocation5], %s3821_s12 }
  0x65   : > { %s617_s7 = sshll.u32 %s610_s4, 4  ;;  %s607_s25 = scalar_lea.sflag [#allocation6], %s5109_s28  ;;  %s618_s7 = int_to_ptr.vmem [resolvable:$true] %s617_s7 }
  0x66   : > { %s4740_s0 = scalar_lea.vmem %s618_s7, 1024  ;;  %s4899_s29 = smov [#allocation5]  }
  0x67   : > { %p4741_p8 = scmp.ne.s32.totalorder %s618_s7, %s4740_s0  ;;  %s4745_s27 = sshll.u32 %s4899_s29, 4  ;;  %s4746_s27 = int_to_ptr.vmem [resolvable:$false] %s4745_s27 }
  0x68   : > { %s4747_s10 = scalar_lea.vmem %s4746_s27, 2048 }
  0x69   : > { %4246 = dma.hbm_to_vmem [thread:$0]  (!%p5074_p7), %s6000_s15, 16, %s566_s16, [#allocation14]  }
  0x6a   : > { %s616_s13 = scalar_lea.hbm %s6001_s5, %s3967_s26  ;;  %p4743_p13 = pnand %p4741_p8, %p4675_p9 }
  0x6b   : > { %p4748_p7 = scmp.lt.s32.totalorder %s618_s7, %s4746_s27  ;;  %p4749_p2 = scmp.lt.s32.totalorder %s4747_s10, %s4740_s0 }
  0x6c   : > { %p4744_p0 = pneg %p4743_p13 }
  0x6d   : > { %p4750_p3 = por %p4749_p2, %p4748_p7 }
  0x6f   : > { %p4751_p10 = pnand %p4750_p3, %p4744_p0 }
  0x71   : > { %4754 = shalt.err (!%p4751_p10)
}
  0x72   : > { %s5962_s16 = smov 64   ;;  %s5963_s4 = smov 4  }
  0x73   : > { %4250 = dma.hbm_to_vmem [thread:$0]  (!%p5116_p6), %s616_s13, 1024, %s618_s7, %s607_s25, %s5962_s16, %s5962_s16, %s5963_s4  }
  0x74   : > { %s3968_s12 = sshll.u32 %s4885_s20, 12  ;;  %s6002_s26 = sshll.u32 %s5109_s28, 8 }
  0x75   : > { %s660_s18 = scalar_lea.vmem [#allocation9], %s6002_s26  ;;  %s6003_s9 = sld [smem:[#allocation37_spill]] }
  0x76   : > { %s667_s14 = sshll.u32 %s660_s18, 4  ;;  %s4902_s5 = smov [#allocation9]   ;;  %s668_s14 = int_to_ptr.vmem [resolvable:$true] %s667_s14 }
  0x77   : > { %s4768_s10 = scalar_lea.vmem %s668_s14, 4096  ;;  %s4773_s15 = sshll.u32 %s4902_s5, 4  ;;  %s4774_s15 = int_to_ptr.vmem [resolvable:$false] %s4773_s15 }
  0x78   : > { %p4769_p12 = scmp.ne.s32.totalorder %s668_s14, %s4768_s10  ;;  %s4775_s3 = scalar_lea.vmem %s4774_s15, 8192 }
  0x79   : > { %p4776_p11 = scmp.lt.s32.totalorder %s668_s14, %s4774_s15  ;;  %p4777_p8 = scmp.lt.s32.totalorder %s4775_s3, %s4768_s10 }
  0x7a   : > { %p4771_p1 = pnand %p4769_p12, %p4675_p9 }
  0x7b   : > { %s666_s27 = scalar_lea.hbm %s6003_s9, %s3968_s12  ;;  %p4778_p13 = por %p4777_p8, %p4776_p11 }
  0x7c   : > { %p4772_p4 = pneg %p4771_p1 }
  0x7e   : > { %p4779_p0 = pnand %p4778_p13, %p4772_p4 }
  0x80   : > { %4782 = shalt.err (!%p4779_p0)
}
  0x81   : > { %s4903_s7 = smov 256   ;;  %s4904_s13 = smov 16  }
  0x82   : > { %4256 = dma.hbm_to_vmem [thread:$0]  (!%p5116_p6), %s666_s27, 4096, %s668_s14, %s5129_s17, %s4903_s7, %s4903_s7, %s4904_s13  }
  0x83   : > { %s6004_s11 = sld [smem:[#allocation39_spill]]  ;;  %s6005_s18 = sshll.u32 %s5109_s28, 8 }
  0x84   : > { %s688_s29 = scalar_lea.vmem [#allocation10], %s6005_s18  ;;  %s6006_s3 = sand.u32 1, %s4893_s21  }
  0x85   : > { %s695_s15 = sshll.u32 %s688_s29, 4  ;;  %s685_s0 = scalar_lea.sflag [#allocation11], %s6006_s3  ;;  %s696_s15 = int_to_ptr.vmem [resolvable:$true] %s695_s15 }
  0x86   : > { %s4796_s10 = scalar_lea.vmem %s696_s15, 4096  ;;  %s4905_s16 = smov [#allocation10]  }
  0x87   : > { %p4797_p7 = scmp.ne.s32.totalorder %s696_s15, %s4796_s10  ;;  %s4801_s4 = sshll.u32 %s4905_s16, 4  ;;  %s4802_s4 = int_to_ptr.vmem [resolvable:$false] %s4801_s4 }
  0x88   : > { %s4803_s17 = scalar_lea.vmem %s4802_s4, 8192  ;;  %p4804_p10 = scmp.lt.s32.totalorder %s696_s15, %s4802_s4 }
  0x89   : > { %s694_s5 = scalar_lea.hbm %s6004_s11, %s3968_s12  ;;  %p4799_p2 = pnand %p4797_p7, %p4675_p9 }
  0x8a   : > { %p4805_p12 = scmp.lt.s32.totalorder %s4803_s17, %s4796_s10 }
  0x8b   : > { %p4800_p3 = pneg %p4799_p2 }
  0x8c   : > { %p4806_p1 = por %p4805_p12, %p4804_p10 }
  0x8e   : > { %p4807_p4 = pnand %p4806_p1, %p4800_p3 }
  0x90   : > { %4810 = shalt.err (!%p4807_p4)
}
  0x91   : > { %s6007_s28 = smov 4   ;;  %s6008_s12 = smov 64  }
  0x92   : > { %4259 = dma.hbm_to_vmem [thread:$0]  (!%p5116_p6), %s694_s5, 4096, %s696_s15, %s685_s0, %s6008_s12, %s6008_s12, %s6007_s28  }
  0x93   : > { %713 = sbr.rel (%p5066_p5) target bundleno = 4681 (0x1249), region = 88 }
  0x98   : > { %s5191_s14 = sand.u32 1, %s4869_s30   ;;  %p6009_p9 = scmp.ne.s32.totalorder %s5990_s23, 0 }
  0x99   : > { %s3832_s16 = sshll.u32 %s5191_s14, 6  ;;  %s716_s4 = scalar_lea.sflag [#allocation6], %s5191_s14 }
  0x9a   : > { %s5195_s27 = scalar_lea.vmem [#allocation5], %s3832_s16 }
  0x9b   : > { %4844 = dma.done.wait (%p6009_p9), %s716_s4, 1024  }
  0x9c   : > { %4846 = vsyncadd (%p6009_p9), %s716_s4, 4294966272  ;;  %s6010_s22 = sadd.s32 4294967295, %s4893_s21  }
  0x9d   : > { %s724_s24 = sand.u32 1, %s6010_s22  }
  0x9e   : > { %s725_s7 = scalar_lea.sflag [#allocation8], %s724_s24 }
  0x9f   : > { %4848 = dma.done.wait (%p6009_p9), %s725_s7, 4112  }
  0xa0   : > { %4850 = vsyncadd (%p6009_p9), %s725_s7, 4294963184  ;;  %s3833_s25 = sshll.u32 %s5191_s14, 8  ;;  %s742_s5 = scalar_lea.sflag [#allocation11], %s724_s24 }
  0xa1   : > { %s5209_s26 = scalar_lea.vmem [#allocation9], %s3833_s25  ;;  %s5211_s18 = scalar_lea.vmem [#allocation10], %s3833_s25 }
  0xa2   : > { %6011 = sst [smem:[#allocation29_spill]] %s5211_s18 }
  0xa3   : > { %4852 = dma.done.wait (%p6009_p9), %s742_s5, 4096  }
  0xa4   : > { %4854 = vsyncadd (%p6009_p9), %s742_s5, 4294963200  ;;  %p6012_p5 = scmp.ne.s32.totalorder %s5989_s2, 0 }
  0xa6   : > { %4856 = dma.done.wait (%p6012_p5), [#allocation11], 16  }
  0xa7   : > { %4858 = vsyncadd (%p6012_p5), [#allocation11], 4294967280 }
  0xa8   : > { %4860 = dma.done.wait (%p6012_p5), [#allocation14], 32  }
  0xa9   : > { %4862 = vsyncadd (%p6012_p5), [#allocation14], 4294967264  ;;  %p855_p6 = scmp.lt.s32.totalorder %s4877_s19, 1  ;;  %p883_p11 = scmp.lt.s32.totalorder %s4881_s1, 2 }
  0xaa   : > { %p892_p8 = scmp.eq.s32.totalorder %s4881_s1, 0  ;;  %p893_p13 = scmp.eq.s32.totalorder %s4877_s19, 0 }
  0xab   : > { %s5230_s23 = scalar_select %p855_p6, %s4877_s19, 1 }
  0xac   : > { %s5233_s2 = scalar_select %p883_p11, %s4881_s1, 2 }
  0xad   : > { %s4215_s16 = smul.u32 192, %s5230_s23  ;;  %s6015_s29 = sld [smem:[#allocation33_spill]] }
  0xae   : > { %s4216_s7 = smul.u32 3, %s5230_s23  ;;  %s3839_s3 = sshll.u32 %s5230_s23, 2 }
  0xaf   : > { %s6016_s10 = sld [smem:[#allocation34_spill]]  ;;  %s3970_s13 = sshll.u32 %s5233_s2, 5 }
  0xb0   : > { %s6017_s4 = sld [smem:[#allocation38_spill]]  ;;  %p894_p0 = pnand %p893_p13, %p892_p8 }
  0xb1   : > { %s6018_s25 = sld [smem:[#allocation40_spill]] }
  0xb2   : > { %s6019_s11 = sld [smem:[#allocation44_spill]] }
  0xb3   : > { %s5256_s15 = scalar_lea.vmem %s6015_s29, %s4215_s16  ;;  %s6020_s20 = sld [smem:[#allocation45_spill]] }
  0xb5   : > { %s5262_s17 = scalar_lea.vmem %s6016_s10, %s4216_s7  ;;  %897 = sbr.rel (%p894_p0) target bundleno = 195 (0xc3), region = 120 }
  0xb6   : > { %s5267_s22 = scalar_lea.vmem %s6017_s4, %s3839_s3  ;;  %s6021_s3 = sld [smem:[#allocation30_spill]] (!%p894_p0) }
  0xb7   : > { %s882_s5 = scalar_lea.vmem %s6018_s25, %s5230_s23 }
  0xb8   : > { %s5277_s16 = scalar_lea.vmem %s6019_s11, %s3970_s13 }
  0xb9   : > { %s890_s0 = scalar_lea.vmem %s6020_s20, %s5233_s2 }
  0xba   : > { %v898_v1 = vlaneseq  ;;  %vm907_vm0 = vcmask 130048   ;;  %v4906_v9 = vmov -1e+30  }
  0xbc   : > { %v910_v2 = vld [vmem:[%s6021_s3] sm:$0xff]  ;;  %v911_v3 = vld [vmem:[%s6021_s3 + $0x8] sm:$0xff]  ;;  %v912_v4 = vld [vmem:[%s6021_s3 + $0x10] sm:$0xff]  ;;  %v899_v6 = vshrl.u32 %v898_v1, 7  ;;  %v902_v7 = vand.u32 127, %v898_v1 }
  0xbd   : > { %914 = vst [vmem:[#allocation2 + $0x10] sm:$0xff] %v910_v2  ;;  %915 = vst [vmem:[#allocation2] sm:$0xff] %v911_v3  ;;  %v913_v5 = vld [vmem:[%s6021_s3 + $0x18] sm:$0xff] }
  0xbe   : > { %916 = vst [vmem:[#allocation2 + $0x18] sm:$0xff] %v912_v4  ;;  %917 = vst [vmem:[#allocation2 + $0x8] sm:$0xff] %v913_v5  ;;  %vm903_vm1 = vcmp.le.s32.totalorder %v902_v7, %v899_v6  ;;  %v900_v8 = vadd.s32 8, %v899_v6 }
  0xbf   : > { %v905_v10 = vsel %vm903_vm1, 0.0, %v4906_v9 }
  0xc0   : > { %908 = vst.msk [vmem:[#allocation3] sm:$0xff] %vm907_vm0, %v905_v10  ;;  %vm904_vm2 = vcmp.le.s32.totalorder %v902_v7, %v900_v8 }
  0xc1   : > { %v906_v11 = vsel %vm904_vm2, 0.0, %v4906_v9 }
  0xc2   : > { %909 = vst.msk [vmem:[#allocation3 + $0x8] sm:$0xff] %vm907_vm0, %v906_v11 }
  0xc3 PF: > { %p918_p7 = scmp.gt.s32.totalorder %s4881_s1, 0 }
  0xc5   : > { %p919_p2 = pnand %p918_p7, %p893_p13 }
  0xc6   : > { %s6022_s25 = sld [smem:[#allocation30_spill]] (!%p919_p2) }
  0xc7   : > { %922 = sbr.rel (%p919_p2) target bundleno = 210 (0xd2), region = 124 }
  0xcc   : > { %v923_v12 = vld [vmem:[#allocation2 + $0x10] sm:$0xff]  ;;  %v927_v13 = vld [vmem:[%s6022_s25] sm:$0xff]  ;;  %v928_v16 = vld [vmem:[%s6022_s25 + $0x8] sm:$0xff] }
  0xcd   : > { %v924_v14 = vld [vmem:[#allocation2] sm:$0xff]  ;;  %v931_v15 = vadd.f32 %v927_v13, %v923_v12  ;;  %v925_v17 = vld [vmem:[#allocation2 + $0x18] sm:$0xff]  ;;  %v929_v18 = vld [vmem:[%s6022_s25 + $0x10] sm:$0xff] }
  0xce   : > { %v932_v19 = vadd.f32 %v928_v16, %v924_v14  ;;  %v933_v20 = vadd.f32 %v929_v18, %v925_v17  ;;  %v926_v21 = vld [vmem:[#allocation2 + $0x8] sm:$0xff]  ;;  %v930_v22 = vld [vmem:[%s6022_s25 + $0x18] sm:$0xff] }
  0xcf   : > { %935 = vst [vmem:[#allocation2 + $0x10] sm:$0xff] %v931_v15  ;;  %v934_v23 = vadd.f32 %v930_v22, %v926_v21 }
  0xd0   : > { %936 = vst [vmem:[#allocation2] sm:$0xff] %v932_v19  ;;  %937 = vst [vmem:[#allocation2 + $0x18] sm:$0xff] %v933_v20 }
  0xd1   : > { %938 = vst [vmem:[#allocation2 + $0x8] sm:$0xff] %v934_v23 }
  0xd2 PF: > { %v4376_v28 = vld [vmem:[%s5256_s15 + $0xac] ss:$12 sps:$4 sm:$0xff]   ;;  %v4378_v29 = vld [vmem:[%s5256_s15 + $0xa8] ss:$12 sps:$4 sm:$0xff]   ;;  %v4381_v47 = vld [vmem:[%s5256_s15 + $0xb0] ss:$12 sps:$4 sm:$0xff]   ;;  %s6027_s25 = scalar_lea.vmem %s5939_s6, %s5230_s23  ;;  %s6029_s29 = scalar_lea.vmem %s5941_s8, %s5230_s23 }
  0xd3   : > { %1189 = vmatprep.subr.bf16.mxu0 %v4376_v28  ;;  %v4379_v46 = vld [vmem:[%s5256_s15 + $0x94] ss:$12 sps:$4 sm:$0xff]   ;;  %v4382_v48 = vld [vmem:[%s5256_s15 + $0x90] ss:$12 sps:$4 sm:$0xff]   ;;  %4079 = vmatprep.subr.bf16.mxu1 %v4381_v47  ;;  %v4385_v50 = vld [vmem:[%s5256_s15 + $0x98] ss:$12 sps:$4 sm:$0xff]  }
  0xd4   : > { %1190 = vmatpush1.bf16.msra.mxu0 %v4378_v29  ;;  %4080 = vmatpush3.bf16.msra.mxu1 %v4381_v47  ;;  %v4383_v49 = vld [vmem:[%s5256_s15 + $0x7c] ss:$12 sps:$4 sm:$0xff]   ;;  %v4386_v51 = vld [vmem:[%s5256_s15 + $0x78] ss:$12 sps:$4 sm:$0xff]   ;;  %v4389_v53 = vld [vmem:[%s5256_s15 + $0x80] ss:$12 sps:$4 sm:$0xff]  }
  0xd5   : > { %1191 = vmatprep.subr.bf16.mxu0 %v4379_v46  ;;  %4081 = vmatprep.subr.bf16.mxu1 %v4385_v50  ;;  %v4387_v52 = vld [vmem:[%s5256_s15 + $0x64] ss:$12 sps:$4 sm:$0xff]   ;;  %v4390_v54 = vld [vmem:[%s5256_s15 + $0x60] ss:$12 sps:$4 sm:$0xff]   ;;  %v4393_v56 = vld [vmem:[%s5256_s15 + $0x68] ss:$12 sps:$4 sm:$0xff]  }
  0xd6   : > { %v939_v24 = vld [vmem:[#allocation2 + $0x10] sm:$0xff]  ;;  %v4391_v55 = vld [vmem:[%s5256_s15 + $0x4c] ss:$12 sps:$4 sm:$0xff]   ;;  %v4399_v61 = vld [vmem:[%s5256_s15 + $0x1c] ss:$12 sps:$4 sm:$0xff]   ;;  %v4907_v63 = vmov 0  }
  0xd7   : > { %v941_v25 = vld [vmem:[#allocation2 + $0x18] sm:$0xff]  ;;  %v940_v26 = vld [vmem:[#allocation2] sm:$0xff]  ;;  %945 = vadd.xlane.f32.xlu0 %v939_v24  ;;  %v4394_v57 = vld [vmem:[%s5256_s15 + $0x48] ss:$12 sps:$4 sm:$0xff]   ;;  %1221 = vmatprep.mubr.bf16.mxu0 %v4907_v63  ;;  %s6023_s3 = sld [smem:[#allocation31_spill]]  ;;  %vm4909_vm3 = vmmov 0  }
  0xd8   : > { %949 = vadd.xlane.f32.xlu1 %v941_v25  ;;  %v942_v27 = vld [vmem:[#allocation2 + $0x8] sm:$0xff]  ;;  %1192 = vmatpush1.bf16.msra.mxu0 %v4382_v48  ;;  %v4395_v58 = vld [vmem:[%s5256_s15 + $0x34] ss:$12 sps:$4 sm:$0xff]   ;;  %v4397_v59 = vld [vmem:[%s5256_s15 + $0x50] ss:$12 sps:$4 sm:$0xff]   ;;  %s6025_s13 = sld [smem:[#allocation32_spill]] }
  0xd9   : > { %1193 = vmatprep.subr.bf16.mxu0 %v4383_v49  ;;  %4082 = vmatpush3.bf16.msra.mxu1 %v4385_v50  ;;  %v4398_v60 = vld [vmem:[%s5256_s15 + $0x30] ss:$12 sps:$4 sm:$0xff]   ;;  %v4401_v62 = vld [vmem:[%s5256_s15 + $0x38] ss:$12 sps:$4 sm:$0xff]   ;;  %v4405_v2 = vld [vmem:[%s5256_s15 + $0x20] ss:$12 sps:$4 sm:$0xff]  }
  0xda   : > { %4083 = vmatprep.subr.bf16.mxu1 %v4389_v53  ;;  %v4402_v0 = vld [vmem:[%s5256_s15 + $0x18] ss:$12 sps:$4 sm:$0xff]   ;;  %v4406_v3 = vld [vmem:[%s5256_s15] ss:$12 sps:$4 sm:$0xff]   ;;  %v4407_v4 = vld [vmem:[%s5256_s15 + $0x8] ss:$12 sps:$4 sm:$0xff]  }
  0xdb   : > { %947 = vadd.xlane.f32.xlu0 %v940_v26  ;;  %v4403_v1 = vld [vmem:[%s5256_s15 + $0x4] ss:$12 sps:$4 sm:$0xff]   ;;  %vm1299_vm4 = vcmask 261120   ;;  %vm1402_vm5 = vcmask 130048   ;;  %s4911_s10 = smov 64   ;;  %s4912_s28 = smov 32  }
  0xdc   : > { %951 = vadd.xlane.f32.xlu1 %v942_v27  ;;  %1194 = vmatpush1.bf16.msra.mxu0 %v4386_v51  ;;  %vm2345_vm6 = vcmask 523264   ;;  %vm2350_vm7 = vcmask 785408   ;;  %s6030_s20 = sld [smem:[#allocation29_spill]]  ;;  %p3960_p3 = scmp.eq.s32.totalorder %s4877_s19, 1 }
  0xdd   : > { %1195 = vmatprep.subr.bf16.mxu0 %v4387_v52  ;;  %4084 = vmatpush3.bf16.msra.mxu1 %v4389_v53  ;;  %s6024_s30 = scalar_lea.vmem %s6023_s3, %s5230_s23 }
  0xde   : > { %4085 = vmatprep.subr.bf16.mxu1 %v4393_v56  ;;  %v3842_v19 = vld [vmem:[%s6024_s30] ss:$0 sm:$0xff]  ;;  %s6026_s18 = scalar_lea.vmem %s6025_s13, %s5230_s23 }
  0xe0   : > { %1196 = vmatpush1.bf16.msra.mxu0 %v4390_v54 }
  0xe1   : > { %1197 = vmatprep.subr.bf16.mxu0 %v4391_v55  ;;  %4086 = vmatpush3.bf16.msra.mxu1 %v4393_v56 }
  0xe2   : > { %4087 = vmatprep.subr.bf16.mxu1 %v4397_v59 }
  0xe4   : > { %1198 = vmatpush1.bf16.msra.mxu0 %v4394_v57 }
  0xe5   : > { %1199 = vmatprep.subr.bf16.mxu0 %v4395_v58  ;;  %4088 = vmatpush3.bf16.msra.mxu1 %v4397_v59 }
  0xe6   : > { %4089 = vmatprep.subr.bf16.mxu1 %v4401_v62 }
  0xe8   : > { %1200 = vmatpush1.bf16.msra.mxu0 %v4398_v60 }
  0xe9   : > { %1201 = vmatprep.subr.bf16.mxu0 %v4399_v61  ;;  %4090 = vmatpush3.bf16.msra.mxu1 %v4401_v62 }
  0xea   : > { %4091 = vmatprep.subr.bf16.mxu1 %v4405_v2 }
  0xec   : > { %1202 = vmatpush1.bf16.msra.mxu0 %v4402_v0 }
  0xed   : > { %1203 = vmatprep.subr.bf16.mxu0 %v4403_v1  ;;  %4092 = vmatpush3.bf16.msra.mxu1 %v4405_v2 }
  0xee   : > { %4093 = vmatprep.subr.bf16.mxu1 %v4407_v4 }
  0xf0   : > { %1204 = vmatpush1.bf16.msra.mxu0 %v4406_v3 }
  0xf1   : > { %4094 = vmatpush3.bf16.msra.mxu1 %v4407_v4 }
 0x160   : > { %v946_v30 = vpop.xlane.xlu0 %945 }
 0x161   : > { %v950_v31 = vpop.xlane.xlu1 %949  ;;  %v954_v32 = vmul.f32 0.0078125, %v946_v30 }
 0x162   : > { %v956_v33 = vmul.f32 0.0078125, %v950_v31 }
 0x163   : > { %v5316_v34 = vsub.f32 %v939_v24, %v954_v32  ;;  %v3843_v24 = vld [vmem:[%s6026_s18] ss:$0 sm:$0xff] }
 0x164   : > { %v5318_v35 = vsub.f32 %v941_v25, %v956_v33  ;;  %v948_v36 = vpop.xlane.xlu0 %947 }
 0x165   : > { %v952_v37 = vpop.xlane.xlu1 %951  ;;  %v955_v38 = vmul.f32 0.0078125, %v948_v36  ;;  %v962_v39 = vmul.f32 %v5316_v34, %v5316_v34 }
 0x166   : > { %v957_v40 = vmul.f32 0.0078125, %v952_v37  ;;  %v964_v43 = vmul.f32 %v5318_v35, %v5318_v35 }
 0x167   : > { %v5322_v41 = vsub.f32 %v940_v26, %v955_v38  ;;  %966 = vadd.xlane.f32.xlu0 %v962_v39  ;;  %v1046_v38 = vlaneseq }
 0x168   : > { %v5324_v42 = vsub.f32 %v942_v27, %v957_v40 }
 0x169   : > { %v963_v44 = vmul.f32 %v5322_v41, %v5322_v41  ;;  %v5377_v39 = vshrl.u32 %v1046_v38, 7 }
 0x16a   : > { %v965_v45 = vmul.f32 %v5324_v42, %v5324_v42 }
 0x16b   : > { %970 = vadd.xlane.f32.xlu0 %v964_v43  ;;  %968 = vadd.xlane.f32.xlu1 %v963_v44  ;;  %v1052_v40 = vsub.s32 1, %v5377_v39  ;;  %v1056_v47 = vsub.s32 2, %v5377_v39  ;;  %v5385_v50 = vsub.s32 0, %v5377_v39 }
 0x16f   : > { %972 = vadd.xlane.f32.xlu1 %v965_v45 }
 0x1f0   : > { %v967_v5 = vpop.xlane.xlu0 %966 }
 0x1f1   : > { %v974_v6 = vmul.f32 0.0078125, %v967_v5 }
 0x1f3   : > { %v978_v7 = vadd.f32 1e-05, %v974_v6 }
 0x1f4   : > { %v969_v8 = vpop.xlane.xlu1 %968  ;;  %v971_v9 = vpop.xlane.xlu0 %970 }
 0x1f5   : > { %4496 = vrsqrt.f32 %v978_v7  ;;  %v975_v10 = vmul.f32 0.0078125, %v969_v8  ;;  %v976_v11 = vmul.f32 0.0078125, %v971_v9 }
 0x1f7   : > { %v979_v12 = vadd.f32 1e-05, %v975_v10  ;;  %v980_v13 = vadd.f32 1e-05, %v976_v11 }
 0x1f8   : > { %v973_v14 = vpop.xlane.xlu1 %972 }
 0x1f9   : > { %4498 = vrsqrt.f32 %v979_v12  ;;  %v977_v15 = vmul.f32 0.0078125, %v973_v14 }
 0x1fa   : > { %4500 = vrsqrt.f32 %v980_v13 }
 0x1fb   : > { %v981_v16 = vadd.f32 1e-05, %v977_v15 }
 0x1fd   : > { %4502 = vrsqrt.f32 %v981_v16 }
 0x202   : > { %v4497_v17 = vpop.eup %4496 }
 0x203   : > { %v986_v18 = vmul.f32 %v4497_v17, %v5316_v34  ;;  %v5420_v17 = vld [vmem:[#allocation3] sm:$0xff] }
 0x205   : > { %v996_v23 = vmul.f32 %v3842_v19, %v986_v18 }
 0x206   : > { %v4499_v20 = vpop.eup %4498 }
 0x207   : > { %v4501_v21 = vpop.eup %4500  ;;  %v987_v22 = vmul.f32 %v4499_v20, %v5322_v41  ;;  %v1006_v28 = vadd.f32 %v3843_v24, %v996_v23 }
 0x208   : > { %v988_v25 = vmul.f32 %v4501_v21, %v5318_v35  ;;  %v4908_v35 = vmov 0.0  }
 0x209   : > { %v997_v26 = vmul.f32 %v3842_v19, %v987_v22  ;;  %4099 = vmatprep.subr.bf16.mxu0 %v4908_v35  ;;  %4111 = vmatprep.subr.bf16.mxu1 %v4908_v35  ;;  %v5423_v22 = vld [vmem:[#allocation3 + $0x8] sm:$0xff] }
 0x20a   : > { %v4503_v27 = vpop.eup %4502  ;;  %v998_v31 = vmul.f32 %v3842_v19, %v988_v25 }
 0x20b   : > { %v1007_v29 = vadd.f32 %v3843_v24, %v997_v26  ;;  %v989_v30 = vmul.f32 %v4503_v27, %v5324_v42  ;;  %v1044_v42 = vld [vmem:[%s5262_s17] sm:$0x7]  ;;  %s4910_s17 = smov 96  }
 0x20c   : > { %v1008_v34 = vadd.f32 %v3843_v24, %v998_v31  ;;  %v1053_v44 = vrot.slane %v1044_v42, %v1052_v40  ;;  %v1057_v55 = vrot.slane %v1044_v42, %v1056_v47  ;;  %v1049_v59 = vrot.slane %v1044_v42, %v5385_v50 }
 0x20d   : > { %v1010_v32 = vpack.c.bf16 %v1007_v29, %v1006_v28  ;;  %v999_v33 = vmul.f32 %v3842_v19, %v989_v30 }
 0x20f   : > { %1222 = vmatmul.mubr.bf16.vlgmr.msra.gmra.mxu0 %v1010_v32  ;;  %4095 = vmatprep.mubr.bf16.mxu1 %v1010_v32  ;;  %v1009_v36 = vadd.f32 %v3843_v24, %v999_v33 }
 0x210   : > { %1231 = vmatprep.mubr.bf16.mxu0 %v4907_v63 }
 0x211   : > { %v1011_v37 = vpack.c.bf16 %v1009_v36, %v1008_v34 }
 0x213   : > { %4096 = vmatmul.mubr.bf16.vlgmr.msra.gmra.mxu1 %v1011_v37 }
 0x214   : > { %4113 = vmatprep.mubr.msk.bf16.mxu1 %vm4909_vm3, %v4908_v35 }
 0x217   : > { %1232 = vmatmul.mubr.bf16.gmra.mxu0 %v1011_v37 }
 0x218   : > { %4101 = vmatprep.mubr.msk.bf16.mxu0 %vm4909_vm3, %v4908_v35 }
 0x2cf   : > { %v1223_v41 = vpop.f32.mrf.mxu0 }
 0x2d0   : > { %v1224_v4 = vadd.f32 %v1223_v41, %v1049_v59 }
 0x2d1   : > { %v1225_v43 = vpop.f32.mrf.mxu0 }
 0x2d2   : > { %v1226_v51 = vadd.f32 %v1225_v43, %v1053_v44 }
 0x2d3   : > { %v1227_v45 = vpop.f32.mrf.mxu0  ;;  %v4097_v46 = vpop.f32.mrf.mxu1 }
 0x2d4   : > { %v1228_v1 = vadd.f32 %v1227_v45, %v1049_v59  ;;  %v1285_v13 = vadd.f32 %v4097_v46, %v1057_v55 }
 0x2d5   : > { %v1229_v48 = vpop.f32.mrf.mxu0  ;;  %v1276_v49 = vpop.f32.mrf.mxu1 }
 0x2d6   : > { %v1230_v52 = vadd.f32 %v1229_v48, %v1053_v44  ;;  %v1277_v60 = vadd.f32 %v1276_v49, %v1057_v55  ;;  %v5399_v7 = vpack.c.bf16 %v1228_v1, %v1224_v4 }
 0x2d7   : > { %v1233_v53 = vpop.f32.mrf.mxu0  ;;  %v4098_v54 = vpop.f32.mrf.mxu1 }
 0x2d8   : > { %v5389_v56 = vpack.c.bf16 %v1230_v52, %v1226_v51  ;;  %v1288_v11 = vadd.f32 %v4098_v54, %v1057_v55  ;;  %v1234_v12 = vadd.f32 %v1233_v53, %v1049_v59 }
 0x2d9   : > { %v1235_v57 = vpop.f32.mrf.mxu0  ;;  %v1279_v58 = vpop.f32.mrf.mxu1 }
 0x2da   : > { %v1280_v61 = vadd.f32 %v1279_v58, %v1057_v55  ;;  %v1304_v62 = vsel %vm1299_vm4, %v5389_v56, 0  ;;  %v1236_v5 = vadd.f32 %v1235_v57, %v1053_v44  ;;  %v5412_v15 = vpack.c.bf16 %v1288_v11, %v1285_v13 }
 0x2db   : > { %v1237_v0 = vpop.f32.mrf.mxu0  ;;  %4100 = vmatpush3.bf16.xpose.msra.mxu0 %v1304_v62 }
 0x2dc   : > { %v5394_v2 = vpack.c.bf16 %v1280_v61, %v1277_v60  ;;  %4105 = vmatprep.subr.bf16.mxu0 %v4908_v35  ;;  %v1238_v10 = vadd.f32 %v1237_v0, %v1049_v59 }
 0x2dd   : > { %v1239_v3 = vpop.f32.mrf.mxu0 }
 0x2de   : > { %v1240_v6 = vadd.f32 %v1239_v3, %v1053_v44  ;;  %4112 = vmatpush3.bf16.msra.mxu1 %v5394_v2  ;;  %v5410_v14 = vpack.c.bf16 %v1238_v10, %v1234_v12 }
 0x2df   : > { %4123 = vmatprep.subr.bf16.mxu1 %v4908_v35 }
 0x2e0   : > { %v5401_v8 = vpack.c.bf16 %v1240_v6, %v1236_v5 }
 0x2e2   : > { %4102 = vmatmul.mubr.msk.bf16.vlgmr.msra.gmra.mxu0 %vm1299_vm4, %v5399_v7  ;;  %v1351_v9 = vsel %vm1299_vm4, %v5401_v8, 0 }
 0x2e3   : > { %4106 = vmatpush3.bf16.xpose.msra.mxu0 %v1351_v9  ;;  %4107 = vmatprep.mubr.msk.bf16.mxu0 %vm4909_vm3, %v4908_v35 }
 0x2e4   : > { %4117 = vmatprep.subr.bf16.mxu0 %v4908_v35 }
 0x2ea   : > { %4108 = vmatmul.mubr.msk.bf16.vlgmr.msra.gmra.mxu0 %vm1299_vm4, %v5410_v14 }
 0x2eb   : > { %4118 = vmatpush3.bf16.msra.mxu0 %v5412_v15  ;;  %4119 = vmatprep.mubr.msk.bf16.mxu0 %vm4909_vm3, %v4908_v35 }
 0x2ec   : > { %4129 = vmatprep.subr.bf16.mxu0 %v4908_v35 }
 0x3a2   : > { %v1340_v16 = vpop.f32.mrf.mxu0 }
 0x3a3   : > { %v1394_v18 = vmul.f32 0.17677669, %v1340_v16 }
 0x3a4   : > { %v4103_v19 = vpop.f32.mrf.mxu0 }
 0x3a5   : > { %v1398_v20 = vadd.f32 %v1394_v18, %v5420_v17 }
 0x3a6   : > { %v1343_v21 = vpop.f32.mrf.mxu0 }
 0x3a7   : > { %v1395_v23 = vmul.f32 0.17677669, %v1343_v21  ;;  %v1403_v24 = vsel %vm1402_vm5, %v1398_v20, -inf }
 0x3a8   : > { %1404 = vmax.xlane.f32.xlu0 %v1403_v24  ;;  %v4104_v25 = vpop.f32.mrf.mxu0 }
 0x3a9   : > { %v1399_v26 = vadd.f32 %v1395_v23, %v5423_v22 }
 0x3aa   : > { %v1387_v27 = vpop.f32.mrf.mxu0 }
 0x3ab   : > { %v1396_v28 = vmul.f32 0.17677669, %v1387_v27  ;;  %v1406_v29 = vsel %vm1402_vm5, %v1399_v26, -inf }
 0x3ac   : > { %1407 = vmax.xlane.f32.xlu1 %v1406_v29  ;;  %v4109_v30 = vpop.f32.mrf.mxu0 }
 0x3ad   : > { %v1400_v31 = vadd.f32 %v1396_v28, %v5420_v17 }
 0x3ae   : > { %v1390_v32 = vpop.f32.mrf.mxu0 }
 0x3af   : > { %v1397_v33 = vmul.f32 0.17677669, %v1390_v32  ;;  %v1409_v34 = vsel %vm1402_vm5, %v1400_v31, -inf }
 0x3b0   : > { %1410 = vmax.xlane.f32.xlu0 %v1409_v34  ;;  %v4110_v36 = vpop.f32.mrf.mxu0 }
 0x3b1   : > { %v1401_v37 = vadd.f32 %v1397_v33, %v5423_v22 }
 0x3b3   : > { %v1412_v41 = vsel %vm1402_vm5, %v1401_v37, -inf }
 0x3b4   : > { %1413 = vmax.xlane.f32.xlu1 %v1412_v41 }
 0x431   : > { %v1405_v42 = vpop.xlane.xlu0 %1404 }
 0x432   : > { %v1415_v43 = vsub.f32 %v1398_v20, %v1405_v42 }
 0x434   : > { %v1419_v44 = vmul.f32 1.442695, %v1415_v43 }
 0x435   : > { %v1408_v45 = vpop.xlane.xlu1 %1407 }
 0x436   : > { %4504 = vpow2.f32 %v1419_v44  ;;  %v1416_v46 = vsub.f32 %v1399_v26, %v1408_v45 }
 0x438   : > { %v1421_v48 = vmul.f32 1.442695, %v1416_v46 }
 0x439   : > { %v1411_v49 = vpop.xlane.xlu0 %1410 }
 0x43a   : > { %4506 = vpow2.f32 %v1421_v48  ;;  %v1417_v51 = vsub.f32 %v1400_v31, %v1411_v49 }
 0x43c   : > { %v1423_v52 = vmul.f32 1.442695, %v1417_v51 }
 0x43d   : > { %v1414_v60 = vpop.xlane.xlu1 %1413 }
 0x43e   : > { %4508 = vpow2.f32 %v1423_v52  ;;  %v1418_v61 = vsub.f32 %v1401_v37, %v1414_v60 }
 0x440   : > { %v1425_v62 = vmul.f32 1.442695, %v1418_v61 }
 0x442   : > { %4510 = vpow2.f32 %v1425_v62 }
 0x443   : > { %v4505_v53 = vpop.eup %4504 }
 0x444   : > { %v1427_v54 = vsel %vm1402_vm5, %v4505_v53, 0.0 }
 0x445   : > { %1428 = vadd.xlane.f32.xlu0 %v1427_v54 }
 0x447   : > { %v4507_v55 = vpop.eup %4506 }
 0x448   : > { %v1430_v57 = vsel %vm1402_vm5, %v4507_v55, 0.0 }
 0x449   : > { %1431 = vadd.xlane.f32.xlu1 %v1430_v57 }
 0x44b   : > { %v4509_v58 = vpop.eup %4508 }
 0x44c   : > { %v1433_v59 = vsel %vm1402_vm5, %v4509_v58, 0.0 }
 0x44d   : > { %1434 = vadd.xlane.f32.xlu0 %v1433_v59 }
 0x44f   : > { %v4511_v0 = vpop.eup %4510 }
 0x450   : > { %v1436_v1 = vsel %vm1402_vm5, %v4511_v0, 0.0 }
 0x45a   : > { %1594 = vrot.lane.b32.xlu1 %v5401_v8, %s4910_s17 }
 0x463   : > { %1541 = vrot.lane.b32.xlu0 %v5389_v56, %s4910_s17 }
 0x47e   : > { %1437 = vadd.xlane.f32.xlu1 %v1436_v1 }
 0x48f   : > { %1538 = vrot.lane.b32.xlu1 %v5399_v7, %s4910_s17 }
 0x493   : > { %1591 = vrot.lane.b32.xlu1 %v5410_v14, %s4910_s17 }
 0x4ce   : > { %v1429_v3 = vpop.xlane.xlu0 %1428 }
 0x4cf   : > { %4512 = vrcp.f32 %v1429_v3 }
 0x4d2   : > { %v1432_v4 = vpop.xlane.xlu1 %1431 }
 0x4d3   : > { %4514 = vrcp.f32 %v1432_v4 }
 0x4d6   : > { %v1435_v5 = vpop.xlane.xlu0 %1434  ;;  %v1595_v18 = vpop.permute.xlu1 %1594 }
 0x4d7   : > { %4516 = vrcp.f32 %v1435_v5  ;;  %v1600_v27 = vsel %vm1299_vm4, %v1595_v18, 0 }
 0x4da   : > { %v1542_v12 = vpop.permute.xlu0 %1541 }
 0x4db   : > { %v1547_v16 = vsel %vm1299_vm4, %v1542_v12, 0 }
 0x4dc   : > { %v4513_v6 = vpop.eup %4512 }
 0x4dd   : > { %v1443_v10 = vmul.f32 %v4513_v6, %v4505_v53 }
 0x4e0   : > { %v4515_v9 = vpop.eup %4514 }
 0x4e1   : > { %v1444_v11 = vmul.f32 %v4515_v9, %v4507_v55 }
 0x4e3   : > { %v1447_v13 = vpack.c.bf16 %v1444_v11, %v1443_v10 }
 0x4e4   : > { %v4517_v21 = vpop.eup %4516 }
 0x4e5   : > { %4114 = vmatmul.mubr.msk.bf16.vlgmr.msra.gmra.mxu1 %vm1402_vm5, %v1447_v13  ;;  %v1445_v24 = vmul.f32 %v4517_v21, %v4509_v58 }
 0x4e6   : > { %4124 = vmatpush3.bf16.xpose.msra.mxu1 %v1547_v16  ;;  %4125 = vmatprep.mubr.msk.bf16.mxu1 %vm4909_vm3, %v4908_v35 }
 0x4e7   : > { %4135 = vmatprep.subr.bf16.mxu1 %v4908_v35 }
 0x507   : > { %v1438_v19 = vpop.xlane.xlu1 %1437 }
 0x508   : > { %4518 = vrcp.f32 %v1438_v19 }
 0x50b   : > { %v1539_v20 = vpop.permute.xlu1 %1538 }
 0x50c   : > { %4126 = vmatmul.mubr.msk.bf16.vlgmr.msra.gmra.mxu1 %vm1299_vm4, %v1539_v20 }
 0x50d   : > { %4137 = vmatprep.mubr.msk.bf16.mxu1 %vm4909_vm3, %v4908_v35 }
 0x50f   : > { %v1592_v28 = vpop.permute.xlu1 %1591 }
 0x515   : > { %v4519_v23 = vpop.eup %4518 }
 0x516   : > { %v1446_v25 = vmul.f32 %v4519_v23, %v4511_v0 }
 0x518   : > { %v1448_v26 = vpack.c.bf16 %v1446_v25, %v1445_v24 }
 0x51a   : > { %4120 = vmatmul.mubr.msk.bf16.vlgmr.msra.gmra.mxu0 %vm1402_vm5, %v1448_v26 }
 0x51b   : > { %4130 = vmatpush3.bf16.xpose.msra.mxu0 %v1600_v27  ;;  %4131 = vmatprep.mubr.msk.bf16.mxu0 %vm4909_vm3, %v4908_v35 }
 0x51c   : > { %4141 = vmatprep.subr.bf16.mxu0 %v4908_v35 }
 0x522   : > { %4132 = vmatmul.mubr.msk.bf16.vlgmr.msra.gmra.mxu0 %vm1299_vm4, %v1592_v28 }
 0x523   : > { %4143 = vmatprep.mubr.msk.bf16.mxu0 %vm4909_vm3, %v4908_v35 }
 0x5a5   : > { %v5460_v29 = vpop.f32.mrf.mxu1 }
 0x5a7   : > { %v4115_v30 = vpop.f32.mrf.mxu1 }
 0x5a9   : > { %v5462_v31 = vpop.f32.mrf.mxu1 }
 0x5ab   : > { %v4116_v32 = vpop.f32.mrf.mxu1 }
 0x5cc   : > { %v1583_v33 = vpop.f32.mrf.mxu1 }
 0x5cd   : > { %v1643_v34 = vmul.f32 0.17677669, %v1583_v33 }
 0x5ce   : > { %v4127_v36 = vpop.f32.mrf.mxu1 }
 0x5cf   : > { %v1647_v37 = vadd.f32 %v1643_v34, %v5420_v17 }
 0x5d0   : > { %v1586_v41 = vpop.f32.mrf.mxu1 }
 0x5d1   : > { %v1644_v42 = vmul.f32 0.17677669, %v1586_v41  ;;  %v1651_v43 = vsel %vm1402_vm5, %v1647_v37, -inf }
 0x5d2   : > { %1652 = vmax.xlane.f32.xlu0 %v1651_v43  ;;  %v4128_v44 = vpop.f32.mrf.mxu1 }
 0x5d3   : > { %v1648_v45 = vadd.f32 %v1644_v42, %v5423_v22 }
 0x5d5   : > { %v1654_v46 = vsel %vm1402_vm5, %v1648_v45, -inf }
 0x5d6   : > { %1655 = vmax.xlane.f32.xlu1 %v1654_v46 }
 0x5da   : > { %v5468_v48 = vpop.f32.mrf.mxu0 }
 0x5dc   : > { %v4121_v49 = vpop.f32.mrf.mxu0 }
 0x5de   : > { %v5470_v51 = vpop.f32.mrf.mxu0 }
 0x5e0   : > { %v4122_v52 = vpop.f32.mrf.mxu0 }
 0x5e2   : > { %v1636_v53 = vpop.f32.mrf.mxu0 }
 0x5e3   : > { %v1645_v54 = vmul.f32 0.17677669, %v1636_v53 }
 0x5e4   : > { %v4133_v55 = vpop.f32.mrf.mxu0 }
 0x5e5   : > { %v1649_v57 = vadd.f32 %v1645_v54, %v5420_v17 }
 0x5e6   : > { %v1639_v58 = vpop.f32.mrf.mxu0 }
 0x5e7   : > { %v1646_v59 = vmul.f32 0.17677669, %v1639_v58  ;;  %v1657_v60 = vsel %vm1402_vm5, %v1649_v57, -inf }
 0x5e8   : > { %1658 = vmax.xlane.f32.xlu0 %v1657_v60  ;;  %v4134_v61 = vpop.f32.mrf.mxu0 }
 0x5e9   : > { %v1650_v62 = vadd.f32 %v1646_v59, %v5423_v22 }
 0x5eb   : > { %v1660_v0 = vsel %vm1402_vm5, %v1650_v62, -inf }
 0x5ec   : > { %1661 = vmax.xlane.f32.xlu0 %v1660_v0 }
 0x65b   : > { %v1653_v1 = vpop.xlane.xlu0 %1652 }
 0x65c   : > { %v1663_v3 = vsub.f32 %v1647_v37, %v1653_v1 }
 0x65e   : > { %v1667_v4 = vmul.f32 1.442695, %v1663_v3 }
 0x65f   : > { %v1656_v5 = vpop.xlane.xlu1 %1655 }
 0x660   : > { %4520 = vpow2.f32 %v1667_v4  ;;  %v1664_v6 = vsub.f32 %v1648_v45, %v1656_v5 }
 0x662   : > { %v1669_v9 = vmul.f32 1.442695, %v1664_v6 }
 0x664   : > { %4522 = vpow2.f32 %v1669_v9 }
 0x66d   : > { %v4521_v10 = vpop.eup %4520 }
 0x66e   : > { %v1675_v11 = vsel %vm1402_vm5, %v4521_v10, 0.0 }
 0x66f   : > { %1676 = vadd.xlane.f32.xlu0 %v1675_v11 }
 0x671   : > { %v4523_v12 = vpop.eup %4522  ;;  %v1659_v13 = vpop.xlane.xlu0 %1658 }
 0x672   : > { %v1665_v16 = vsub.f32 %v1649_v57, %v1659_v13  ;;  %v1678_v18 = vsel %vm1402_vm5, %v4523_v12, 0.0 }
 0x673   : > { %1679 = vadd.xlane.f32.xlu1 %v1678_v18 }
 0x674   : > { %v1671_v19 = vmul.f32 1.442695, %v1665_v16 }
 0x675   : > { %v1662_v23 = vpop.xlane.xlu0 %1661 }
 0x676   : > { %4524 = vpow2.f32 %v1671_v19  ;;  %v1666_v24 = vsub.f32 %v1650_v62, %v1662_v23 }
 0x678   : > { %v1673_v25 = vmul.f32 1.442695, %v1666_v24 }
 0x67a   : > { %4526 = vpow2.f32 %v1673_v25 }
 0x683   : > { %v4525_v20 = vpop.eup %4524 }
 0x684   : > { %1746 = vrot.lane.b32.xlu1 %v5412_v15, %s4910_s17  ;;  %v1681_v21 = vsel %vm1402_vm5, %v4525_v20, 0.0 }
 0x685   : > { %1682 = vadd.xlane.f32.xlu0 %v1681_v21 }
 0x687   : > { %v4527_v26 = vpop.eup %4526 }
 0x688   : > { %1795 = vrot.lane.b32.xlu1 %v5389_v56, %s4911_s10  ;;  %v1684_v27 = vsel %vm1402_vm5, %v4527_v26, 0.0 }
 0x69b   : > { %1698 = vrot.lane.b32.xlu0 %v5394_v2, %s4910_s17 }
 0x69f   : > { %1793 = vrot.lane.b32.xlu0 %v5399_v7, %s4911_s10 }
 0x6ac   : > { %1685 = vadd.xlane.f32.xlu1 %v1684_v27 }
 0x6bd   : > { %1846 = vrot.lane.b32.xlu1 %v5401_v8, %s4911_s10 }
 0x6c1   : > { %1844 = vrot.lane.b32.xlu1 %v5410_v14, %s4911_s10 }
 0x6f8   : > { %v1677_v30 = vpop.xlane.xlu0 %1676 }
 0x6fc   : > { %v1680_v28 = vpop.xlane.xlu1 %1679 }
 0x6fd   : > { %4528 = vrcp.f32 %v1680_v28 }
 0x6fe   : > { %4530 = vrcp.f32 %v1677_v30 }
 0x700   : > { %v1747_v32 = vpop.permute.xlu1 %1746 }
 0x701   : > { %4142 = vmatpush3.bf16.msra.mxu0 %v1747_v32 }
 0x702   : > { %4153 = vmatprep.subr.bf16.mxu0 %v4908_v35 }
 0x704   : > { %v1796_v43 = vpop.permute.xlu1 %1795 }
 0x705   : > { %v1801_v45 = vsel %vm1299_vm4, %v1796_v43, 0 }
 0x70a   : > { %v4529_v33 = vpop.eup %4528 }
 0x70b   : > { %v4531_v36 = vpop.eup %4530  ;;  %v1692_v37 = vmul.f32 %v4529_v33, %v4523_v12 }
 0x70c   : > { %v1691_v42 = vmul.f32 %v4531_v36, %v4521_v10 }
 0x70e   : > { %v1683_v34 = vpop.xlane.xlu0 %1682  ;;  %v1695_v44 = vpack.c.bf16 %v1692_v37, %v1691_v42 }
 0x70f   : > { %4532 = vrcp.f32 %v1683_v34 }
 0x712   : > { %v1699_v41 = vpop.permute.xlu0 %1698 }
 0x713   : > { %4136 = vmatpush3.bf16.msra.mxu1 %v1699_v41 }
 0x714   : > { %4147 = vmatprep.subr.bf16.mxu1 %v4908_v35 }
 0x716   : > { %4138 = vmatmul.mubr.msk.bf16.vlgmr.msra.gmra.mxu1 %vm1402_vm5, %v1695_v44  ;;  %v1794_v46 = vpop.permute.xlu0 %1793 }
 0x717   : > { %4148 = vmatpush3.bf16.xpose.msra.mxu1 %v1801_v45  ;;  %4149 = vmatprep.mubr.msk.bf16.mxu1 %vm4909_vm3, %v4908_v35 }
 0x718   : > { %4159 = vmatprep.subr.bf16.mxu1 %v4908_v35 }
 0x71c   : > { %v4533_v52 = vpop.eup %4532 }
 0x71d   : > { %v1693_v54 = vmul.f32 %v4533_v52, %v4525_v20 }
 0x71e   : > { %4150 = vmatmul.mubr.msk.bf16.vlgmr.msra.gmra.mxu1 %vm1299_vm4, %v1794_v46 }
 0x71f   : > { %4161 = vmatprep.mubr.msk.bf16.mxu1 %vm4909_vm3, %v4908_v35 }
 0x735   : > { %v1686_v49 = vpop.xlane.xlu1 %1685 }
 0x736   : > { %4534 = vrcp.f32 %v1686_v49 }
 0x739   : > { %v1847_v57 = vpop.permute.xlu1 %1846 }
 0x73a   : > { %v1852_v59 = vsel %vm1299_vm4, %v1847_v57, 0 }
 0x73d   : > { %v1845_v60 = vpop.permute.xlu1 %1844 }
 0x743   : > { %v4535_v53 = vpop.eup %4534 }
 0x744   : > { %v1694_v55 = vmul.f32 %v4535_v53, %v4527_v26 }
 0x746   : > { %v1696_v58 = vpack.c.bf16 %v1694_v55, %v1693_v54 }
 0x748   : > { %4144 = vmatmul.mubr.msk.bf16.vlgmr.msra.gmra.mxu0 %vm1402_vm5, %v1696_v58 }
 0x749   : > { %4154 = vmatpush3.bf16.xpose.msra.mxu0 %v1852_v59  ;;  %4155 = vmatprep.mubr.msk.bf16.mxu0 %vm4909_vm3, %v4908_v35 }
 0x74a   : > { %4165 = vmatprep.subr.bf16.mxu0 %v4908_v35 }
 0x750   : > { %4156 = vmatmul.mubr.msk.bf16.vlgmr.msra.gmra.mxu0 %vm1299_vm4, %v1845_v60 }
 0x751   : > { %4167 = vmatprep.mubr.msk.bf16.mxu0 %vm4909_vm3, %v4908_v35 }
 0x7d6   : > { %v5510_v61 = vpop.f32.mrf.mxu1 }
 0x7d8   : > { %v4139_v62 = vpop.f32.mrf.mxu1 }
 0x7da   : > { %v5512_v0 = vpop.f32.mrf.mxu1 }
 0x7db   : > { %v4346_v1 = vpack.i.bf16 %v5512_v0, %v5510_v61 }
 0x7dc   : > { %v4140_v3 = vpop.f32.mrf.mxu1 }
 0x7de   : > { %v1837_v4 = vpop.f32.mrf.mxu1 }
 0x7df   : > { %v1895_v5 = vmul.f32 0.17677669, %v1837_v4 }
 0x7e0   : > { %v4151_v6 = vpop.f32.mrf.mxu1 }
 0x7e1   : > { %v1899_v9 = vadd.f32 %v1895_v5, %v5420_v17 }
 0x7e2   : > { %v1840_v10 = vpop.f32.mrf.mxu1 }
 0x7e3   : > { %v1896_v11 = vmul.f32 0.17677669, %v1840_v10  ;;  %v1903_v12 = vsel %vm1402_vm5, %v1899_v9, -inf }
 0x7e4   : > { %1904 = vmax.xlane.f32.xlu0 %v1903_v12  ;;  %v4152_v13 = vpop.f32.mrf.mxu1 }
 0x7e5   : > { %v1900_v16 = vadd.f32 %v1896_v11, %v5423_v22 }
 0x7e7   : > { %v1906_v18 = vsel %vm1402_vm5, %v1900_v16, -inf }
 0x7e8   : > { %1907 = vmax.xlane.f32.xlu1 %v1906_v18 }
 0x808   : > { %v5520_v19 = vpop.f32.mrf.mxu0 }
 0x80a   : > { %v4145_v20 = vpop.f32.mrf.mxu0 }
 0x80c   : > { %v5522_v21 = vpop.f32.mrf.mxu0 }
 0x80d   : > { %v4351_v23 = vpack.i.bf16 %v5522_v21, %v5520_v19 }
 0x80e   : > { %v4146_v24 = vpop.f32.mrf.mxu0 }
 0x810   : > { %v1888_v25 = vpop.f32.mrf.mxu0 }
 0x811   : > { %v1897_v26 = vmul.f32 0.17677669, %v1888_v25 }
 0x812   : > { %v4157_v27 = vpop.f32.mrf.mxu0 }
 0x813   : > { %v1901_v28 = vadd.f32 %v1897_v26, %v5420_v17 }
 0x814   : > { %v1891_v30 = vpop.f32.mrf.mxu0 }
 0x815   : > { %v1898_v32 = vmul.f32 0.17677669, %v1891_v30  ;;  %v1909_v33 = vsel %vm1402_vm5, %v1901_v28, -inf }
 0x816   : > { %1910 = vmax.xlane.f32.xlu0 %v1909_v33  ;;  %v4158_v34 = vpop.f32.mrf.mxu0 }
 0x817   : > { %v1902_v36 = vadd.f32 %v1898_v32, %v5423_v22 }
 0x819   : > { %v1912_v37 = vsel %vm1402_vm5, %v1902_v36, -inf }
 0x81a   : > { %1913 = vmax.xlane.f32.xlu0 %v1912_v37 }
 0x86d   : > { %v1905_v41 = vpop.xlane.xlu0 %1904 }
 0x86e   : > { %v1915_v42 = vsub.f32 %v1899_v9, %v1905_v41 }
 0x870   : > { %v1919_v43 = vmul.f32 1.442695, %v1915_v42 }
 0x871   : > { %v1908_v44 = vpop.xlane.xlu1 %1907 }
 0x872   : > { %4536 = vpow2.f32 %v1919_v43  ;;  %v1916_v45 = vsub.f32 %v1900_v16, %v1908_v44 }
 0x874   : > { %v1921_v46 = vmul.f32 1.442695, %v1916_v45 }
 0x876   : > { %4538 = vpow2.f32 %v1921_v46 }
 0x87f   : > { %v4537_v49 = vpop.eup %4536 }
 0x880   : > { %v1927_v52 = vsel %vm1402_vm5, %v4537_v49, 0.0 }
 0x881   : > { %1928 = vadd.xlane.f32.xlu0 %v1927_v52 }
 0x883   : > { %v4539_v53 = vpop.eup %4538 }
 0x884   : > { %v1930_v54 = vsel %vm1402_vm5, %v4539_v53, 0.0 }
 0x885   : > { %1931 = vadd.xlane.f32.xlu1 %v1930_v54 }
 0x896   : > { %1996 = vrot.lane.b32.xlu1 %v5412_v15, %s4911_s10 }
 0x89a   : > { %2045 = vrot.lane.b32.xlu1 %v5389_v56, %s4912_s28 }
 0x89f   : > { %v1911_v55 = vpop.xlane.xlu0 %1910 }
 0x8a0   : > { %v1917_v57 = vsub.f32 %v1901_v28, %v1911_v55 }
 0x8a2   : > { %v1923_v58 = vmul.f32 1.442695, %v1917_v57 }
 0x8a3   : > { %v1914_v59 = vpop.xlane.xlu0 %1913 }
 0x8a4   : > { %4540 = vpow2.f32 %v1923_v58  ;;  %v1918_v60 = vsub.f32 %v1902_v36, %v1914_v59 }
 0x8a6   : > { %v1925_v62 = vmul.f32 1.442695, %v1918_v60 }
 0x8a8   : > { %4542 = vpow2.f32 %v1925_v62 }
 0x8b1   : > { %v4541_v3 = vpop.eup %4540 }
 0x8b2   : > { %v1933_v4 = vsel %vm1402_vm5, %v4541_v3, 0.0 }
 0x8b3   : > { %1934 = vadd.xlane.f32.xlu0 %v1933_v4 }
 0x8b5   : > { %v4543_v5 = vpop.eup %4542 }
 0x8b6   : > { %v1936_v6 = vsel %vm1402_vm5, %v4543_v5, 0.0 }
 0x8be   : > { %1937 = vadd.xlane.f32.xlu1 %v1936_v6 }
 0x8c9   : > { %1949 = vrot.lane.b32.xlu0 %v5394_v2, %s4911_s10 }
 0x8cd   : > { %2043 = vrot.lane.b32.xlu0 %v5399_v7, %s4912_s28 }
 0x8cf   : > { %2096 = vrot.lane.b32.xlu1 %v5401_v8, %s4912_s28 }
 0x8d3   : > { %2094 = vrot.lane.b32.xlu1 %v5410_v14, %s4912_s28 }
 0x90a   : > { %v1929_v10 = vpop.xlane.xlu0 %1928 }
 0x90e   : > { %v1932_v56 = vpop.xlane.xlu1 %1931 }
 0x90f   : > { %4544 = vrcp.f32 %v1932_v56 }
 0x910   : > { %4546 = vrcp.f32 %v1929_v10 }
 0x912   : > { %v1997_v9 = vpop.permute.xlu1 %1996 }
 0x913   : > { %4166 = vmatpush3.bf16.msra.mxu0 %v1997_v9 }
 0x914   : > { %4177 = vmatprep.subr.bf16.mxu0 %v4908_v35 }
 0x916   : > { %v2046_v20 = vpop.permute.xlu1 %2045 }
 0x917   : > { %v2051_v14 = vsel %vm1299_vm4, %v2046_v20, 0 }
 0x91c   : > { %v4545_v11 = vpop.eup %4544 }
 0x91d   : > { %v4547_v13 = vpop.eup %4546  ;;  %v1944_v16 = vmul.f32 %v4545_v11, %v4539_v53 }
 0x91e   : > { %v1943_v7 = vmul.f32 %v4547_v13, %v4537_v49 }
 0x920   : > { %v1947_v8 = vpack.c.bf16 %v1944_v16, %v1943_v7 }
 0x93c   : > { %v1935_v12 = vpop.xlane.xlu0 %1934 }
 0x93d   : > { %4548 = vrcp.f32 %v1935_v12 }
 0x940   : > { %v1950_v18 = vpop.permute.xlu0 %1949 }
 0x941   : > { %4160 = vmatpush3.bf16.msra.mxu1 %v1950_v18 }
 0x942   : > { %4171 = vmatprep.subr.bf16.mxu1 %v4908_v35 }
 0x944   : > { %4162 = vmatmul.mubr.msk.bf16.vlgmr.msra.gmra.mxu1 %vm1402_vm5, %v1947_v8  ;;  %v2044_v25 = vpop.permute.xlu0 %2043 }
 0x945   : > { %4172 = vmatpush3.bf16.xpose.msra.mxu1 %v2051_v14  ;;  %4173 = vmatprep.mubr.msk.bf16.mxu1 %vm4909_vm3, %v4908_v35 }
 0x946   : > { %4183 = vmatprep.subr.bf16.mxu1 %v4908_v35 }
 0x947   : > { %v1938_v24 = vpop.xlane.xlu1 %1937 }
 0x948   : > { %4550 = vrcp.f32 %v1938_v24 }
 0x94a   : > { %v4549_v26 = vpop.eup %4548 }
 0x94b   : > { %v1945_v28 = vmul.f32 %v4549_v26, %v4541_v3  ;;  %v2097_v32 = vpop.permute.xlu1 %2096 }
 0x94c   : > { %4174 = vmatmul.mubr.msk.bf16.vlgmr.msra.gmra.mxu1 %vm1299_vm4, %v2044_v25  ;;  %v2102_v34 = vsel %vm1299_vm4, %v2097_v32, 0 }
 0x94d   : > { %4185 = vmatprep.mubr.msk.bf16.mxu1 %vm4909_vm3, %v4908_v35 }
 0x94f   : > { %v2095_v36 = vpop.permute.xlu1 %2094 }
 0x955   : > { %v4551_v27 = vpop.eup %4550 }
 0x956   : > { %v1946_v30 = vmul.f32 %v4551_v27, %v4543_v5 }
 0x958   : > { %v1948_v33 = vpack.c.bf16 %v1946_v30, %v1945_v28 }
 0x95a   : > { %4168 = vmatmul.mubr.msk.bf16.vlgmr.msra.gmra.mxu0 %vm1402_vm5, %v1948_v33 }
 0x95b   : > { %4178 = vmatpush3.bf16.xpose.msra.mxu0 %v2102_v34  ;;  %4179 = vmatprep.mubr.msk.bf16.mxu0 %vm4909_vm3, %v4908_v35 }
 0x95c   : > { %4189 = vmatprep.subr.bf16.mxu0 %v4908_v35 }
 0x962   : > { %4180 = vmatmul.mubr.msk.bf16.vlgmr.msra.gmra.mxu0 %vm1299_vm4, %v2095_v36 }
 0x963   : > { %4191 = vmatprep.mubr.msk.bf16.mxu0 %vm4909_vm3, %v4908_v35 }
 0xa04   : > { %v5564_v37 = vpop.f32.mrf.mxu1 }
 0xa06   : > { %v4163_v41 = vpop.f32.mrf.mxu1 }
 0xa08   : > { %v5566_v42 = vpop.f32.mrf.mxu1 }
 0xa09   : > { %v4356_v43 = vpack.i.bf16 %v5566_v42, %v5564_v37 }
 0xa0a   : > { %v4164_v44 = vpop.f32.mrf.mxu1 }
 0xa0c   : > { %v2087_v45 = vpop.f32.mrf.mxu1 }
 0xa0d   : > { %v2145_v46 = vmul.f32 0.17677669, %v2087_v45 }
 0xa0e   : > { %v4175_v49 = vpop.f32.mrf.mxu1 }
 0xa0f   : > { %v2149_v52 = vadd.f32 %v2145_v46, %v5420_v17 }
 0xa10   : > { %v2090_v53 = vpop.f32.mrf.mxu1 }
 0xa11   : > { %v2146_v54 = vmul.f32 0.17677669, %v2090_v53  ;;  %v2153_v55 = vsel %vm1402_vm5, %v2149_v52, -inf }
 0xa12   : > { %2154 = vmax.xlane.f32.xlu0 %v2153_v55  ;;  %v4176_v35 = vpop.f32.mrf.mxu1 }
 0xa13   : > { %v2150_v57 = vadd.f32 %v2146_v54, %v5423_v22  ;;  %v4408_v35 = vld [vmem:[%s5195_s27 + $0x38] sm:$0xff]  }
 0xa15   : > { %v2156_v58 = vsel %vm1402_vm5, %v2150_v57, -inf }
 0xa16   : > { %2157 = vmax.xlane.f32.xlu1 %v2156_v58  ;;  %v4410_v58 = vld [vmem:[%s5195_s27 + $0x28] sm:$0xff]  }
 0xa1a   : > { %v2036_v59 = vpop.f32.mrf.mxu0 }
 0xa1c   : > { %v4169_v60 = vpop.f32.mrf.mxu0 }
 0xa1d   : > { %v4412_v60 = vld [vmem:[%s5195_s27 + $0x18] sm:$0xff]  }
 0xa1e   : > { %v2039_v62 = vpop.f32.mrf.mxu0 }
 0xa1f   : > { %v4361_v3 = vpack.i.bf16 %v2039_v62, %v2036_v59  ;;  %v4411_v59 = vld [vmem:[%s5195_s27 + $0x20] sm:$0xff]   ;;  %v4413_v62 = vld [vmem:[%s5195_s27 + $0x10] sm:$0xff]  }
 0xa20   : > { %v4170_v4 = vpop.f32.mrf.mxu0 }
 0xa21   : > { %v4414_v4 = vld [vmem:[%s5195_s27 + $0x8] sm:$0xff]  }
 0xa22   : > { %v2138_v5 = vpop.f32.mrf.mxu0 }
 0xa23   : > { %v2147_v6 = vmul.f32 0.17677669, %v2138_v5 }
 0xa24   : > { %v4181_v56 = vpop.f32.mrf.mxu0 }
 0xa25   : > { %v2151_v9 = vadd.f32 %v2147_v6, %v5420_v17 }
 0xa26   : > { %v2141_v10 = vpop.f32.mrf.mxu0 }
 0xa27   : > { %v2148_v11 = vmul.f32 0.17677669, %v2141_v10  ;;  %v2159_v12 = vsel %vm1402_vm5, %v2151_v9, -inf  ;;  %v4415_v10 = vld [vmem:[%s5195_s27] sm:$0xff]  }
 0xa28   : > { %2160 = vmax.xlane.f32.xlu0 %v2159_v12  ;;  %v4182_v13 = vpop.f32.mrf.mxu0 }
 0xa29   : > { %v2152_v16 = vadd.f32 %v2148_v11, %v5423_v22 }
 0xa2b   : > { %v2162_v18 = vsel %vm1402_vm5, %v2152_v16, -inf }
 0xa2c   : > { %2163 = vmax.xlane.f32.xlu0 %v2162_v18 }
 0xa9b   : > { %v2155_v7 = vpop.xlane.xlu0 %2154 }
 0xa9c   : > { %v2165_v20 = vsub.f32 %v2149_v52, %v2155_v7 }
 0xa9e   : > { %v2169_v8 = vmul.f32 1.442695, %v2165_v20 }
 0xa9f   : > { %v2158_v14 = vpop.xlane.xlu1 %2157 }
 0xaa0   : > { %4552 = vpow2.f32 %v2169_v8  ;;  %v2166_v24 = vsub.f32 %v2150_v57, %v2158_v14  ;;  %v4409_v57 = vld [vmem:[%s5195_s27 + $0x30] sm:$0xff]  }
 0xaa2   : > { %v2171_v25 = vmul.f32 1.442695, %v2166_v24 }
 0xaa4   : > { %4554 = vpow2.f32 %v2171_v25 }
 0xaad   : > { %v4553_v17 = vpop.eup %4552 }
 0xaae   : > { %v2177_v26 = vsel %vm1402_vm5, %v4553_v17, 0.0 }
 0xaaf   : > { %2178 = vadd.xlane.f32.xlu0 %v2177_v26 }
 0xab1   : > { %v4555_v27 = vpop.eup %4554  ;;  %v2161_v28 = vpop.xlane.xlu0 %2160 }
 0xab2   : > { %v2167_v30 = vsub.f32 %v2151_v9, %v2161_v28  ;;  %v2180_v22 = vsel %vm1402_vm5, %v4555_v27, 0.0 }
 0xab3   : > { %2181 = vadd.xlane.f32.xlu1 %v2180_v22 }
 0xab4   : > { %v2173_v32 = vmul.f32 1.442695, %v2167_v30 }
 0xab5   : > { %v2164_v33 = vpop.xlane.xlu0 %2163 }
 0xab6   : > { %4556 = vpow2.f32 %v2173_v32  ;;  %v2168_v34 = vsub.f32 %v2152_v16, %v2164_v33 }
 0xab8   : > { %v2175_v36 = vmul.f32 1.442695, %v2168_v34 }
 0xaba   : > { %4558 = vpow2.f32 %v2175_v36 }
 0xac3   : > { %v4557_v37 = vpop.eup %4556 }
 0xac4   : > { %v2183_v41 = vsel %vm1402_vm5, %v4557_v37, 0.0 }
 0xac5   : > { %2184 = vadd.xlane.f32.xlu0 %v2183_v41 }
 0xac7   : > { %v4559_v42 = vpop.eup %4558 }
 0xac8   : > { %v2186_v44 = vsel %vm1402_vm5, %v4559_v42, 0.0 }
 0xac9   : > { %2187 = vadd.xlane.f32.xlu1 %v2186_v44 }
 0xada   : > { %2246 = vrot.lane.b32.xlu1 %v5412_v15, %s4912_s28 }
 0xadb   : > { %2199 = vrot.lane.b32.xlu0 %v5394_v2, %s4912_s28 }
 0xade   : > { %4347 = vrot.lane.b32.xlu1 %v4346_v1, %s4912_s28 }
 0xadf   : > { %4357 = vrot.lane.b32.xlu0 %v4356_v43, %s4911_s10 }
 0xae2   : > { %4352 = vrot.lane.b32.xlu1 %v4351_v23, %s4912_s28 }
 0xae6   : > { %4362 = vrot.lane.b32.xlu1 %v4361_v3, %s4911_s10 }
 0xb38   : > { %v2179_v46 = vpop.xlane.xlu0 %2178 }
 0xb3c   : > { %v2182_v45 = vpop.xlane.xlu1 %2181 }
 0xb3d   : > { %4560 = vrcp.f32 %v2182_v45 }
 0xb3e   : > { %4562 = vrcp.f32 %v2179_v46 }
 0xb4a   : > { %v4561_v15 = vpop.eup %4560 }
 0xb4b   : > { %v4563_v49 = vpop.eup %4562  ;;  %v2194_v52 = vmul.f32 %v4561_v15, %v4555_v27 }
 0xb4c   : > { %v2193_v1 = vmul.f32 %v4563_v49, %v4553_v17 }
 0xb4e   : > { %v2185_v2 = vpop.xlane.xlu0 %2184  ;;  %v2197_v19 = vpack.c.bf16 %v2194_v52, %v2193_v1 }
 0xb4f   : > { %4564 = vrcp.f32 %v2185_v2 }
 0xb52   : > { %v2188_v61 = vpop.xlane.xlu1 %2187  ;;  %v2200_v0 = vpop.permute.xlu0 %2199 }
 0xb53   : > { %4566 = vrcp.f32 %v2188_v61  ;;  %4184 = vmatpush3.bf16.msra.mxu1 %v2200_v0 }
 0xb54   : > { %4195 = vmatprep.subr.bf16.mxu1 %v4408_v35 }
 0xb56   : > { %v2247_v21 = vpop.permute.xlu1 %2246  ;;  %4186 = vmatmul.mubr.msk.bf16.vlgmr.msra.gmra.mxu1 %vm1402_vm5, %v2197_v19  ;;  %v4358_v14 = vpop.permute.xlu0 %4357 }
 0xb57   : > { %4190 = vmatpush3.bf16.msra.mxu0 %v2247_v21  ;;  %4196 = vmatpush3.bf16.msra.mxu1 %v4408_v35  ;;  %v4360_v17 = vunpack.i.h.bf16 %v4358_v14  ;;  %v4359_v26 = vunpack.i.l.bf16 %v4358_v14 }
 0xb58   : > { %4197 = vmatprep.subr.bf16.mxu1 %v4409_v57 }
 0xb5a   : > { %v4348_v7 = vpop.permute.xlu1 %4347 }
 0xb5b   : > { %4198 = vmatpush3.bf16.msra.mxu1 %v4409_v57  ;;  %v4350_v20 = vunpack.i.h.bf16 %v4348_v7  ;;  %v4349_v8 = vunpack.i.l.bf16 %v4348_v7 }
 0xb5c   : > { %v4565_v23 = vpop.eup %4564  ;;  %4199 = vmatprep.subr.bf16.mxu1 %v4410_v58 }
 0xb5d   : > { %v2195_v53 = vmul.f32 %v4565_v23, %v4557_v37  ;;  %v2342_v24 = vsel %vm1299_vm4, %v5462_v31, %v4350_v20  ;;  %v2341_v25 = vsel %vm1299_vm4, %v5460_v29, %v4349_v8 }
 0xb5e   : > { %v2346_v22 = vsel %vm2345_vm6, %v2341_v25, %v4359_v26  ;;  %v2347_v32 = vsel %vm2345_vm6, %v2342_v24, %v4360_v17  ;;  %v4353_v36 = vpop.permute.xlu1 %4352 }
 0xb5f   : > { %4200 = vmatpush3.bf16.msra.mxu1 %v4410_v58  ;;  %v4355_v29 = vunpack.i.h.bf16 %v4353_v36  ;;  %v4354_v41 = vunpack.i.l.bf16 %v4353_v36  ;;  %v4609_v58 = vld [vmem:[#allocation2 + $0x18] sm:$0xff] }
 0xb60   : > { %v4567_v43 = vpop.eup %4566  ;;  %4201 = vmatprep.subr.bf16.mxu1 %v4411_v59  ;;  %v4430_v36 = vld [vmem:[%s5209_s26 + $0xa4] ss:$16 sps:$4 sm:$0xff]  }
 0xb61   : > { %v2196_v54 = vmul.f32 %v4567_v43, %v4559_v42  ;;  %v2344_v46 = vsel %vm1299_vm4, %v5470_v51, %v4355_v29  ;;  %v2343_v15 = vsel %vm1299_vm4, %v5468_v48, %v4354_v41  ;;  %v3884_v48 = vld [vmem:[%s6027_s25] ss:$0 sm:$0xff]  ;;  %v4431_v29 = vld [vmem:[%s5209_s26 + $0xa8] ss:$16 sps:$4 sm:$0xff]   ;;  %v4436_v41 = vld [vmem:[%s5209_s26 + $0x84] ss:$16 sps:$4 sm:$0xff]  }
 0xb62   : > { %v4363_v37 = vpop.permute.xlu1 %4362 }
 0xb63   : > { %v2198_v55 = vpack.c.bf16 %v2196_v54, %v2195_v53  ;;  %4202 = vmatpush3.bf16.msra.mxu1 %v4411_v59  ;;  %v4365_v42 = vunpack.i.h.bf16 %v4363_v37  ;;  %v4364_v44 = vunpack.i.l.bf16 %v4363_v37  ;;  %v4608_v54 = vld [vmem:[#allocation2 + $0x10] sm:$0xff] }
 0xb64   : > { %4203 = vmatprep.subr.bf16.mxu1 %v4412_v60  ;;  %v4428_v37 = vld [vmem:[%s5209_s26 + $0xa0] ss:$16 sps:$4 sm:$0xff]  }
 0xb65   : > { %4192 = vmatmul.mubr.msk.bf16.vlgmr.msra.gmra.mxu0 %vm1402_vm5, %v2198_v55  ;;  %v2348_v52 = vsel %vm2345_vm6, %v2343_v15, %v4364_v44  ;;  %v2349_v61 = vsel %vm2345_vm6, %v2344_v46, %v4365_v42  ;;  %v4439_v42 = vld [vmem:[%s5209_s26 + $0x8c] ss:$16 sps:$4 sm:$0xff]   ;;  %v4434_v44 = vld [vmem:[%s5209_s26 + $0x80] ss:$16 sps:$4 sm:$0xff]   ;;  %v4442_v15 = vld [vmem:[%s5209_s26 + $0x64] ss:$16 sps:$4 sm:$0xff]  }
 0xb66   : > { %2795 = vmatprep.mubr.bf16.mxu0 %v4907_v63  ;;  %v4440_v46 = vld [vmem:[%s5209_s26 + $0x60] ss:$16 sps:$4 sm:$0xff]  }
 0xb67   : > { %4204 = vmatpush3.bf16.msra.mxu1 %v4412_v60 }
 0xb68   : > { %4205 = vmatprep.subr.bf16.mxu1 %v4413_v62 }
 0xb6b   : > { %4206 = vmatpush3.bf16.msra.mxu1 %v4413_v62  ;;  %v4610_v62 = vld [vmem:[#allocation2] sm:$0xff] }
 0xb6c   : > { %4207 = vmatprep.subr.bf16.mxu1 %v4414_v4 }
 0xb6f   : > { %4208 = vmatpush3.bf16.msra.mxu1 %v4414_v4  ;;  %v4611_v4 = vld [vmem:[#allocation2 + $0x8] sm:$0xff] }
 0xb70   : > { %4209 = vmatprep.subr.bf16.mxu1 %v4415_v10 }
 0xb73   : > { %4210 = vmatpush3.bf16.msra.mxu1 %v4415_v10  ;;  %v4421_v10 = vld [vmem:[%s5209_s26 + $0xec] ss:$16 sps:$4 sm:$0xff]  }
 0xb74   : > { %2816 = vmatprep.subr.bf16.mxu1 %v4421_v10 }
 0xc16   : > { %v2239_v3 = vpop.f32.mrf.mxu1 }
 0xc18   : > { %v4187_v5 = vpop.f32.mrf.mxu1 }
 0xc1a   : > { %v2242_v6 = vpop.f32.mrf.mxu1 }
 0xc1b   : > { %v4366_v56 = vpack.i.bf16 %v2242_v6, %v2239_v3  ;;  %v4416_v6 = vld [vmem:[%s5209_s26 + $0xe0] ss:$16 sps:$4 sm:$0xff]  }
 0xc1c   : > { %v4188_v9 = vpop.f32.mrf.mxu1 }
 0xc1d   : > { %4367 = vrot.lane.b32.xlu0 %v4366_v56, %s4910_s17  ;;  %v4418_v56 = vld [vmem:[%s5209_s26 + $0xe4] ss:$16 sps:$4 sm:$0xff]   ;;  %v4419_v9 = vld [vmem:[%s5209_s26 + $0xe8] ss:$16 sps:$4 sm:$0xff]  }
 0xc1e   : > { %2763 = vmatprep.subr.bf16.mxu0 %v4418_v56 }
 0xc1f   : > { %2764 = vmatpush1.bf16.msra.mxu0 %v4416_v6 }
 0xc25   : > { %v2286_v11 = vpop.f32.mrf.mxu0 }
 0xc27   : > { %v4193_v12 = vpop.f32.mrf.mxu0 }
 0xc29   : > { %v2289_v13 = vpop.f32.mrf.mxu0 }
 0xc2a   : > { %v4371_v16 = vpack.i.bf16 %v2289_v13, %v2286_v11 }
 0xc2b   : > { %v4194_v18 = vpop.f32.mrf.mxu0 }
 0xc2c   : > { %4372 = vrot.lane.b32.xlu1 %v4371_v16, %s4910_s17 }
 0xc8f   : > { %v4368_v27 = vpop.permute.xlu0 %4367 }
 0xc90   : > { %v4370_v28 = vunpack.i.h.bf16 %v4368_v27  ;;  %v4369_v30 = vunpack.i.l.bf16 %v4368_v27 }
 0xc92   : > { %v2351_v33 = vsel %vm2350_vm7, %v2346_v22, %v4369_v30  ;;  %v2352_v34 = vsel %vm2350_vm7, %v2347_v32, %v4370_v28  ;;  %v4424_v22 = vld [vmem:[%s5209_s26 + $0xc4] ss:$16 sps:$4 sm:$0xff]   ;;  %v4427_v32 = vld [vmem:[%s5209_s26 + $0xcc] ss:$16 sps:$4 sm:$0xff]  }
 0xc93   : > { %v2355_v31 = vpack.c.bf16 %v2352_v34, %v2351_v33  ;;  %v4422_v33 = vld [vmem:[%s5209_s26 + $0xc0] ss:$16 sps:$4 sm:$0xff]   ;;  %v4425_v34 = vld [vmem:[%s5209_s26 + $0xc8] ss:$16 sps:$4 sm:$0xff]   ;;  %2765 = vmatprep.subr.bf16.mxu0 %v4424_v22 }
 0xc94   : > { %2766 = vmatpush1.bf16.msra.mxu0 %v4422_v33 }
 0xc95   : > { %4211 = vmatprep.mubr.bf16.mxu1 %v2355_v31  ;;  %v4433_v31 = vld [vmem:[%s5209_s26 + $0xac] ss:$16 sps:$4 sm:$0xff]   ;;  %2767 = vmatprep.subr.bf16.mxu0 %v4430_v36 }
 0xc98   : > { %2768 = vmatpush1.bf16.msra.mxu0 %v4428_v37 }
 0xc99   : > { %2769 = vmatprep.subr.bf16.mxu0 %v4436_v41  ;;  %v4466_v41 = vld [vmem:[%s6030_s20 + $0x38] sm:$0xff]  }
 0xc9c   : > { %2770 = vmatpush1.bf16.msra.mxu0 %v4434_v44  ;;  %v4469_v44 = vld [vmem:[%s6030_s20 + $0xf0] sm:$0xff]  }
 0xc9d   : > { %2771 = vmatprep.subr.bf16.mxu0 %v4442_v15  ;;  %v4472_v15 = vld [vmem:[%s6030_s20 + $0x68] sm:$0xff]  }
 0xc9e   : > { %v4373_v45 = vpop.permute.xlu1 %4372 }
 0xc9f   : > { %v4375_v2 = vunpack.i.h.bf16 %v4373_v45  ;;  %v4374_v49 = vunpack.i.l.bf16 %v4373_v45  ;;  %v4437_v45 = vld [vmem:[%s5209_s26 + $0x88] ss:$16 sps:$4 sm:$0xff]  }
 0xca0   : > { %2772 = vmatpush1.bf16.msra.mxu0 %v4440_v46  ;;  %v4471_v46 = vld [vmem:[%s6030_s20 + $0xb0] sm:$0xff]  }
 0xca1   : > { %v2354_v0 = vsel %vm2350_vm7, %v2349_v61, %v4375_v2  ;;  %v2353_v1 = vsel %vm2350_vm7, %v2348_v52, %v4374_v49  ;;  %v4443_v2 = vld [vmem:[%s5209_s26 + $0x68] ss:$16 sps:$4 sm:$0xff]   ;;  %v4445_v49 = vld [vmem:[%s5209_s26 + $0x6c] ss:$16 sps:$4 sm:$0xff]   ;;  %v4448_v52 = vld [vmem:[%s5209_s26 + $0x44] ss:$16 sps:$4 sm:$0xff]  }
 0xca2   : > { %v2356_v19 = vpack.c.bf16 %v2354_v0, %v2353_v1  ;;  %v4451_v61 = vld [vmem:[%s5209_s26 + $0x4c] ss:$16 sps:$4 sm:$0xff]   ;;  %v4446_v0 = vld [vmem:[%s5209_s26 + $0x40] ss:$16 sps:$4 sm:$0xff]   ;;  %v4449_v1 = vld [vmem:[%s5209_s26 + $0x48] ss:$16 sps:$4 sm:$0xff]   ;;  %2773 = vmatprep.subr.bf16.mxu0 %v4448_v52 }
 0xca3   : > { %v4475_v52 = vld [vmem:[%s6030_s20 + $0xa8] sm:$0xff]  }
 0xca4   : > { %4212 = vmatmul.mubr.bf16.vlgmr.msra.gmra.mxu1 %v2356_v19  ;;  %v4454_v19 = vld [vmem:[%s5209_s26 + $0x24] ss:$16 sps:$4 sm:$0xff]   ;;  %2774 = vmatpush1.bf16.msra.mxu0 %v4446_v0 }
 0xca5   : > { %2848 = vmatprep.mubr.bf16.mxu1 %v4907_v63  ;;  %2817 = vmatpush1.bf16.msra.mxu1 %v4419_v9  ;;  %v4477_v0 = vld [vmem:[%s6030_s20 + $0xe0] sm:$0xff]  }
 0xca6   : > { %2818 = vmatprep.subr.bf16.mxu1 %v4427_v32  ;;  %2775 = vmatprep.subr.bf16.mxu0 %v4454_v19  ;;  %v4479_v19 = vld [vmem:[%s6030_s20 + $0xa0] sm:$0xff]  }
 0xca9   : > { %2819 = vmatpush1.bf16.msra.mxu1 %v4425_v34 }
 0xcaa   : > { %2820 = vmatprep.subr.bf16.mxu1 %v4433_v31 }
 0xcad   : > { %2821 = vmatpush1.bf16.msra.mxu1 %v4431_v29  ;;  %v4465_v29 = vld [vmem:[%s6030_s20 + $0xf8] sm:$0xff]  }
 0xcae   : > { %2822 = vmatprep.subr.bf16.mxu1 %v4439_v42  ;;  %v4467_v42 = vld [vmem:[%s6030_s20 + $0xb8] sm:$0xff]  }
 0xcb1   : > { %2823 = vmatpush1.bf16.msra.mxu1 %v4437_v45  ;;  %v4470_v45 = vld [vmem:[%s6030_s20 + $0x30] sm:$0xff]  }
 0xcb2   : > { %2824 = vmatprep.subr.bf16.mxu1 %v4445_v49  ;;  %v4474_v49 = vld [vmem:[%s6030_s20 + $0x28] sm:$0xff]  }
 0xcb5   : > { %2825 = vmatpush1.bf16.msra.mxu1 %v4443_v2  ;;  %v4473_v2 = vld [vmem:[%s6030_s20 + $0xe8] sm:$0xff]  }
 0xcb6   : > { %2826 = vmatprep.subr.bf16.mxu1 %v4451_v61  ;;  %v4476_v61 = vld [vmem:[%s6030_s20 + $0x60] sm:$0xff]  }
 0xcb9   : > { %2827 = vmatpush1.bf16.msra.mxu1 %v4449_v1  ;;  %v4478_v1 = vld [vmem:[%s6030_s20 + $0x20] sm:$0xff]  }
 0xd64   : > { %v4213_v21 = vpop.f32.mrf.mxu1 }
 0xd65   : > { %v2471_v53 = vadd.f32 %v4213_v21, %v3884_v48  ;;  %v4457_v21 = vld [vmem:[%s5209_s26 + $0x2c] ss:$16 sps:$4 sm:$0xff]  }
 0xd66   : > { %v2462_v51 = vpop.f32.mrf.mxu1  ;;  %2828 = vmatprep.subr.bf16.mxu1 %v4457_v21  ;;  %v4480_v21 = vld [vmem:[%s6030_s20 + $0x58] sm:$0xff]  }
 0xd67   : > { %v2463_v23 = vadd.f32 %v3884_v48, %v2462_v51  ;;  %v5634_v59 = vadd.f32 %v4609_v58, %v2471_v53  ;;  %v4455_v51 = vld [vmem:[%s5209_s26 + $0x28] ss:$16 sps:$4 sm:$0xff]   ;;  %v4458_v53 = vld [vmem:[%s5209_s26] ss:$16 sps:$4 sm:$0xff]  }
 0xd68   : > { %v4214_v43 = vpop.f32.mrf.mxu1  ;;  %2829 = vmatpush1.bf16.msra.mxu1 %v4455_v51  ;;  %v4482_v51 = vld [vmem:[%s6030_s20 + $0x18] sm:$0xff]  }
 0xd69   : > { %v5631_v55 = vadd.f32 %v4608_v54, %v2463_v23  ;;  %v2474_v60 = vadd.f32 %v4214_v43, %v3884_v48  ;;  %v4460_v23 = vld [vmem:[%s5209_s26 + $0x4] ss:$16 sps:$4 sm:$0xff]   ;;  %v4463_v43 = vld [vmem:[%s5209_s26 + $0xc] ss:$16 sps:$4 sm:$0xff]   ;;  %v4461_v54 = vld [vmem:[%s5209_s26 + $0x8] ss:$16 sps:$4 sm:$0xff]  }
 0xd6a   : > { %v2465_v35 = vpop.f32.mrf.mxu1  ;;  %2830 = vmatprep.subr.bf16.mxu1 %v4463_v43  ;;  %v4484_v43 = vld [vmem:[%s6030_s20 + $0x50] sm:$0xff]  }
 0xd6b   : > { %v2466_v57 = vadd.f32 %v3884_v48, %v2465_v35  ;;  %2483 = vadd.xlane.f32.xlu0 %v5631_v55  ;;  %v5640_v5 = vadd.f32 %v4611_v4, %v2474_v60  ;;  %v4452_v48 = vld [vmem:[%s5209_s26 + $0x20] ss:$16 sps:$4 sm:$0xff]   ;;  %s6028_s26 = scalar_lea.vmem [#allocation7], %s5191_s14 }
 0xd6c   : > { %2776 = vmatpush1.bf16.msra.mxu0 %v4452_v48  ;;  %2831 = vmatpush1.bf16.msra.mxu1 %v4461_v54  ;;  %v4481_v48 = vld [vmem:[%s6030_s20 + $0xd8] sm:$0xff]   ;;  %v4486_v54 = vld [vmem:[%s6030_s20 + $0x10] sm:$0xff]  }
 0xd6d   : > { %v5636_v3 = vadd.f32 %v4610_v62, %v2466_v57  ;;  %2777 = vmatprep.subr.bf16.mxu0 %v4460_v23  ;;  %4051 = vmatprep.subr.bf16.mxu1 %v4465_v29  ;;  %v4483_v23 = vld [vmem:[%s6030_s20 + $0x98] sm:$0xff]  }
 0xd6f   : > { %2485 = vadd.xlane.f32.xlu1 %v5636_v3  ;;  %2487 = vadd.xlane.f32.xlu0 %v5634_v59 }
 0xd70   : > { %2778 = vmatpush1.bf16.msra.mxu0 %v4458_v53  ;;  %v4485_v53 = vld [vmem:[%s6030_s20 + $0xd0] sm:$0xff]  }
 0xd73   : > { %2489 = vadd.xlane.f32.xlu0 %v5640_v5 }
 0xdf4   : > { %v2484_v11 = vpop.xlane.xlu0 %2483 }
 0xdf5   : > { %v2491_v12 = vmul.f32 0.0078125, %v2484_v11 }
 0xdf7   : > { %v5648_v13 = vsub.f32 %v5631_v55, %v2491_v12 }
 0xdf8   : > { %v2486_v16 = vpop.xlane.xlu1 %2485  ;;  %v2488_v18 = vpop.xlane.xlu0 %2487 }
 0xdf9   : > { %v2492_v7 = vmul.f32 0.0078125, %v2486_v16  ;;  %v2493_v20 = vmul.f32 0.0078125, %v2488_v18  ;;  %v2499_v8 = vmul.f32 %v5648_v13, %v5648_v13 }
 0xdfb   : > { %v5653_v14 = vsub.f32 %v5636_v3, %v2492_v7  ;;  %v5656_v24 = vsub.f32 %v5634_v59, %v2493_v20  ;;  %2503 = vadd.xlane.f32.xlu0 %v2499_v8  ;;  %v3893_v7 = vld [vmem:[%s6028_s26] ss:$0 sm:$0xff] }
 0xdfc   : > { %v2490_v25 = vpop.xlane.xlu0 %2489 }
 0xdfd   : > { %v2494_v17 = vmul.f32 0.0078125, %v2490_v25  ;;  %v2500_v26 = vmul.f32 %v5653_v14, %v5653_v14  ;;  %v2501_v27 = vmul.f32 %v5656_v24, %v5656_v24 }
 0xdff   : > { %v5663_v28 = vsub.f32 %v5640_v5, %v2494_v17  ;;  %2505 = vadd.xlane.f32.xlu1 %v2500_v26  ;;  %2507 = vadd.xlane.f32.xlu0 %v2501_v27  ;;  %v3894_v26 = vld [vmem:[%s6029_s29] ss:$0 sm:$0xff] }
 0xe01   : > { %v2502_v30 = vmul.f32 %v5663_v28, %v5663_v28 }
 0xe03   : > { %2509 = vadd.xlane.f32.xlu1 %v2502_v30 }
 0xe84   : > { %v2504_v35 = vpop.xlane.xlu0 %2503 }
 0xe85   : > { %v2511_v57 = vmul.f32 0.0078125, %v2504_v35  ;;  %v4487_v35 = vld [vmem:[%s6030_s20 + $0x90] sm:$0xff]  }
 0xe87   : > { %v2515_v58 = vadd.f32 1e-05, %v2511_v57  ;;  %v4488_v57 = vld [vmem:[%s6030_s20 + $0x48] sm:$0xff]  }
 0xe88   : > { %v2506_v60 = vpop.xlane.xlu1 %2505  ;;  %v2508_v62 = vpop.xlane.xlu0 %2507 }
 0xe89   : > { %4568 = vrsqrt.f32 %v2515_v58  ;;  %v2512_v4 = vmul.f32 0.0078125, %v2506_v60  ;;  %v2513_v6 = vmul.f32 0.0078125, %v2508_v62  ;;  %v4489_v58 = vld [vmem:[%s6030_s20 + $0xc8] sm:$0xff]  }
 0xe8a   : > { %v4490_v60 = vld [vmem:[%s6030_s20 + $0x8] sm:$0xff]  }
 0xe8b   : > { %v2516_v56 = vadd.f32 1e-05, %v2512_v4  ;;  %v2517_v9 = vadd.f32 1e-05, %v2513_v6  ;;  %v4491_v62 = vld [vmem:[%s6030_s20 + $0x88] sm:$0xff]   ;;  %v4492_v4 = vld [vmem:[%s6030_s20 + $0x40] sm:$0xff]  }
 0xe8c   : > { %v2510_v10 = vpop.xlane.xlu1 %2509  ;;  %v4493_v6 = vld [vmem:[%s6030_s20 + $0xc0] sm:$0xff]  }
 0xe8d   : > { %4570 = vrsqrt.f32 %v2516_v56  ;;  %v2514_v11 = vmul.f32 0.0078125, %v2510_v10  ;;  %v4494_v56 = vld [vmem:[%s6030_s20] sm:$0xff]  }
 0xe8e   : > { %4572 = vrsqrt.f32 %v2517_v9  ;;  %v4495_v9 = vld [vmem:[%s6030_s20 + $0x80] sm:$0xff]  }
 0xe8f   : > { %v2518_v12 = vadd.f32 1e-05, %v2514_v11  ;;  %v2581_v10 = vld [vmem:[%s5267_s22] sm:$0xf]  ;;  %v2597_v11 = vsub.s32 3, %v5377_v39 }
 0xe91   : > { %4574 = vrsqrt.f32 %v2518_v12  ;;  %v5743_v12 = vrot.slane %v2581_v10, %v5385_v50 }
 0xe96   : > { %v4569_v16 = vpop.eup %4568 }
 0xe97   : > { %v2523_v18 = vmul.f32 %v4569_v16, %v5648_v13  ;;  %v5747_v16 = vrot.slane %v2581_v10, %v1056_v47 }
 0xe99   : > { %v2533_v25 = vmul.f32 %v3893_v7, %v2523_v18  ;;  %v5751_v18 = vrot.slane %v2581_v10, %v1052_v40 }
 0xe9a   : > { %v4571_v20 = vpop.eup %4570 }
 0xe9b   : > { %v2524_v8 = vmul.f32 %v4571_v20, %v5653_v14  ;;  %v4573_v17 = vpop.eup %4572  ;;  %v2543_v22 = vadd.f32 %v3894_v26, %v2533_v25 }
 0xe9c   : > { %v2525_v13 = vmul.f32 %v4573_v17, %v5656_v24 }
 0xe9d   : > { %v2534_v27 = vmul.f32 %v3893_v7, %v2524_v8 }
 0xe9e   : > { %v4575_v30 = vpop.eup %4574  ;;  %v2535_v36 = vmul.f32 %v3893_v7, %v2525_v13 }
 0xe9f   : > { %v2544_v32 = vadd.f32 %v3894_v26, %v2534_v27  ;;  %v2526_v33 = vmul.f32 %v4575_v30, %v5663_v28  ;;  %v4464_v28 = vld [vmem:[%s6030_s20 + $0x78] sm:$0xff]  }
 0xea0   : > { %v2545_v37 = vadd.f32 %v3894_v26, %v2535_v36  ;;  %4023 = vmatprep.subr.bf16.mxu0 %v4464_v28 }
 0xea1   : > { %v2547_v14 = vpack.c.bf16 %v2544_v32, %v2543_v22  ;;  %v2536_v34 = vmul.f32 %v3893_v7, %v2526_v33  ;;  %v5753_v7 = vrot.slane %v2581_v10, %v2597_v11 }
 0xea3   : > { %2796 = vmatmul.mubr.bf16.vlgmr.msra.gmra.mxu0 %v2547_v14  ;;  %2849 = vmatmul.mubr.bf16.vlgmr.msra.gmra.mxu1 %v2547_v14  ;;  %v2546_v31 = vadd.f32 %v3894_v26, %v2536_v34 }
 0xea4   : > { %2805 = vmatprep.mubr.bf16.mxu0 %v4907_v63  ;;  %2858 = vmatprep.mubr.bf16.mxu1 %v4907_v63  ;;  %v4468_v63 = vld [vmem:[%s6030_s20 + $0x70] sm:$0xff]  }
 0xea5   : > { %v2548_v24 = vpack.c.bf16 %v2546_v31, %v2545_v37  ;;  %4024 = vmatpush3.bf16.msra.mxu0 %v4466_v41  ;;  %4052 = vmatpush3.bf16.msra.mxu1 %v4467_v42 }
 0xea6   : > { %4025 = vmatprep.subr.bf16.mxu0 %v4468_v63  ;;  %4053 = vmatprep.subr.bf16.mxu1 %v4469_v44 }
 0xea9   : > { %4026 = vmatpush3.bf16.msra.mxu0 %v4470_v45  ;;  %4054 = vmatpush3.bf16.msra.mxu1 %v4471_v46 }
 0xeaa   : > { %4027 = vmatprep.subr.bf16.mxu0 %v4472_v15  ;;  %4055 = vmatprep.subr.bf16.mxu1 %v4473_v2 }
 0xeab   : > { %2806 = vmatmul.mubr.bf16.gmra.mxu0 %v2548_v24  ;;  %2859 = vmatmul.mubr.bf16.gmra.mxu1 %v2548_v24 }
 0xead   : > { %4028 = vmatpush3.bf16.msra.mxu0 %v4474_v49  ;;  %4056 = vmatpush3.bf16.msra.mxu1 %v4475_v52 }
 0xeae   : > { %4029 = vmatprep.subr.bf16.mxu0 %v4476_v61  ;;  %4057 = vmatprep.subr.bf16.mxu1 %v4477_v0 }
 0xeb1   : > { %4030 = vmatpush3.bf16.msra.mxu0 %v4478_v1  ;;  %4058 = vmatpush3.bf16.msra.mxu1 %v4479_v19 }
 0xeb2   : > { %4031 = vmatprep.subr.bf16.mxu0 %v4480_v21  ;;  %4059 = vmatprep.subr.bf16.mxu1 %v4481_v48 }
 0xeb5   : > { %4032 = vmatpush3.bf16.msra.mxu0 %v4482_v51  ;;  %4060 = vmatpush3.bf16.msra.mxu1 %v4483_v23 }
 0xeb6   : > { %4033 = vmatprep.subr.bf16.mxu0 %v4484_v43  ;;  %4061 = vmatprep.subr.bf16.mxu1 %v4485_v53 }
 0xeb9   : > { %4034 = vmatpush3.bf16.msra.mxu0 %v4486_v54  ;;  %4062 = vmatpush3.bf16.msra.mxu1 %v4487_v35 }
 0xeba   : > { %4035 = vmatprep.subr.bf16.mxu0 %v4488_v57  ;;  %4063 = vmatprep.subr.bf16.mxu1 %v4489_v58 }
 0xebd   : > { %4036 = vmatpush3.bf16.msra.mxu0 %v4490_v60  ;;  %4064 = vmatpush3.bf16.msra.mxu1 %v4491_v62 }
 0xebe   : > { %4037 = vmatprep.subr.bf16.mxu0 %v4492_v4  ;;  %4065 = vmatprep.subr.bf16.mxu1 %v4493_v6 }
 0xec1   : > { %4038 = vmatpush3.bf16.msra.mxu0 %v4494_v56  ;;  %4066 = vmatpush3.bf16.msra.mxu1 %v4495_v9 }
 0xf63   : > { %v2797_v20 = vpop.f32.mrf.mxu0  ;;  %v2850_v8 = vpop.f32.mrf.mxu1 }
 0xf64   : > { %v5756_v25 = vadd.f32 %v2797_v20, %v5743_v12  ;;  %v5759_v17 = vadd.f32 %v2850_v8, %v5747_v16 }
 0xf65   : > { %v2799_v26 = vpop.f32.mrf.mxu0  ;;  %v2852_v27 = vpop.f32.mrf.mxu1 }
 0xf66   : > { %v2869_v47 = vmul.f32 %v5756_v25, %v5756_v25  ;;  %v2871_v30 = vmul.f32 %v5759_v17, %v5759_v17  ;;  %v5766_v40 = vadd.f32 %v2799_v26, %v5751_v18  ;;  %v5769_v22 = vadd.f32 %v2852_v27, %v5753_v7 }
 0xf67   : > { %v2801_v32 = vpop.f32.mrf.mxu0  ;;  %v2854_v13 = vpop.f32.mrf.mxu1 }
 0xf68   : > { %v2885_v33 = vmul.f32 %v2869_v47, %v5756_v25  ;;  %v2887_v14 = vmul.f32 %v2871_v30, %v5759_v17  ;;  %v2870_v34 = vmul.f32 %v5766_v40, %v5766_v40  ;;  %v2872_v36 = vmul.f32 %v5769_v22, %v5769_v22 }
 0xf69   : > { %v5778_v31 = vadd.f32 %v2801_v32, %v5743_v12  ;;  %v5781_v37 = vadd.f32 %v2854_v13, %v5747_v16  ;;  %v2803_v24 = vpop.f32.mrf.mxu0  ;;  %v2856_v28 = vpop.f32.mrf.mxu1 }
 0xf6a   : > { %v2901_v29 = vmul.f32 0.044715, %v2885_v33  ;;  %v2903_v41 = vmul.f32 0.044715, %v2887_v14  ;;  %v2886_v42 = vmul.f32 %v2870_v34, %v5766_v40  ;;  %v2888_v63 = vmul.f32 %v2872_v36, %v5769_v22 }
 0xf6b   : > { %v2873_v44 = vmul.f32 %v5778_v31, %v5778_v31  ;;  %v2875_v45 = vmul.f32 %v5781_v37, %v5781_v37  ;;  %v5790_v46 = vadd.f32 %v2803_v24, %v5751_v18  ;;  %v5793_v15 = vadd.f32 %v2856_v28, %v5753_v7  ;;  %v2807_v2 = vpop.f32.mrf.mxu0  ;;  %v2860_v49 = vpop.f32.mrf.mxu1 }
 0xf6c   : > { %v2917_v52 = vadd.f32 %v2901_v29, %v5756_v25  ;;  %v2919_v61 = vadd.f32 %v2903_v41, %v5759_v17  ;;  %v2902_v0 = vmul.f32 0.044715, %v2886_v42  ;;  %v2904_v1 = vmul.f32 0.044715, %v2888_v63 }
 0xf6d   : > { %v2889_v19 = vmul.f32 %v2873_v44, %v5778_v31  ;;  %v2891_v21 = vmul.f32 %v2875_v45, %v5781_v37  ;;  %v2874_v48 = vmul.f32 %v5790_v46, %v5790_v46  ;;  %v2876_v51 = vmul.f32 %v5793_v15, %v5793_v15  ;;  %v2809_v35 = vpop.f32.mrf.mxu0  ;;  %v2862_v4 = vpop.f32.mrf.mxu1 }
 0xf6e   : > { %v2933_v23 = vmul.f32 0.7978846, %v2917_v52  ;;  %v2935_v43 = vmul.f32 0.7978846, %v2919_v61  ;;  %v2918_v53 = vadd.f32 %v2902_v0, %v5766_v40  ;;  %v2920_v54 = vadd.f32 %v2904_v1, %v5769_v22 }
 0xf6f   : > { %v2905_v57 = vmul.f32 0.044715, %v2889_v19  ;;  %v2907_v58 = vmul.f32 0.044715, %v2891_v21  ;;  %v2890_v60 = vmul.f32 %v2874_v48, %v5790_v46  ;;  %v2892_v62 = vmul.f32 %v2876_v51, %v5793_v15  ;;  %v2811_v47 = vpop.f32.mrf.mxu0  ;;  %v2864_v33 = vpop.f32.mrf.mxu1 }
 0xf70   : > { %4576 = vtanh.f32 %v2933_v23  ;;  %v2934_v6 = vmul.f32 0.7978846, %v2918_v53  ;;  %v2936_v56 = vmul.f32 0.7978846, %v2920_v54  ;;  %v5808_v9 = vadd.f32 %v2807_v2, %v5743_v12 }
 0xf71   : > { %4578 = vtanh.f32 %v2935_v43  ;;  %v2921_v10 = vadd.f32 %v2905_v57, %v5778_v31  ;;  %v2923_v11 = vadd.f32 %v2907_v58, %v5781_v37  ;;  %v2906_v20 = vmul.f32 0.044715, %v2890_v60  ;;  %v2813_v45 = vpop.f32.mrf.mxu0  ;;  %v2866_v61 = vpop.f32.mrf.mxu1 }
 0xf72   : > { %4580 = vtanh.f32 %v2934_v6  ;;  %v2908_v8 = vmul.f32 0.044715, %v2892_v62  ;;  %v2877_v26 = vmul.f32 %v5808_v9, %v5808_v9  ;;  %v5815_v27 = vadd.f32 %v2860_v49, %v5747_v16 }
 0xf73   : > { %4582 = vtanh.f32 %v2936_v56  ;;  %v2937_v30 = vmul.f32 0.7978846, %v2921_v10  ;;  %v2939_v32 = vmul.f32 0.7978846, %v2923_v11  ;;  %v2922_v13 = vadd.f32 %v2906_v20, %v5790_v46 }
 0xf74   : > { %v2924_v14 = vadd.f32 %v2908_v8, %v5793_v15  ;;  %v2893_v34 = vmul.f32 %v2877_v26, %v5808_v9  ;;  %v2879_v36 = vmul.f32 %v5815_v27, %v5815_v27  ;;  %v5823_v24 = vadd.f32 %v2809_v35, %v5751_v18 }
 0xf75   : > { %4584 = vtanh.f32 %v2937_v30  ;;  %v2938_v28 = vmul.f32 0.7978846, %v2922_v13  ;;  %v5826_v29 = vadd.f32 %v2862_v4, %v5753_v7  ;;  %v5829_v41 = vadd.f32 %v2811_v47, %v5743_v12 }
 0xf76   : > { %4586 = vtanh.f32 %v2939_v32  ;;  %v2940_v42 = vmul.f32 0.7978846, %v2924_v14  ;;  %v2909_v63 = vmul.f32 0.044715, %v2893_v34  ;;  %v2895_v44 = vmul.f32 %v2879_v36, %v5815_v27 }
 0xf77   : > { %4588 = vtanh.f32 %v2938_v28  ;;  %v2878_v2 = vmul.f32 %v5823_v24, %v5823_v24  ;;  %v2880_v49 = vmul.f32 %v5826_v29, %v5826_v29  ;;  %v2881_v52 = vmul.f32 %v5829_v41, %v5829_v41 }
 0xf78   : > { %4590 = vtanh.f32 %v2940_v42  ;;  %v2925_v12 = vadd.f32 %v2909_v63, %v5808_v9  ;;  %v2911_v0 = vmul.f32 0.044715, %v2895_v44  ;;  %v5840_v1 = vadd.f32 %v2864_v33, %v5747_v16 }
 0xf79   : > { %v2894_v19 = vmul.f32 %v2878_v2, %v5823_v24  ;;  %v2896_v21 = vmul.f32 %v2880_v49, %v5826_v29  ;;  %v2897_v48 = vmul.f32 %v2881_v52, %v5829_v41  ;;  %v5846_v51 = vadd.f32 %v2813_v45, %v5751_v18 }
 0xf7a   : > { %v2941_v23 = vmul.f32 0.7978846, %v2925_v12  ;;  %v2927_v43 = vadd.f32 %v2911_v0, %v5815_v27  ;;  %v2883_v53 = vmul.f32 %v5840_v1, %v5840_v1  ;;  %v5852_v54 = vadd.f32 %v2866_v61, %v5753_v7 }
 0xf7b   : > { %v2910_v16 = vmul.f32 0.044715, %v2894_v19  ;;  %v2912_v35 = vmul.f32 0.044715, %v2896_v21  ;;  %v2913_v57 = vmul.f32 0.044715, %v2897_v48  ;;  %v2882_v58 = vmul.f32 %v5846_v51, %v5846_v51 }
 0xf7c   : > { %v2943_v60 = vmul.f32 0.7978846, %v2927_v43  ;;  %v2899_v62 = vmul.f32 %v2883_v53, %v5840_v1  ;;  %v2884_v18 = vmul.f32 %v5852_v54, %v5852_v54  ;;  %4592 = vtanh.f32 %v2941_v23 }
 0xf7d   : > { %v4577_v4 = vpop.eup %4576  ;;  %v2926_v6 = vadd.f32 %v2910_v16, %v5823_v24  ;;  %v2928_v56 = vadd.f32 %v2912_v35, %v5826_v29  ;;  %v2929_v7 = vadd.f32 %v2913_v57, %v5829_v41  ;;  %v2898_v10 = vmul.f32 %v2882_v58, %v5846_v51 }
 0xf7e   : > { %v4579_v11 = vpop.eup %4578  ;;  %v2915_v20 = vmul.f32 0.044715, %v2899_v62  ;;  %v2900_v8 = vmul.f32 %v2884_v18, %v5852_v54  ;;  %4594 = vtanh.f32 %v2943_v60  ;;  %v2965_v42 = vadd.f32 1.0, %v4577_v4 }
 0xf7f   : > { %v4581_v26 = vpop.eup %4580  ;;  %v2942_v47 = vmul.f32 0.7978846, %v2926_v6  ;;  %v2944_v30 = vmul.f32 0.7978846, %v2928_v56  ;;  %v2945_v13 = vmul.f32 0.7978846, %v2929_v7 }
 0xf80   : > { %v4583_v32 = vpop.eup %4582  ;;  %v2931_v33 = vadd.f32 %v2915_v20, %v5840_v1  ;;  %v2914_v14 = vmul.f32 0.044715, %v2898_v10  ;;  %v2916_v34 = vmul.f32 0.044715, %v2900_v8  ;;  %v2966_v36 = vadd.f32 1.0, %v4581_v26 }
 0xf81   : > { %4596 = vtanh.f32 %v2942_v47  ;;  %v2967_v2 = vadd.f32 1.0, %v4579_v11  ;;  %v2968_v53 = vadd.f32 1.0, %v4583_v32  ;;  %v2981_v16 = vmul.f32 0.5, %v2965_v42 }
 0xf82   : > { %v4585_v28 = vpop.eup %4584  ;;  %4598 = vtanh.f32 %v2944_v30  ;;  %v2947_v63 = vmul.f32 0.7978846, %v2931_v33  ;;  %v2930_v44 = vadd.f32 %v2914_v14, %v5846_v51  ;;  %v2932_v52 = vadd.f32 %v2916_v34, %v5852_v54 }
 0xf83   : > { %v4587_v45 = vpop.eup %4586  ;;  %v2969_v49 = vadd.f32 1.0, %v4585_v28  ;;  %4600 = vtanh.f32 %v2945_v13  ;;  %v2982_v19 = vmul.f32 0.5, %v2966_v36  ;;  %v2983_v58 = vmul.f32 0.5, %v2967_v2 }
 0xf84   : > { %v4589_v61 = vpop.eup %4588  ;;  %v2971_v12 = vadd.f32 1.0, %v4587_v45  ;;  %4602 = vtanh.f32 %v2947_v63  ;;  %v2946_v0 = vmul.f32 0.7978846, %v2930_v44  ;;  %v2948_v23 = vmul.f32 0.7978846, %v2932_v52 }
 0xf85   : > { %v4591_v21 = vpop.eup %4590  ;;  %v2985_v48 = vmul.f32 0.5, %v2969_v49  ;;  %v2970_v43 = vadd.f32 1.0, %v4589_v61  ;;  %v2984_v62 = vmul.f32 0.5, %v2968_v53  ;;  %v2998_v56 = vmul.f32 %v2982_v19, %v5766_v40 }
 0xf86   : > { %v2987_v35 = vmul.f32 0.5, %v2971_v12  ;;  %4604 = vtanh.f32 %v2946_v0  ;;  %v2972_v57 = vadd.f32 1.0, %v4591_v21  ;;  %v2997_v10 = vmul.f32 %v2981_v16, %v5756_v25 }
 0xf87   : > { %4606 = vtanh.f32 %v2948_v23  ;;  %v2986_v60 = vmul.f32 0.5, %v2970_v43  ;;  %v3001_v18 = vmul.f32 %v2985_v48, %v5778_v31  ;;  %v3000_v11 = vmul.f32 %v2984_v62, %v5769_v22 }
 0xf88   : > { %v2988_v4 = vmul.f32 0.5, %v2972_v57  ;;  %v3003_v6 = vmul.f32 %v2987_v35, %v5781_v37  ;;  %v2999_v8 = vmul.f32 %v2983_v58, %v5759_v17 }
 0xf89   : > { %v3002_v7 = vmul.f32 %v2986_v60, %v5790_v46  ;;  %v4593_v47 = vpop.eup %4592  ;;  %v3013_v30 = vpack.c.bf16 %v3001_v18, %v2997_v10 }
 0xf8a   : > { %v3004_v20 = vmul.f32 %v2988_v4, %v5793_v15  ;;  %v3015_v13 = vpack.c.bf16 %v3003_v6, %v2999_v8  ;;  %v2973_v14 = vadd.f32 1.0, %v4593_v47 }
 0xf8b   : > { %v3014_v26 = vpack.c.bf16 %v3002_v7, %v2998_v56  ;;  %v4595_v31 = vpop.eup %4594 }
 0xf8c   : > { %v3016_v32 = vpack.c.bf16 %v3004_v20, %v3000_v11  ;;  %v2975_v34 = vadd.f32 1.0, %v4595_v31  ;;  %v2989_v52 = vmul.f32 0.5, %v2973_v14 }
 0xf8d   : > { %3316 = vmatprep.mubr.bf16.mxu0 %v3014_v26 }
 0xf8e   : > { %v4597_v37 = vpop.eup %4596  ;;  %3365 = vmatprep.mubr.bf16.mxu1 %v3016_v32  ;;  %3317 = vmatmul.mubr.bf16.vlgmr.msra.gmra.mxu0 %v3013_v30  ;;  %v2991_v12 = vmul.f32 0.5, %v2975_v34  ;;  %v3005_v16 = vmul.f32 %v2989_v52, %v5808_v9 }
 0xf8f   : > { %v4599_v40 = vpop.eup %4598  ;;  %3366 = vmatmul.mubr.bf16.vlgmr.msra.gmra.mxu1 %v3015_v13  ;;  %v2974_v25 = vadd.f32 1.0, %v4597_v37 }
 0xf90   : > { %v4601_v46 = vpop.eup %4600  ;;  %v2976_v22 = vadd.f32 1.0, %v4599_v40  ;;  %v3007_v57 = vmul.f32 %v2991_v12, %v5815_v27 }
 0xf91   : > { %v4603_v33 = vpop.eup %4602  ;;  %v2977_v15 = vadd.f32 1.0, %v4601_v46  ;;  %v2990_v44 = vmul.f32 0.5, %v2974_v25 }
 0xf92   : > { %v2979_v17 = vadd.f32 1.0, %v4603_v33  ;;  %v2992_v49 = vmul.f32 0.5, %v2976_v22 }
 0xf93   : > { %v4605_v36 = vpop.eup %4604  ;;  %v2993_v28 = vmul.f32 0.5, %v2977_v15  ;;  %v3006_v21 = vmul.f32 %v2990_v44, %v5823_v24 }
 0xf94   : > { %v4607_v42 = vpop.eup %4606  ;;  %v2978_v63 = vadd.f32 1.0, %v4605_v36  ;;  %v2995_v45 = vmul.f32 0.5, %v2979_v17  ;;  %v3008_v43 = vmul.f32 %v2992_v49, %v5826_v29  ;;  %v3927_v29 = vld [vmem:[%s882_s5] ss:$0 sm:$0xff] }
 0xf95   : > { %v2980_v2 = vadd.f32 1.0, %v4607_v42  ;;  %v3009_v19 = vmul.f32 %v2993_v28, %v5829_v41 }
 0xf96   : > { %v2994_v61 = vmul.f32 0.5, %v2978_v63  ;;  %v3011_v23 = vmul.f32 %v2995_v45, %v5840_v1 }
 0xf97   : > { %v2996_v0 = vmul.f32 0.5, %v2980_v2  ;;  %v3017_v60 = vpack.c.bf16 %v3009_v19, %v3005_v16 }
 0xf98   : > { %v3010_v48 = vmul.f32 %v2994_v61, %v5846_v51  ;;  %v3019_v41 = vpack.c.bf16 %v3011_v23, %v3007_v57 }
 0xf99   : > { %v3012_v53 = vmul.f32 %v2996_v0, %v5852_v54 }
 0xf9a   : > { %v3018_v35 = vpack.c.bf16 %v3010_v48, %v3006_v21 }
 0xf9b   : > { %v3020_v58 = vpack.c.bf16 %v3012_v53, %v3008_v43 }
 0xf9c   : > { %3324 = vmatprep.mubr.bf16.mxu0 %v3018_v35 }
 0xf9d   : > { %3373 = vmatprep.mubr.bf16.mxu1 %v3020_v58  ;;  %3325 = vmatmul.mubr.bf16.gmra.mxu0 %v3017_v60 }
 0xf9e   : > { %3374 = vmatmul.mubr.bf16.gmra.mxu1 %v3019_v41 }
0x104e   : > { %v4039_v24 = vpop.f32.mrf.mxu0 }
0x104f   : > { %v4067_v51 = vpop.f32.mrf.mxu1 }
0x1050   : > { %v4040_v1 = vpop.f32.mrf.mxu0 }
0x1051   : > { %v4041_v54 = vadd.f32 %v4040_v1, %v4039_v24  ;;  %v4068_v9 = vpop.f32.mrf.mxu1 }
0x1052   : > { %v4042_v62 = vpop.f32.mrf.mxu0  ;;  %v4069_v27 = vadd.f32 %v4068_v9, %v4067_v51 }
0x1053   : > { %v3319_v18 = vadd.f32 %v4041_v54, %v3927_v29  ;;  %v4070_v4 = vpop.f32.mrf.mxu1 }
0x1054   : > { %v4043_v6 = vpop.f32.mrf.mxu0 }
0x1055   : > { %v3368_v56 = vadd.f32 %v4069_v27, %v3319_v18  ;;  %v4044_v7 = vadd.f32 %v4043_v6, %v4042_v62  ;;  %v4071_v10 = vpop.f32.mrf.mxu1 }
0x1056   : > { %v4072_v8 = vadd.f32 %v4071_v10, %v4070_v4 }
0x1057   : > { %v3382_v11 = vadd.f32 %v3368_v56, %v5631_v55  ;;  %v3322_v20 = vadd.f32 %v4044_v7, %v3927_v29 }
0x1059   : > { %v3371_v26 = vadd.f32 %v4072_v8, %v3322_v20 }
0x105b   : > { %v3383_v47 = vadd.f32 %v3371_v26, %v5636_v3 }
0x105d   : > { %v4045_v30 = vpop.f32.mrf.mxu0 }
0x105e   : > { %v4073_v32 = vpop.f32.mrf.mxu1 }
0x105f   : > { %v4046_v31 = vpop.f32.mrf.mxu0 }
0x1060   : > { %v4047_v13 = vadd.f32 %v4046_v31, %v4045_v30  ;;  %v4074_v37 = vpop.f32.mrf.mxu1 }
0x1061   : > { %v4048_v40 = vpop.f32.mrf.mxu0  ;;  %v4075_v25 = vadd.f32 %v4074_v37, %v4073_v32 }
0x1062   : > { %v3327_v46 = vadd.f32 %v4047_v13, %v3927_v29  ;;  %v4076_v33 = vpop.f32.mrf.mxu1 }
0x1063   : > { %v4049_v22 = vpop.f32.mrf.mxu0 }
0x1064   : > { %v3376_v14 = vadd.f32 %v4075_v25, %v3327_v46  ;;  %v4050_v15 = vadd.f32 %v4049_v22, %v4048_v40  ;;  %v4077_v34 = vpop.f32.mrf.mxu1 }
0x1065   : > { %v4078_v36 = vadd.f32 %v4077_v34, %v4076_v33 }
0x1066   : > { %v3384_v55 = vadd.f32 %v3376_v14, %v5634_v59  ;;  %v3330_v17 = vadd.f32 %v4050_v15, %v3927_v29  ;;  %3390 = sbr.rel (%p3960_p3) target bundleno = 4205 (0x106d), region = 128 }
0x1068   : > { %v3379_v28 = vadd.f32 %v4078_v36, %v3330_v17 }
0x106a   : > { %v3385_v3 = vadd.f32 %v3379_v28, %v5640_v5 }
0x106b   : > { %3391 = vst [vmem:[#allocation2 + $0x10] sm:$0xff] %v3382_v11  ;;  %3392 = vst [vmem:[#allocation2] sm:$0xff] %v3383_v47 }
0x106c   : > { %3393 = vst [vmem:[#allocation2 + $0x18] sm:$0xff] %v3384_v55  ;;  %3394 = vst [vmem:[#allocation2 + $0x8] sm:$0xff] %v3385_v3 }
0x106d PF: > { %p3961_p10 = scmp.ne.s32.totalorder %s4877_s19, 1 }
0x106f   : > { %3397 = sbr.rel (%p3961_p10) target bundleno = 4681 (0x1249), region = 132 }
0x1074   : > { %3400 = vadd.xlane.f32.xlu0 %v3382_v11  ;;  %3404 = vadd.xlane.f32.xlu1 %v3384_v55  ;;  %v4913_v43 = vmov 0   ;;  %v3962_v62 = vld [vmem:[#allocation12] ss:$0 sm:$0xff]  ;;  %v3963_v27 = vld [vmem:[#allocation13] ss:$0 sm:$0xff]  ;;  %v3510_v15 = vand.u32 127, %v1046_v38 }
0x1075   : > { %4612 = vset.pattern.permute.xlu0 %v4913_v43  ;;  %v3964_v56 = vld [vmem:[#allocation15] ss:$0 sm:$0xff]  ;;  %v3491_v22 = vld [vmem:[#allocation4] sm:$0x1]  ;;  %vm3520_vm8 = vcmask 130112   ;;  %vm3527_vm9 = vcmask 195712  }
0x1076   : > { %v3515_v17 = vadd.s32 4294967288, %v3510_v15  ;;  %v3522_v36 = vadd.s32 4294967280, %v3510_v15  ;;  %v3529_v28 = vadd.s32 4294967272, %v3510_v15  ;;  %vm3534_vm10 = vcmask 261312  }
0x1077   : > { %vm3537_vm11 = vcmask 253952  }
0x1078   : > { %3402 = vadd.xlane.f32.xlu0 %v3383_v47  ;;  %3406 = vadd.xlane.f32.xlu1 %v3385_v3 }
0x10fd   : > { %v3401_v59 = vpop.xlane.xlu0 %3400  ;;  %v3405_v42 = vpop.xlane.xlu1 %3404 }
0x10fe   : > { %v3408_v63 = vmul.f32 0.0078125, %v3401_v59  ;;  %v3410_v44 = vmul.f32 0.0078125, %v3405_v42  ;;  %v3513_v59 = vsub.s32 %v3510_v15, %v5377_v39  ;;  %v3518_v42 = vsub.s32 %v3515_v17, %v5377_v39 }
0x1100   : > { %v3412_v5 = vsub.f32 %v3382_v11, %v3408_v63  ;;  %v3414_v45 = vsub.f32 %v3384_v55, %v3410_v44  ;;  %v3525_v63 = vsub.s32 %v3522_v36, %v5377_v39 }
0x1101   : > { %v3403_v2 = vpop.xlane.xlu0 %3402  ;;  %v3407_v49 = vpop.xlane.xlu1 %3406 }
0x1102   : > { %v3409_v52 = vmul.f32 0.0078125, %v3403_v2  ;;  %v3416_v61 = vmul.f32 %v3412_v5, %v3412_v5  ;;  %v3411_v12 = vmul.f32 0.0078125, %v3407_v49  ;;  %v3418_v21 = vmul.f32 %v3414_v45, %v3414_v45 }
0x1104   : > { %v3413_v0 = vsub.f32 %v3383_v47, %v3409_v52  ;;  %3420 = vadd.xlane.f32.xlu0 %v3416_v61  ;;  %v3415_v19 = vsub.f32 %v3385_v3, %v3411_v12 }
0x1106   : > { %v3417_v48 = vmul.f32 %v3413_v0, %v3413_v0  ;;  %v3419_v23 = vmul.f32 %v3415_v19, %v3415_v19 }
0x1108   : > { %3424 = vadd.xlane.f32.xlu0 %v3418_v21  ;;  %3422 = vadd.xlane.f32.xlu1 %v3417_v48 }
0x110c   : > { %3426 = vadd.xlane.f32.xlu1 %v3419_v23 }
0x118d   : > { %v3421_v53 = vpop.xlane.xlu0 %3420 }
0x118e   : > { %v3428_v16 = vmul.f32 0.0078125, %v3421_v53 }
0x1190   : > { %v3432_v35 = vadd.f32 1e-05, %v3428_v16 }
0x1191   : > { %v3423_v57 = vpop.xlane.xlu1 %3422  ;;  %v3425_v58 = vpop.xlane.xlu0 %3424 }
0x1192   : > { %4613 = vrsqrt.f32 %v3432_v35  ;;  %v3429_v60 = vmul.f32 0.0078125, %v3423_v57  ;;  %v3430_v41 = vmul.f32 0.0078125, %v3425_v58 }
0x1194   : > { %v3433_v24 = vadd.f32 1e-05, %v3429_v60  ;;  %v3434_v51 = vadd.f32 1e-05, %v3430_v41 }
0x1195   : > { %v3427_v29 = vpop.xlane.xlu1 %3426 }
0x1196   : > { %4615 = vrsqrt.f32 %v3433_v24  ;;  %v3431_v1 = vmul.f32 0.0078125, %v3427_v29 }
0x1197   : > { %4617 = vrsqrt.f32 %v3434_v51 }
0x1198   : > { %v3435_v54 = vadd.f32 1e-05, %v3431_v1 }
0x119a   : > { %4619 = vrsqrt.f32 %v3435_v54 }
0x119f   : > { %v4614_v9 = vpop.eup %4613 }
0x11a0   : > { %v3440_v18 = vmul.f32 %v4614_v9, %v3412_v5 }
0x11a2   : > { %v3450_v4 = vmul.f32 %v3962_v62, %v3440_v18 }
0x11a3   : > { %v4616_v6 = vpop.eup %4615 }
0x11a4   : > { %v4618_v7 = vpop.eup %4617  ;;  %v3460_v10 = vadd.f32 %v3963_v27, %v3450_v4  ;;  %v3441_v11 = vmul.f32 %v4616_v6, %v3413_v0 }
0x11a5   : > { %v3442_v20 = vmul.f32 %v4618_v7, %v3414_v45  ;;  %v3532_v45 = vsub.s32 %v3529_v28, %v5377_v39 }
0x11a6   : > { %v3479_v8 = vmul.f32 %v3964_v56, %v3460_v10  ;;  %3464 = vst [vmem:[#allocation2 + $0x10] sm:$0xff] %v3460_v10  ;;  %3468 = vst [vmem:[%s5277_s16] sm:$0xff] %v3460_v10  ;;  %v3451_v26 = vmul.f32 %v3962_v62, %v3441_v11 }
0x11a7   : > { %v4620_v47 = vpop.eup %4619  ;;  %v3452_v30 = vmul.f32 %v3962_v62, %v3442_v20 }
0x11a8   : > { %3483 = vadd.xlane.f32.xlu0 %v3479_v8  ;;  %v3461_v32 = vadd.f32 %v3963_v27, %v3451_v26  ;;  %v3443_v31 = vmul.f32 %v4620_v47, %v3415_v19 }
0x11a9   : > { %v3462_v13 = vadd.f32 %v3963_v27, %v3452_v30 }
0x11aa   : > { %v3480_v37 = vmul.f32 %v3964_v56, %v3461_v32  ;;  %3465 = vst [vmem:[#allocation2] sm:$0xff] %v3461_v32  ;;  %3469 = vst [vmem:[%s5277_s16 + $0x8] sm:$0xff] %v3461_v32  ;;  %v3453_v40 = vmul.f32 %v3962_v62, %v3443_v31 }
0x11ab   : > { %3466 = vst [vmem:[#allocation2 + $0x18] sm:$0xff] %v3462_v13  ;;  %3470 = vst [vmem:[%s5277_s16 + $0x10] sm:$0xff] %v3462_v13  ;;  %v3481_v46 = vmul.f32 %v3964_v56, %v3462_v13 }
0x11ac   : > { %3485 = vadd.xlane.f32.xlu1 %v3480_v37  ;;  %v3463_v25 = vadd.f32 %v3963_v27, %v3453_v40 }
0x11ad   : > { %3487 = vadd.xlane.f32.xlu0 %v3481_v46 }
0x11ae   : > { %3467 = vst [vmem:[#allocation2 + $0x8] sm:$0xff] %v3463_v25  ;;  %3471 = vst [vmem:[%s5277_s16 + $0x18] sm:$0xff] %v3463_v25  ;;  %v3482_v33 = vmul.f32 %v3964_v56, %v3463_v25 }
0x11b0   : > { %3489 = vadd.xlane.f32.xlu1 %v3482_v33 }
0x11c3   : > { %3494 = vperm.xlu0 %4612, %v3491_v22  }
0x1231   : > { %v3484_v14 = vpop.xlane.xlu0 %3483 }
0x1235   : > { %v3486_v34 = vpop.xlane.xlu1 %3485 }
0x1236   : > { %v3488_v55 = vpop.xlane.xlu0 %3487 }
0x1239   : > { %v3490_v5 = vpop.xlane.xlu1 %3489 }
0x123e   : > { %v3495_v3 = vpop.permute.xlu0 %3494 }
0x123f   : > { %v3500_v44 = vrot.slane %v3495_v3, %v5385_v50 }
0x1241   : > { %v3501_v2 = vadd.f32 %v3500_v44, %v3484_v14  ;;  %v3502_v38 = vadd.f32 %v3500_v44, %v3486_v34  ;;  %v3503_v49 = vadd.f32 %v3500_v44, %v3488_v55  ;;  %v3504_v52 = vadd.f32 %v3500_v44, %v3490_v5 }
0x1243   : > { %v3514_v61 = vrot.slane %v3501_v2, %v3513_v59  ;;  %v3519_v12 = vrot.slane %v3502_v38, %v3518_v42  ;;  %v3526_v0 = vrot.slane %v3503_v49, %v3525_v63  ;;  %v3533_v21 = vrot.slane %v3504_v52, %v3532_v45 }
0x1245   : > { %v3521_v19 = vsel %vm3520_vm8, %v3519_v12, %v3514_v61 }
0x1246   : > { %v3528_v48 = vsel %vm3527_vm9, %v3526_v0, %v3521_v19 }
0x1247   : > { %v3535_v23 = vsel %vm3534_vm10, %v3533_v21, %v3528_v48 }
0x1248   : > { %3538 = vst.msk [vmem:[%s890_s0] sm:$0x1] %vm3537_vm11, %v3535_v23 }
0x1249 PF: > { %s6033_s16 = sld [smem:[#allocation25_spill]] }
0x124a   : > { %s6034_s29 = sld [smem:[#allocation21_spill]] }
0x124b   : > { %s6035_s30 = sld [smem:[#allocation22_spill]] }
0x124c   : > { %s6036_s0 = sld [smem:[#allocation28_spill]] }
0x124d   : > { %s6037_s19 = sld [smem:[#allocation23_spill]] }
0x124e   : > { %s6038_s1 = sld [smem:[#allocation24_spill]] }
0x124f   : > { %s41_s21 = sadd.s32 1, %s6033_s16   ;;  %s6039_s20 = sld [smem:[#allocation26_spill]] }
0x1250   : > { %p38_p12 = scmp.ge.s32.totalorder %s41_s21, 8   ;;  %s6040_s16 = sld [smem:[#allocation27_spill]] }
0x1252   :  { %40 = sbr.rel (!%p38_p12) target bundleno = 27 (0x1b), region = 229 }
0x1257   :  { %3572 = vsyncpa [#allocation6], 1 }
0x1258   :  { %3574 = vsyncpa [#allocation6 + $0x1], 1 }
0x1259   :  { %3575 = vsyncpa [#allocation8], 1 }
0x125a   :  { %3577 = vsyncpa [#allocation8 + $0x1], 1 }
0x125b   :  { %3578 = vsyncpa [#allocation11], 1 }
0x125c   :  { %3580 = vsyncpa [#allocation11 + $0x1], 1 }
0x125d   :  { %3581 = vsyncpa [#allocation14], 1 }

</bundles_post_ra>
